<compile_context>
chip_gen: v5e
topology: v5e:2x2
jax: 0.10.0
libtpu: 0.0.40
codegen_flags: <defaults>
</compile_context>

<pallas_src>
import functools

import jax
import jax.numpy as jnp
from jax.experimental import pallas as pl
from jax.experimental.pallas import tpu as pltpu

IN_DIM = 28 * 28          # 784
IN_PAD = 896              # 7 * 128  (lane-aligned K for the first matmul)
HID = 512
OUT = 10
OUT_PAD = 128             # lane-dense output slab


def _round_up(n, m):
    return ((n + m - 1) // m) * m


def mlp_kernel(x_ref, w1_ref, b1_ref, w2_ref, b2_ref, w3_ref, b3_ref, o_ref):
    # x_ref: (TB, IN_PAD) f32; w*: bf16 (in, out); b*: f32 (1, out); o_ref: (TB, OUT_PAD)
    x = x_ref[...]
    h1 = jnp.dot(x, w1_ref[...].astype(jnp.float32),
                 preferred_element_type=jnp.float32) + b1_ref[...]
    h1 = jnp.maximum(h1, 0.0)
    h2 = jnp.dot(h1, w2_ref[...].astype(jnp.float32),
                 preferred_element_type=jnp.float32) + b2_ref[...]
    h2 = jnp.maximum(h2, 0.0)
    h3 = jnp.dot(h2, w3_ref[...].astype(jnp.float32),
                 preferred_element_type=jnp.float32) + b3_ref[...]
    # The PyTorch module ends with nn.ReLU() after the final Linear.
    o_ref[...] = jnp.maximum(h3, 0.0).astype(o_ref.dtype)


def fashion_mnist_forward(x_nchw, params, tile_b=256):
    """x_nchw: (B, 1, 28, 28) float32. Returns (B, 10) float32."""
    w1, b1, w2, b2, w3, b3 = params
    B = x_nchw.shape[0]

    x = x_nchw.reshape(B, -1)                               # nn.Flatten (NCHW row-major)
    x = jnp.pad(x, ((0, 0), (0, IN_PAD - IN_DIM)))          # K-pad 784 -> 896

    # Pick a batch tile: multiple of 8 (f32 sublanes), no larger than needed.
    tile_b = min(tile_b, _round_up(B, 8))
    b_pad = _round_up(B, tile_b)
    if b_pad != B:
        x = jnp.pad(x, ((0, b_pad - B), (0, 0)))
    grid = (b_pad // tile_b,)

    # Weight/bias blocks always map to block (0, 0) -> VMEM-resident across tiles.
    resident = lambda shape: pl.BlockSpec(shape, lambda i: (0, 0))

    out = pl.pallas_call(
        mlp_kernel,
        out_shape=jax.ShapeDtypeStruct((b_pad, OUT_PAD), jnp.float32),
        grid=grid,
        in_specs=[
            pl.BlockSpec((tile_b, IN_PAD), lambda i: (i, 0)),   # x: tiled on batch
            resident((IN_PAD, HID)),                            # w1 (bf16)
            resident((1, HID)),                                 # b1 (f32)
            resident((HID, HID)),                               # w2 (bf16)
            resident((1, HID)),                                 # b2 (f32)
            resident((HID, OUT_PAD)),                           # w3 (bf16, N-padded)
            resident((1, OUT_PAD)),                             # b3 (f32, N-padded)
        ],
        out_specs=pl.BlockSpec((tile_b, OUT_PAD), lambda i: (i, 0)),
        compiler_params=pltpu.CompilerParams(
            dimension_semantics=("parallel",),   # shard batch tiles across TCs (v7x)
            vmem_limit_bytes=32 << 20,           # safe headroom on 64 MiB v7x VMEM
        ),
    )(x, w1, b1, w2, b2, w3, b3)

    return out[:B, :OUT]


def init_params(key):
    """PyTorch-like nn.Linear init; weights stored transposed (in, out), padded,
    and cast to bf16. Biases stay f32."""
    k1, k2, k3, k4, k5, k6 = jax.random.split(key, 6)

    def lin_init(kw, kb, fan_in, fan_out):
        bound = 1.0 / jnp.sqrt(fan_in)
        w = jax.random.uniform(kw, (fan_in, fan_out), jnp.float32, -bound, bound)
        b = jax.random.uniform(kb, (1, fan_out), jnp.float32, -bound, bound)
        return w, b

    w1, b1 = lin_init(k1, k2, IN_DIM, HID)
    w2, b2 = lin_init(k3, k4, HID, HID)
    w3, b3 = lin_init(k5, k6, HID, OUT)

    # Zero-pad: layer-1 K to 896, layer-3 N to 128 (zeros keep math identical).
    w1 = jnp.pad(w1, ((0, IN_PAD - IN_DIM), (0, 0)))
    w3 = jnp.pad(w3, ((0, 0), (0, OUT_PAD - OUT)))
    b3 = jnp.pad(b3, ((0, 0), (0, OUT_PAD - OUT)))

    return (w1.astype(jnp.bfloat16), b1,
            w2.astype(jnp.bfloat16), b2,
            w3.astype(jnp.bfloat16), b3)


def reference_forward(x_nchw, params):
    """Pure-JAX reference using the same (bf16-quantized) weights, f32 math."""
    w1, b1, w2, b2, w3, b3 = params
    hp = jax.lax.Precision.HIGHEST
    x = x_nchw.reshape(x_nchw.shape[0], -1)
    x = jnp.pad(x, ((0, 0), (0, IN_PAD - IN_DIM)))
    h = jnp.maximum(jnp.dot(x, w1.astype(jnp.float32), precision=hp) + b1, 0.0)
    h = jnp.maximum(jnp.dot(h, w2.astype(jnp.float32), precision=hp) + b2, 0.0)
    h = jnp.maximum(jnp.dot(h, w3.astype(jnp.float32), precision=hp) + b3, 0.0)
    return h[:, :OUT]


if __name__ == "__main__":
    key = jax.random.PRNGKey(0)
    kx1, kx2, kp = jax.random.split(key, 3)
    params = init_params(kp)

    fwd = jax.jit(fashion_mnist_forward, static_argnames=("tile_b",))

    # Case 1: small batch, single tile.
    x1 = jax.random.normal(kx1, (8, 1, 28, 28), jnp.float32)   # NCHW like PyTorch
    out1 = jax.block_until_ready(fwd(x1, params))
    ref1 = reference_forward(x1, params)
    assert out1.shape == (8, OUT)
    assert jnp.allclose(out1, ref1, atol=2e-2, rtol=2e-2), "mismatch vs reference (B=8)"

    # Case 2: ragged batch -> exercises the batch grid (3 tiles), padding, slicing.
    x2 = jax.random.normal(kx2, (20, 1, 28, 28), jnp.float32)
    out2 = jax.block_until_ready(fwd(x2, params, tile_b=8))
    ref2 = reference_forward(x2, params)
    assert out2.shape == (20, OUT)
    assert jnp.allclose(out2, ref2, atol=2e-2, rtol=2e-2), "mismatch vs reference (B=20)"

    print("KERNEL_OK")
</pallas_src>

<mosaic_0001>
module attributes {stable_mosaic.version = 11 : i64} {
  func.func @mlp_kernel(%arg0: i32, %arg1: memref<8x896xf32, #tpu.memory_space<vmem>>, %arg2: memref<896x512xbf16, #tpu.memory_space<vmem>>, %arg3: memref<1x512xf32, #tpu.memory_space<vmem>>, %arg4: memref<512x512xbf16, #tpu.memory_space<vmem>>, %arg5: memref<1x512xf32, #tpu.memory_space<vmem>>, %arg6: memref<512x128xbf16, #tpu.memory_space<vmem>>, %arg7: memref<1x128xf32, #tpu.memory_space<vmem>>, %arg8: memref<8x128xf32, #tpu.memory_space<vmem>>) attributes {dimension_semantics = [#tpu.dimension_semantics<parallel>], iteration_bounds = array<i64: 1>, scalar_prefetch = 0 : i64, scratch_operands = 0 : i64, tpu.core_type = #tpu.core_type<tc>, window_params = [{transform_indices = @transform_0, window_bounds = array<i64: 8, 896>}, {pipeline_mode = #tpu.pipeline_mode<synchronous>, transform_indices = @transform_1, window_bounds = array<i64: 896, 512>}, {pipeline_mode = #tpu.pipeline_mode<synchronous>, transform_indices = @transform_2, window_bounds = array<i64: 1, 512>}, {pipeline_mode = #tpu.pipeline_mode<synchronous>, transform_indices = @transform_3, window_bounds = array<i64: 512, 512>}, {pipeline_mode = #tpu.pipeline_mode<synchronous>, transform_indices = @transform_4, window_bounds = array<i64: 1, 512>}, {pipeline_mode = #tpu.pipeline_mode<synchronous>, transform_indices = @transform_5, window_bounds = array<i64: 512, 128>}, {pipeline_mode = #tpu.pipeline_mode<synchronous>, transform_indices = @transform_6, window_bounds = array<i64: 1, 128>}, {transform_indices = @transform_7, window_bounds = array<i64: 8, 128>}]} {
    %c0 = arith.constant 0 : index
    %c0_0 = arith.constant 0 : index
    %0 = vector.load %arg1[%c0, %c0_0] : memref<8x896xf32, #tpu.memory_space<vmem>>, vector<8x896xf32>
    %c0_1 = arith.constant 0 : index
    %c0_2 = arith.constant 0 : index
    %1 = vector.load %arg2[%c0_1, %c0_2] : memref<896x512xbf16, #tpu.memory_space<vmem>>, vector<896x512xbf16>
    %2 = arith.extf %1 : vector<896x512xbf16> to vector<896x512xf32>
    %cst = arith.constant dense<0.000000e+00> : vector<8x512xf32>
    %3 = tpu.matmul %0, %2, %cst {dimension_numbers = #tpu.dot_dimension_numbers<[1], [0], [0], [1], [0, 0, 1, 1], [], []>} : vector<8x896xf32>, vector<896x512xf32>, vector<8x512xf32> -> vector<8x512xf32>
    %c0_3 = arith.constant 0 : index
    %c0_4 = arith.constant 0 : index
    %4 = vector.load %arg3[%c0_3, %c0_4] : memref<1x512xf32, #tpu.memory_space<vmem>>, vector<1x512xf32>
    %5 = vector.broadcast %4 : vector<1x512xf32> to vector<8x512xf32>
    %6 = arith.addf %3, %5 : vector<8x512xf32>
    %cst_5 = arith.constant 0.000000e+00 : f32
    %7 = vector.broadcast %cst_5 : f32 to vector<8x512xf32>
    %8 = arith.maximumf %6, %7 : vector<8x512xf32>
    %c0_6 = arith.constant 0 : index
    %c0_7 = arith.constant 0 : index
    %9 = vector.load %arg4[%c0_6, %c0_7] : memref<512x512xbf16, #tpu.memory_space<vmem>>, vector<512x512xbf16>
    %10 = arith.extf %9 : vector<512x512xbf16> to vector<512x512xf32>
    %cst_8 = arith.constant dense<0.000000e+00> : vector<8x512xf32>
    %11 = tpu.matmul %8, %10, %cst_8 {dimension_numbers = #tpu.dot_dimension_numbers<[1], [0], [0], [1], [0, 0, 1, 1], [], []>} : vector<8x512xf32>, vector<512x512xf32>, vector<8x512xf32> -> vector<8x512xf32>
    %c0_9 = arith.constant 0 : index
    %c0_10 = arith.constant 0 : index
    %12 = vector.load %arg5[%c0_9, %c0_10] : memref<1x512xf32, #tpu.memory_space<vmem>>, vector<1x512xf32>
    %13 = vector.broadcast %12 : vector<1x512xf32> to vector<8x512xf32>
    %14 = arith.addf %11, %13 : vector<8x512xf32>
    %cst_11 = arith.constant 0.000000e+00 : f32
    %15 = vector.broadcast %cst_11 : f32 to vector<8x512xf32>
    %16 = arith.maximumf %14, %15 : vector<8x512xf32>
    %c0_12 = arith.constant 0 : index
    %c0_13 = arith.constant 0 : index
    %17 = vector.load %arg6[%c0_12, %c0_13] : memref<512x128xbf16, #tpu.memory_space<vmem>>, vector<512x128xbf16>
    %18 = arith.extf %17 : vector<512x128xbf16> to vector<512x128xf32>
    %cst_14 = arith.constant dense<0.000000e+00> : vector<8x128xf32>
    %19 = tpu.matmul %16, %18, %cst_14 {dimension_numbers = #tpu.dot_dimension_numbers<[1], [0], [0], [1], [0, 0, 1, 1], [], []>} : vector<8x512xf32>, vector<512x128xf32>, vector<8x128xf32> -> vector<8x128xf32>
    %c0_15 = arith.constant 0 : index
    %c0_16 = arith.constant 0 : index
    %20 = vector.load %arg7[%c0_15, %c0_16] : memref<1x128xf32, #tpu.memory_space<vmem>>, vector<1x128xf32>
    %21 = vector.broadcast %20 : vector<1x128xf32> to vector<8x128xf32>
    %22 = arith.addf %19, %21 : vector<8x128xf32>
    %cst_17 = arith.constant 0.000000e+00 : f32
    %23 = vector.broadcast %cst_17 : f32 to vector<8x128xf32>
    %24 = arith.maximumf %22, %23 : vector<8x128xf32>
    %c0_18 = arith.constant 0 : index
    %c0_19 = arith.constant 0 : index
    %25 = vector.load %arg8[%c0_18, %c0_19] : memref<8x128xf32, #tpu.memory_space<vmem>>, vector<8x128xf32>
    tpu.vector_store %arg8[%c0_18, %c0_19], %24 {strides = array<i32>} : memref<8x128xf32, #tpu.memory_space<vmem>>, vector<8x128xf32>,
    return
  }
  func.func @transform_0(%arg0: i32) -> (i32, i32) {
    %c0_i32 = arith.constant 0 : i32
    %c0_i32_0 = arith.constant 0 : i32
    return %arg0, %c0_i32 : i32, i32
  }
  func.func @transform_1(%arg0: i32) -> (i32, i32) {
    %c0_i32 = arith.constant 0 : i32
    %c0_i32_0 = arith.constant 0 : i32
    %c0_i32_1 = arith.constant 0 : i32
    return %c0_i32, %c0_i32_0 : i32, i32
  }
  func.func @transform_2(%arg0: i32) -> (i32, i32) {
    %c0_i32 = arith.constant 0 : i32
    %c0_i32_0 = arith.constant 0 : i32
    %c0_i32_1 = arith.constant 0 : i32
    return %c0_i32, %c0_i32_0 : i32, i32
  }
  func.func @transform_3(%arg0: i32) -> (i32, i32) {
    %c0_i32 = arith.constant 0 : i32
    %c0_i32_0 = arith.constant 0 : i32
    %c0_i32_1 = arith.constant 0 : i32
    return %c0_i32, %c0_i32_0 : i32, i32
  }
  func.func @transform_4(%arg0: i32) -> (i32, i32) {
    %c0_i32 = arith.constant 0 : i32
    %c0_i32_0 = arith.constant 0 : i32
    %c0_i32_1 = arith.constant 0 : i32
    return %c0_i32, %c0_i32_0 : i32, i32
  }
  func.func @transform_5(%arg0: i32) -> (i32, i32) {
    %c0_i32 = arith.constant 0 : i32
    %c0_i32_0 = arith.constant 0 : i32
    %c0_i32_1 = arith.constant 0 : i32
    return %c0_i32, %c0_i32_0 : i32, i32
  }
  func.func @transform_6(%arg0: i32) -> (i32, i32) {
    %c0_i32 = arith.constant 0 : i32
    %c0_i32_0 = arith.constant 0 : i32
    %c0_i32_1 = arith.constant 0 : i32
    return %c0_i32, %c0_i32_0 : i32, i32
  }
  func.func @transform_7(%arg0: i32) -> (i32, i32) {
    %c0_i32 = arith.constant 0 : i32
    %c0_i32_0 = arith.constant 0 : i32
    return %arg0, %c0_i32 : i32, i32
  }
}

</mosaic_0001>

<bundles_post_ra>
// kernel: fashion_mnist_forward.1
= control target key start
LH: loop header
LB: loop body
LE: loop exit
PB: predicated region body
PF: predicated region fallthrough
CT: control target
= control target key end

     0   :  { %12 = vsyncpa [#allocation3], 0  ;;  %s4192_s0 = inlined_call_operand.vmem [shape: f32[8,896], index: 0, kind: input, shape index: {}]   ;;  %s4193_s1 = inlined_call_operand.hbm [shape: bf16[896,512], index: 1, kind: input, shape index: {}]   ;;  %s4194_s2 = inlined_call_operand.vmem [shape: f32[1,512], index: 2, kind: input, shape index: {}]   ;;  %s4195_s3 = inlined_call_operand.hbm [shape: bf16[512,512], index: 3, kind: input, shape index: {}]   ;;  %s4196_s4 = inlined_call_operand.vmem [shape: f32[1,512], index: 4, kind: input, shape index: {}]   ;;  %s4197_s5 = inlined_call_operand.vmem [shape: bf16[512,128], index: 5, kind: input, shape index: {}]   ;;  %s4198_s6 = inlined_call_operand.vmem [shape: f32[1,128], index: 6, kind: input, shape index: {}]   ;;  %s4199_s7 = inlined_call_operand.hbm [shape: f32[8,128], index: 7, kind: output, shape index: {}]  }
   0x1   :  { %13 = vsyncpa [#allocation6], 0 }
   0x2   :  { %14 = vsyncpa [#allocation4], 0  ;;  %s21_s26 = sshll.u32 %s4193_s1, 4  ;;  %s2513_s27 = smov [#allocation2]   ;;  %s22_s26 = int_to_ptr.hbm [resolvable:$true] %s21_s26 }
   0x3   :  { %s23_s28 = sshll.u32 %s2513_s27, 4  ;;  %s36_s8 = sshll.u32 %s4195_s3, 4  ;;  %s24_s28 = int_to_ptr.vmem [resolvable:$true] %s23_s28  ;;  %s37_s8 = int_to_ptr.hbm [resolvable:$true] %s36_s8 }
   0x4   :  { %s2514_s9 = smov 256   ;;  %s2515_s10 = smov 16  }
   0x5   :  { %29 = dma.hbm_to_vmem [thread:$0]  %s22_s26, 28672, %s24_s28, [#allocation3], %s2514_s9, %s2514_s9, %s2515_s10  }
   0x6   :  { %s2516_s11 = smov [#allocation5]  }
   0x7   :  { %s38_s12 = sshll.u32 %s2516_s11, 4  ;;  %s39_s12 = int_to_ptr.vmem [resolvable:$true] %s38_s12 }
   0x8   :  { %44 = dma.hbm_to_vmem [thread:$0]  %s37_s8, 16384, %s39_s12, [#allocation6], %s2514_s9, %s2514_s9, %s2515_s10  }
   0x9   :  { %2507 = dma.done.wait [#allocation3], 28672  }
   0xa   :  { %2508 = vsyncadd [#allocation3], 4294938624 }
   0xb   :  { %2509 = dma.done.wait [#allocation6], 16384  }
   0xc   :  { %2510 = vsyncadd [#allocation6], 4294950912  ;;  %v2564_v0 = vld [vmem:[#allocation2 + $0xf0] sm:$0xff]  ;;  %v2573_v6 = vld [vmem:[#allocation2 + $0xe0] sm:$0xff]  ;;  %s2517_s28 = smov [#allocation7]   ;;  %s2251_s9 = sshll.u32 %s4199_s7, 4  ;;  %s2252_s9 = int_to_ptr.hbm [resolvable:$true] %s2251_s9 }
   0xd   :  { %v2566_v1 = vld [vmem:[#allocation2 + $0x1f0] sm:$0xff]  ;;  %v350_v3 = vunpack.c.l.bf16 %v2564_v0  ;;  %v2575_v7 = vld [vmem:[#allocation2 + $0x1e0] sm:$0xff]  ;;  %v346_v9 = vunpack.c.l.bf16 %v2573_v6  ;;  %s2249_s29 = sshll.u32 %s2517_s28, 4  ;;  %s2250_s29 = int_to_ptr.vmem [resolvable:$true] %s2249_s29 }
   0xe   :  { %v2568_v2 = vld [vmem:[#allocation2 + $0x2f0] sm:$0xff]  ;;  %v414_v4 = vunpack.c.l.bf16 %v2566_v1  ;;  %v2577_v8 = vld [vmem:[#allocation2 + $0x2e0] sm:$0xff]  ;;  %v410_v10 = vunpack.c.l.bf16 %v2575_v7 }
   0xf   :  { %v478_v5 = vunpack.c.l.bf16 %v2568_v2  ;;  %v2581_v11 = vld [vmem:[#allocation2 + $0x3f0] sm:$0xff]  ;;  %748 = vmatpush.msra.mxu0 %v350_v3  ;;  %v474_v14 = vunpack.c.l.bf16 %v2577_v8  ;;  %v2591_v17 = vld [vmem:[#allocation2 + $0x3e0] sm:$0xff] }
  0x10   :  { %v2583_v12 = vld [vmem:[#allocation2 + $0xd0] sm:$0xff]  ;;  %768 = vmatpush.msra.mxu1 %v414_v4  ;;  %v542_v15 = vunpack.c.l.bf16 %v2581_v11  ;;  %v2593_v18 = vld [vmem:[#allocation2 + $0xc0] sm:$0xff]  ;;  %v538_v25 = vunpack.c.l.bf16 %v2591_v17 }
  0x11   :  { %v2585_v13 = vld [vmem:[#allocation2 + $0x1d0] sm:$0xff]  ;;  %788 = vmatpush.msra.mxu2 %v478_v5  ;;  %v342_v19 = vunpack.c.l.bf16 %v2583_v12  ;;  %v2598_v22 = vld [vmem:[#allocation2 + $0x1c0] sm:$0xff]  ;;  %749 = vmatpush.msra.mxu0 %v346_v9  ;;  %v338_v26 = vunpack.c.l.bf16 %v2593_v18 }
  0x12   :  { %v2589_v16 = vld [vmem:[#allocation2 + $0x2d0] sm:$0xff]  ;;  %v406_v20 = vunpack.c.l.bf16 %v2585_v13  ;;  %v2600_v23 = vld [vmem:[#allocation2 + $0x2c0] sm:$0xff]  ;;  %769 = vmatpush.msra.mxu1 %v410_v10  ;;  %808 = vmatpush.msra.mxu3 %v542_v15  ;;  %v402_v30 = vunpack.c.l.bf16 %v2598_v22 }
  0x13   :  { %v470_v21 = vunpack.c.l.bf16 %v2589_v16  ;;  %v2602_v24 = vld [vmem:[#allocation2 + $0x3d0] sm:$0xff]  ;;  %789 = vmatpush.msra.mxu2 %v474_v14  ;;  %v466_v31 = vunpack.c.l.bf16 %v2600_v23  ;;  %v2614_v32 = vld [vmem:[#allocation2 + $0x3c0] sm:$0xff]  ;;  %750 = vmatpush.msra.mxu0 %v342_v19 }
  0x14   :  { %v2606_v27 = vld [vmem:[#allocation2 + $0xb0] sm:$0xff]  ;;  %v2616_v33 = vld [vmem:[#allocation2 + $0xa0] sm:$0xff]  ;;  %770 = vmatpush.msra.mxu1 %v406_v20  ;;  %v534_v35 = vunpack.c.l.bf16 %v2602_v24  ;;  %809 = vmatpush.msra.mxu3 %v538_v25  ;;  %v530_v41 = vunpack.c.l.bf16 %v2614_v32 }
  0x15   :  { %v2608_v28 = vld [vmem:[#allocation2 + $0x1b0] sm:$0xff]  ;;  %v2618_v34 = vld [vmem:[#allocation2 + $0x1a0] sm:$0xff]  ;;  %v334_v36 = vunpack.c.l.bf16 %v2606_v27  ;;  %790 = vmatpush.msra.mxu2 %v470_v21  ;;  %751 = vmatpush.msra.mxu0 %v338_v26  ;;  %v330_v44 = vunpack.c.l.bf16 %v2616_v33 }
  0x16   :  { %v2610_v29 = vld [vmem:[#allocation2 + $0x2b0] sm:$0xff]  ;;  %v398_v37 = vunpack.c.l.bf16 %v2608_v28  ;;  %v2623_v38 = vld [vmem:[#allocation2 + $0x2a0] sm:$0xff]  ;;  %771 = vmatpush.msra.mxu1 %v402_v30  ;;  %v394_v45 = vunpack.c.l.bf16 %v2618_v34  ;;  %810 = vmatpush.msra.mxu3 %v534_v35 }
  0x17   :  { %v2625_v39 = vld [vmem:[#allocation2 + $0x3b0] sm:$0xff]  ;;  %v462_v40 = vunpack.c.l.bf16 %v2610_v29  ;;  %v2637_v47 = vld [vmem:[#allocation2 + $0x3a0] sm:$0xff]  ;;  %791 = vmatpush.msra.mxu2 %v466_v31  ;;  %v458_v48 = vunpack.c.l.bf16 %v2623_v38  ;;  %752 = vmatpush.msra.mxu0 %v334_v36 }
  0x18   :  { %v2629_v42 = vld [vmem:[#allocation2 + $0x90] sm:$0xff]  ;;  %v526_v49 = vunpack.c.l.bf16 %v2625_v39  ;;  %v2641_v50 = vld [vmem:[#allocation2 + $0x80] sm:$0xff]  ;;  %772 = vmatpush.msra.mxu1 %v398_v37  ;;  %811 = vmatpush.msra.mxu3 %v530_v41  ;;  %v522_v57 = vunpack.c.l.bf16 %v2637_v47 }
  0x19   :  { %v2631_v43 = vld [vmem:[#allocation2 + $0x190] sm:$0xff]  ;;  %v2643_v51 = vld [vmem:[#allocation2 + $0x180] sm:$0xff]  ;;  %v326_v52 = vunpack.c.l.bf16 %v2629_v42  ;;  %792 = vmatpush.msra.mxu2 %v462_v40  ;;  %753 = vmatpush.msra.mxu0 %v330_v44  ;;  %v322_v60 = vunpack.c.l.bf16 %v2641_v50 }
  0x1a   :  { %v2635_v46 = vld [vmem:[#allocation2 + $0x290] sm:$0xff]  ;;  %v390_v53 = vunpack.c.l.bf16 %v2631_v43  ;;  %v2647_v54 = vld [vmem:[#allocation2 + $0x280] sm:$0xff]  ;;  %773 = vmatpush.msra.mxu1 %v394_v45  ;;  %v386_v61 = vunpack.c.l.bf16 %v2643_v51  ;;  %812 = vmatpush.msra.mxu3 %v526_v49 }
  0x1b   :  { %v2649_v55 = vld [vmem:[#allocation2 + $0x390] sm:$0xff]  ;;  %v454_v56 = vunpack.c.l.bf16 %v2635_v46  ;;  %v2661_v63 = vld [vmem:[#allocation2 + $0x380] sm:$0xff]  ;;  %793 = vmatpush.msra.mxu2 %v458_v48  ;;  %v450_v3 = vunpack.c.l.bf16 %v2647_v54  ;;  %754 = vmatpush.msra.mxu0 %v326_v52 }
  0x1c   :  { %v2653_v58 = vld [vmem:[#allocation2 + $0x70] sm:$0xff]  ;;  %v518_v4 = vunpack.c.l.bf16 %v2649_v55  ;;  %v2665_v5 = vld [vmem:[#allocation2 + $0x60] sm:$0xff]  ;;  %774 = vmatpush.msra.mxu1 %v390_v53  ;;  %813 = vmatpush.msra.mxu3 %v522_v57  ;;  %v514_v21 = vunpack.c.l.bf16 %v2661_v63 }
  0x1d   :  { %v2655_v59 = vld [vmem:[#allocation2 + $0x170] sm:$0xff]  ;;  %v2667_v9 = vld [vmem:[#allocation2 + $0x160] sm:$0xff]  ;;  %v318_v10 = vunpack.c.l.bf16 %v2653_v58  ;;  %794 = vmatpush.msra.mxu2 %v454_v56  ;;  %755 = vmatpush.msra.mxu0 %v322_v60  ;;  %v314_v30 = vunpack.c.l.bf16 %v2665_v5 }
  0x1e   :  { %v2659_v62 = vld [vmem:[#allocation2 + $0x270] sm:$0xff]  ;;  %4299 = vst [vmem:[#allocation11_spill] sm:$0xff] %v2667_v9  ;;  %v382_v14 = vunpack.c.l.bf16 %v2655_v59  ;;  %v2671_v15 = vld [vmem:[#allocation2 + $0x260] sm:$0xff]  ;;  %775 = vmatpush.msra.mxu1 %v386_v61  ;;  %v378_v31 = vunpack.c.l.bf16 %v2667_v9  ;;  %814 = vmatpush.msra.mxu3 %v518_v4 }
  0x1f   :  { %4300 = vst [vmem:[#allocation12_spill] sm:$0xff] %v2671_v15  ;;  %v2673_v19 = vld [vmem:[#allocation2 + $0x370] sm:$0xff]  ;;  %v446_v20 = vunpack.c.l.bf16 %v2659_v62  ;;  %v2685_v36 = vld [vmem:[#allocation2 + $0x360] sm:$0xff]  ;;  %795 = vmatpush.msra.mxu2 %v450_v3  ;;  %v442_v37 = vunpack.c.l.bf16 %v2671_v15  ;;  %756 = vmatpush.msra.mxu0 %v318_v10 }
  0x20   :  { %4301 = vst [vmem:[#allocation13_spill] sm:$0xff] %v2673_v19  ;;  %v2677_v25 = vld [vmem:[#allocation2 + $0x50] sm:$0xff]  ;;  %v510_v40 = vunpack.c.l.bf16 %v2673_v19  ;;  %v2689_v41 = vld [vmem:[#allocation2 + $0x40] sm:$0xff]  ;;  %776 = vmatpush.msra.mxu1 %v382_v14  ;;  %815 = vmatpush.msra.mxu3 %v514_v21  ;;  %v506_v56 = vunpack.c.l.bf16 %v2685_v36 }
  0x21   :  { %v2679_v26 = vld [vmem:[#allocation2 + $0x150] sm:$0xff]  ;;  %4304 = vst [vmem:[#allocation16_spill] sm:$0xff] %v2685_v36  ;;  %v2691_v44 = vld [vmem:[#allocation2 + $0x140] sm:$0xff]  ;;  %v310_v45 = vunpack.c.l.bf16 %v2677_v25  ;;  %796 = vmatpush.msra.mxu2 %v446_v20  ;;  %757 = vmatpush.msra.mxu0 %v314_v30  ;;  %v306_v61 = vunpack.c.l.bf16 %v2689_v41 }
  0x22   :  { %4302 = vst [vmem:[#allocation14_spill] sm:$0xff] %v2679_v26  ;;  %v2683_v35 = vld [vmem:[#allocation2 + $0x250] sm:$0xff]  ;;  %v374_v48 = vunpack.c.l.bf16 %v2679_v26  ;;  %v2695_v49 = vld [vmem:[#allocation2 + $0x240] sm:$0xff]  ;;  %777 = vmatpush.msra.mxu1 %v378_v31  ;;  %v370_v3 = vunpack.c.l.bf16 %v2691_v44  ;;  %816 = vmatpush.msra.mxu3 %v510_v40 }
  0x23   :  { %4303 = vst [vmem:[#allocation15_spill] sm:$0xff] %v2683_v35  ;;  %v2697_v52 = vld [vmem:[#allocation2 + $0x350] sm:$0xff]  ;;  %v438_v53 = vunpack.c.l.bf16 %v2683_v35  ;;  %v2709_v10 = vld [vmem:[#allocation2 + $0x340] sm:$0xff]  ;;  %797 = vmatpush.msra.mxu2 %v442_v37  ;;  %v434_v14 = vunpack.c.l.bf16 %v2695_v49  ;;  %758 = vmatpush.msra.mxu0 %v310_v45 }
  0x24   :  { %4305 = vst [vmem:[#allocation17_spill] sm:$0xff] %v2691_v44  ;;  %v2701_v57 = vld [vmem:[#allocation2 + $0x30] sm:$0xff]  ;;  %v502_v20 = vunpack.c.l.bf16 %v2697_v52  ;;  %v2713_v21 = vld [vmem:[#allocation2 + $0x20] sm:$0xff]  ;;  %778 = vmatpush.msra.mxu1 %v374_v48  ;;  %817 = vmatpush.msra.mxu3 %v506_v56  ;;  %v498_v40 = vunpack.c.l.bf16 %v2709_v10 }
  0x25   :  { %4306 = vst [vmem:[#allocation18_spill] sm:$0xff] %v2695_v49  ;;  %v2703_v60 = vld [vmem:[#allocation2 + $0x130] sm:$0xff]  ;;  %v2715_v35 = vld [vmem:[#allocation2 + $0x120] sm:$0xff]  ;;  %v302_v30 = vunpack.c.l.bf16 %v2701_v57  ;;  %798 = vmatpush.msra.mxu2 %v438_v53  ;;  %759 = vmatpush.msra.mxu0 %v306_v61  ;;  %v298_v45 = vunpack.c.l.bf16 %v2713_v21 }
  0x26   :  { %4307 = vst [vmem:[#allocation19_spill] sm:$0xff] %v2697_v52  ;;  %v2707_v4 = vld [vmem:[#allocation2 + $0x230] sm:$0xff]  ;;  %v366_v31 = vunpack.c.l.bf16 %v2703_v60  ;;  %v2719_v44 = vld [vmem:[#allocation2 + $0x220] sm:$0xff]  ;;  %779 = vmatpush.msra.mxu1 %v370_v3  ;;  %v362_v48 = vunpack.c.l.bf16 %v2715_v35  ;;  %818 = vmatpush.msra.mxu3 %v502_v20 }
  0x27   :  { %4308 = vst [vmem:[#allocation20_spill] sm:$0xff] %v2703_v60  ;;  %v2721_v26 = vld [vmem:[#allocation2 + $0x330] sm:$0xff]  ;;  %v430_v37 = vunpack.c.l.bf16 %v2707_v4  ;;  %v2733_v36 = vld [vmem:[#allocation2 + $0x320] sm:$0xff]  ;;  %799 = vmatpush.msra.mxu2 %v434_v14  ;;  %v426_v53 = vunpack.c.l.bf16 %v2719_v44  ;;  %760 = vmatpush.msra.mxu0 %v302_v30 }
  0x28   :  { %4309 = vst [vmem:[#allocation21_spill] sm:$0xff] %v2707_v4  ;;  %v2725_v49 = vld [vmem:[#allocation2 + $0x10] sm:$0xff]  ;;  %v494_v56 = vunpack.c.l.bf16 %v2721_v26  ;;  %v2737_v4 = vld [vmem:[#allocation2] sm:$0xff]  ;;  %780 = vmatpush.msra.mxu1 %v366_v31  ;;  %819 = vmatpush.msra.mxu3 %v498_v40  ;;  %v490_v20 = vunpack.c.l.bf16 %v2733_v36 }
  0x29   :  { %4310 = vst [vmem:[#allocation22_spill] sm:$0xff] %v2709_v10  ;;  %v2727_v52 = vld [vmem:[#allocation2 + $0x110] sm:$0xff]  ;;  %v2739_v10 = vld [vmem:[#allocation2 + $0x100] sm:$0xff]  ;;  %v294_v61 = vunpack.c.l.bf16 %v2725_v49  ;;  %800 = vmatpush.msra.mxu2 %v430_v37  ;;  %761 = vmatpush.msra.mxu0 %v298_v45  ;;  %v290_v30 = vunpack.c.l.bf16 %v2737_v4 }
  0x2a   :  { %4311 = vst [vmem:[#allocation23_spill] sm:$0xff] %v2715_v35  ;;  %v2731_v60 = vld [vmem:[#allocation2 + $0x210] sm:$0xff]  ;;  %v358_v3 = vunpack.c.l.bf16 %v2727_v52  ;;  %v2743_v35 = vld [vmem:[#allocation2 + $0x200] sm:$0xff]  ;;  %781 = vmatpush.msra.mxu1 %v362_v48  ;;  %v354_v31 = vunpack.c.l.bf16 %v2739_v10  ;;  %820 = vmatpush.msra.mxu3 %v494_v56 }
  0x2b   :  { %4312 = vst [vmem:[#allocation24_spill] sm:$0xff] %v2719_v44  ;;  %v2745_v15 = vld [vmem:[#allocation2 + $0x310] sm:$0xff]  ;;  %v422_v14 = vunpack.c.l.bf16 %v2731_v60  ;;  %v2757_v9 = vld [vmem:[#allocation2 + $0x300] sm:$0xff]  ;;  %801 = vmatpush.msra.mxu2 %v426_v53  ;;  %v418_v37 = vunpack.c.l.bf16 %v2743_v35  ;;  %762 = vmatpush.msra.mxu0 %v294_v61 }
  0x2c   :  { %4313 = vst [vmem:[#allocation25_spill] sm:$0xff] %v2721_v26  ;;  %v2749_v44 = vld [vmem:[#allocation2 + $0x4f0] sm:$0xff]  ;;  %v486_v40 = vunpack.c.l.bf16 %v2745_v15  ;;  %782 = vmatpush.msra.mxu1 %v358_v3  ;;  %821 = vmatpush.msra.mxu3 %v490_v20  ;;  %v482_v56 = vunpack.c.l.bf16 %v2757_v9  ;;  %v351_v20 = vunpack.c.h.bf16 %v2564_v0 }
  0x2d   :  { %4314 = vst [vmem:[#allocation26_spill] sm:$0xff] %v2727_v52  ;;  %v2751_v26 = vld [vmem:[#allocation2 + $0x5f0] sm:$0xff]  ;;  %v606_v45 = vunpack.c.l.bf16 %v2749_v44  ;;  %802 = vmatpush.msra.mxu2 %v422_v14  ;;  %763 = vmatpush.msra.mxu0 %v290_v30 }
  0x2e   :  { %4315 = vst [vmem:[#allocation27_spill] sm:$0xff] %v2731_v60  ;;  %v2755_v52 = vld [vmem:[#allocation2 + $0x6f0] sm:$0xff]  ;;  %v2761_v60 = vld [vmem:[#allocation2 + $0x4e0] sm:$0xff]  ;;  %v670_v48 = vunpack.c.l.bf16 %v2751_v26  ;;  %783 = vmatpush.msra.mxu1 %v354_v31  ;;  %822 = vmatpush.msra.mxu3 %v486_v40  ;;  %v347_v40 = vunpack.c.h.bf16 %v2573_v6 }
  0x2f   :  { %4316 = vst [vmem:[#allocation28_spill] sm:$0xff] %v2733_v36  ;;  %v2763_v36 = vld [vmem:[#allocation2 + $0x5e0] sm:$0xff]  ;;  %v734_v53 = vunpack.c.l.bf16 %v2755_v52  ;;  %v602_v61 = vunpack.c.l.bf16 %v2761_v60  ;;  %v2777_v19 = vld [vmem:[#allocation2 + $0x6d0] sm:$0xff]  ;;  %803 = vmatpush.msra.mxu2 %v418_v37  ;;  %828 = vmatpush.msrb.mxu0 %v606_v45 }
  0x30   :  { %4317 = vst [vmem:[#allocation29_spill] sm:$0xff] %v2739_v10  ;;  %v2767_v10 = vld [vmem:[#allocation2 + $0x6e0] sm:$0xff]  ;;  %v666_v3 = vunpack.c.l.bf16 %v2763_v36  ;;  %848 = vmatpush.msrb.mxu1 %v670_v48  ;;  %823 = vmatpush.msra.mxu3 %v482_v56  ;;  %v726_v37 = vunpack.c.l.bf16 %v2777_v19  ;;  %v2793_v0 = vld [vmem:[#allocation2 + $0x5b0] sm:$0xff]  ;;  %v343_v56 = vunpack.c.h.bf16 %v2583_v12 }
  0x31   :  { %4318 = vst [vmem:[#allocation30_spill] sm:$0xff] %v2743_v35  ;;  %v2771_v35 = vld [vmem:[#allocation2 + $0x4d0] sm:$0xff]  ;;  %v730_v14 = vunpack.c.l.bf16 %v2767_v10  ;;  %868 = vmatpush.msrb.mxu2 %v734_v53  ;;  %829 = vmatpush.msrb.mxu0 %v602_v61  ;;  %v2803_v6 = vld [vmem:[#allocation2 + $0x5a0] sm:$0xff] }
  0x32   :  { %4319 = vst [vmem:[#allocation31_spill] sm:$0xff] %v2745_v15  ;;  %v2773_v15 = vld [vmem:[#allocation2 + $0x5d0] sm:$0xff]  ;;  %v598_v30 = vunpack.c.l.bf16 %v2771_v35  ;;  %849 = vmatpush.msrb.mxu1 %v666_v3  ;;  %888 = vmatpush.msrb.mxu3 %v351_v20  ;;  %v654_v3 = vunpack.c.l.bf16 %v2793_v0  ;;  %v339_v20 = vunpack.c.h.bf16 %v2593_v18  ;;  %v2823_v18 = vld [vmem:[#allocation2 + $0x580] sm:$0xff] }
  0x33   :  { %4320 = vst [vmem:[#allocation32_spill] sm:$0xff] %v2751_v26  ;;  %v2783_v26 = vld [vmem:[#allocation2 + $0x5c0] sm:$0xff]  ;;  %v662_v31 = vunpack.c.l.bf16 %v2773_v15  ;;  %869 = vmatpush.msrb.mxu2 %v730_v14  ;;  %v2813_v12 = vld [vmem:[#allocation2 + $0x590] sm:$0xff] }
  0x34   :  { %4321 = vst [vmem:[#allocation33_spill] sm:$0xff] %v2755_v52  ;;  %v2781_v52 = vld [vmem:[#allocation2 + $0x4c0] sm:$0xff]  ;;  %v658_v48 = vunpack.c.l.bf16 %v2783_v26  ;;  %830 = vmatpush.msrb.mxu0 %v598_v30  ;;  %889 = vmatpush.msrb.mxu3 %v347_v40  ;;  %v335_v40 = vunpack.c.h.bf16 %v2606_v27  ;;  %v2833_v27 = vld [vmem:[#allocation2 + $0x570] sm:$0xff] }
  0x35   :  { %4322 = vst [vmem:[#allocation34_spill] sm:$0xff] %v2757_v9  ;;  %v2787_v9 = vld [vmem:[#allocation2 + $0x6c0] sm:$0xff]  ;;  %v594_v45 = vunpack.c.l.bf16 %v2781_v52  ;;  %850 = vmatpush.msrb.mxu1 %v662_v31  ;;  %870 = vmatpush.msrb.mxu2 %v726_v37  ;;  %v650_v31 = vunpack.c.l.bf16 %v2803_v6 }
  0x36   :  { %4323 = vst [vmem:[#allocation35_spill] sm:$0xff] %v2763_v36  ;;  %v2797_v36 = vld [vmem:[#allocation2 + $0x6b0] sm:$0xff]  ;;  %v722_v53 = vunpack.c.l.bf16 %v2787_v9  ;;  %890 = vmatpush.msrb.mxu3 %v343_v56  ;;  %v331_v56 = vunpack.c.h.bf16 %v2616_v33  ;;  %v2843_v33 = vld [vmem:[#allocation2 + $0x560] sm:$0xff] }
  0x37   :  { %4324 = vst [vmem:[#allocation36_spill] sm:$0xff] %v2767_v10  ;;  %v2791_v10 = vld [vmem:[#allocation2 + $0x4b0] sm:$0xff]  ;;  %v718_v14 = vunpack.c.l.bf16 %v2797_v36  ;;  %831 = vmatpush.msrb.mxu0 %v594_v45  ;;  %851 = vmatpush.msrb.mxu1 %v658_v48  ;;  %v646_v48 = vunpack.c.l.bf16 %v2813_v12 }
  0x38   :  { %4325 = vst [vmem:[#allocation37_spill] sm:$0xff] %v2773_v15  ;;  %v590_v61 = vunpack.c.l.bf16 %v2791_v10  ;;  %v2807_v15 = vld [vmem:[#allocation2 + $0x6a0] sm:$0xff]  ;;  %871 = vmatpush.msrb.mxu2 %v722_v53  ;;  %891 = vmatpush.msrb.mxu3 %v339_v20  ;;  %v327_v20 = vunpack.c.h.bf16 %v2629_v42  ;;  %v2853_v42 = vld [vmem:[#allocation2 + $0x550] sm:$0xff] }
  0x39   :  { %4326 = vst [vmem:[#allocation38_spill] sm:$0xff] %v2777_v19  ;;  %v2801_v19 = vld [vmem:[#allocation2 + $0x4a0] sm:$0xff]  ;;  %v714_v37 = vunpack.c.l.bf16 %v2807_v15  ;;  %852 = vmatpush.msrb.mxu1 %v654_v3  ;;  %v642_v3 = vunpack.c.l.bf16 %v2823_v18 }
  0x3a   :  { %4327 = vst [vmem:[#allocation39_spill] sm:$0xff] %v2783_v26  ;;  %v586_v30 = vunpack.c.l.bf16 %v2801_v19  ;;  %v2817_v26 = vld [vmem:[#allocation2 + $0x690] sm:$0xff]  ;;  %832 = vmatpush.msrb.mxu0 %v590_v61  ;;  %872 = vmatpush.msrb.mxu2 %v718_v14 }
  0x3b   :  { %4328 = vst [vmem:[#allocation40_spill] sm:$0xff] %v2787_v9  ;;  %v2811_v9 = vld [vmem:[#allocation2 + $0x490] sm:$0xff]  ;;  %v710_v53 = vunpack.c.l.bf16 %v2817_v26  ;;  %853 = vmatpush.msrb.mxu1 %v650_v31  ;;  %892 = vmatpush.msrb.mxu3 %v335_v40  ;;  %v638_v31 = vunpack.c.l.bf16 %v2833_v27  ;;  %v323_v40 = vunpack.c.h.bf16 %v2641_v50  ;;  %v2863_v50 = vld [vmem:[#allocation2 + $0x540] sm:$0xff] }
  0x3c   :  { %4329 = vst [vmem:[#allocation41_spill] sm:$0xff] %v2793_v0  ;;  %v582_v45 = vunpack.c.l.bf16 %v2811_v9  ;;  %v2827_v0 = vld [vmem:[#allocation2 + $0x680] sm:$0xff]  ;;  %833 = vmatpush.msrb.mxu0 %v586_v30  ;;  %873 = vmatpush.msrb.mxu2 %v714_v37 }
  0x3d   :  { %4330 = vst [vmem:[#allocation42_spill] sm:$0xff] %v2797_v36  ;;  %v2821_v36 = vld [vmem:[#allocation2 + $0x480] sm:$0xff]  ;;  %v706_v14 = vunpack.c.l.bf16 %v2827_v0  ;;  %854 = vmatpush.msrb.mxu1 %v646_v48  ;;  %893 = vmatpush.msrb.mxu3 %v331_v56  ;;  %v634_v48 = vunpack.c.l.bf16 %v2843_v33  ;;  %v319_v56 = vunpack.c.h.bf16 %v2653_v58  ;;  %v2873_v58 = vld [vmem:[#allocation2 + $0x530] sm:$0xff] }
  0x3e   :  { %4331 = vst [vmem:[#allocation43_spill] sm:$0xff] %v2803_v6  ;;  %v578_v61 = vunpack.c.l.bf16 %v2821_v36  ;;  %v2837_v6 = vld [vmem:[#allocation2 + $0x670] sm:$0xff]  ;;  %834 = vmatpush.msrb.mxu0 %v582_v45  ;;  %874 = vmatpush.msrb.mxu2 %v710_v53 }
  0x3f   :  { %4332 = vst [vmem:[#allocation44_spill] sm:$0xff] %v2807_v15  ;;  %v2831_v15 = vld [vmem:[#allocation2 + $0x470] sm:$0xff]  ;;  %v702_v37 = vunpack.c.l.bf16 %v2837_v6  ;;  %855 = vmatpush.msrb.mxu1 %v642_v3  ;;  %894 = vmatpush.msrb.mxu3 %v327_v20  ;;  %v630_v3 = vunpack.c.l.bf16 %v2853_v42  ;;  %v315_v20 = vunpack.c.h.bf16 %v2665_v5  ;;  %v2883_v5 = vld [vmem:[#allocation2 + $0x520] sm:$0xff] }
  0x40   :  { %4333 = vst [vmem:[#allocation45_spill] sm:$0xff] %v2813_v12  ;;  %v574_v30 = vunpack.c.l.bf16 %v2831_v15  ;;  %v2847_v12 = vld [vmem:[#allocation2 + $0x660] sm:$0xff]  ;;  %835 = vmatpush.msrb.mxu0 %v578_v61  ;;  %875 = vmatpush.msrb.mxu2 %v706_v14 }
  0x41   :  { %4334 = vst [vmem:[#allocation46_spill] sm:$0xff] %v2817_v26  ;;  %v2841_v26 = vld [vmem:[#allocation2 + $0x460] sm:$0xff]  ;;  %v698_v53 = vunpack.c.l.bf16 %v2847_v12  ;;  %856 = vmatpush.msrb.mxu1 %v638_v31  ;;  %895 = vmatpush.msrb.mxu3 %v323_v40  ;;  %v626_v31 = vunpack.c.l.bf16 %v2863_v50  ;;  %v311_v40 = vunpack.c.h.bf16 %v2677_v25  ;;  %v2893_v25 = vld [vmem:[#allocation2 + $0x510] sm:$0xff] }
  0x42   :  { %4335 = vst [vmem:[#allocation47_spill] sm:$0xff] %v2823_v18  ;;  %v570_v45 = vunpack.c.l.bf16 %v2841_v26  ;;  %v2857_v18 = vld [vmem:[#allocation2 + $0x650] sm:$0xff]  ;;  %836 = vmatpush.msrb.mxu0 %v574_v30  ;;  %876 = vmatpush.msrb.mxu2 %v702_v37 }
  0x43   :  { %4336 = vst [vmem:[#allocation48_spill] sm:$0xff] %v2827_v0  ;;  %v2851_v0 = vld [vmem:[#allocation2 + $0x450] sm:$0xff]  ;;  %v694_v14 = vunpack.c.l.bf16 %v2857_v18  ;;  %857 = vmatpush.msrb.mxu1 %v634_v48  ;;  %896 = vmatpush.msrb.mxu3 %v319_v56  ;;  %v622_v48 = vunpack.c.l.bf16 %v2873_v58  ;;  %v307_v56 = vunpack.c.h.bf16 %v2689_v41  ;;  %v2903_v41 = vld [vmem:[#allocation2 + $0x500] sm:$0xff] }
  0x44   :  { %4337 = vst [vmem:[#allocation49_spill] sm:$0xff] %v2833_v27  ;;  %v566_v61 = vunpack.c.l.bf16 %v2851_v0  ;;  %v2867_v27 = vld [vmem:[#allocation2 + $0x640] sm:$0xff]  ;;  %837 = vmatpush.msrb.mxu0 %v570_v45  ;;  %877 = vmatpush.msrb.mxu2 %v698_v53 }
  0x45   :  { %4338 = vst [vmem:[#allocation50_spill] sm:$0xff] %v2837_v6  ;;  %v2861_v6 = vld [vmem:[#allocation2 + $0x440] sm:$0xff]  ;;  %v690_v37 = vunpack.c.l.bf16 %v2867_v27  ;;  %858 = vmatpush.msrb.mxu1 %v630_v3  ;;  %897 = vmatpush.msrb.mxu3 %v315_v20  ;;  %v618_v3 = vunpack.c.l.bf16 %v2883_v5  ;;  %v303_v20 = vunpack.c.h.bf16 %v2701_v57 }
  0x46   :  { %4339 = vst [vmem:[#allocation51_spill] sm:$0xff] %v2843_v33  ;;  %v562_v30 = vunpack.c.l.bf16 %v2861_v6  ;;  %v2877_v33 = vld [vmem:[#allocation2 + $0x630] sm:$0xff]  ;;  %838 = vmatpush.msrb.mxu0 %v566_v61  ;;  %878 = vmatpush.msrb.mxu2 %v694_v14 }
  0x47   :  { %4340 = vst [vmem:[#allocation52_spill] sm:$0xff] %v2847_v12  ;;  %v2871_v12 = vld [vmem:[#allocation2 + $0x430] sm:$0xff]  ;;  %v686_v53 = vunpack.c.l.bf16 %v2877_v33  ;;  %859 = vmatpush.msrb.mxu1 %v626_v31  ;;  %898 = vmatpush.msrb.mxu3 %v311_v40  ;;  %v614_v31 = vunpack.c.l.bf16 %v2893_v25  ;;  %v299_v40 = vunpack.c.h.bf16 %v2713_v21  ;;  %v2919_v21 = vld [vmem:[%s4192_s0] sm:$0xff] }
  0x48   :  { %4341 = vst [vmem:[#allocation53_spill] sm:$0xff] %v2853_v42  ;;  %v558_v45 = vunpack.c.l.bf16 %v2871_v12  ;;  %v2887_v42 = vld [vmem:[#allocation2 + $0x620] sm:$0xff]  ;;  %839 = vmatpush.msrb.mxu0 %v562_v30  ;;  %879 = vmatpush.msrb.mxu2 %v690_v37 }
  0x49   :  { %4342 = vst [vmem:[#allocation54_spill] sm:$0xff] %v2857_v18  ;;  %v2881_v18 = vld [vmem:[#allocation2 + $0x420] sm:$0xff]  ;;  %v682_v14 = vunpack.c.l.bf16 %v2887_v42  ;;  %860 = vmatpush.msrb.mxu1 %v622_v48  ;;  %899 = vmatpush.msrb.mxu3 %v307_v56  ;;  %v295_v48 = vunpack.c.h.bf16 %v2725_v49  ;;  %v2924_v56 = vld [vmem:[%s4192_s0 + $0x8] sm:$0xff]  ;;  %v543_v49 = vunpack.c.h.bf16 %v2581_v11  ;;  %v607_v11 = vunpack.c.h.bf16 %v2749_v44 }
  0x4a   :  { %4343 = vst [vmem:[#allocation55_spill] sm:$0xff] %v2863_v50  ;;  %v554_v61 = vunpack.c.l.bf16 %v2881_v18  ;;  %v2897_v50 = vld [vmem:[#allocation2 + $0x610] sm:$0xff]  ;;  %840 = vmatpush.msrb.mxu0 %v558_v45  ;;  %880 = vmatpush.msrb.mxu2 %v686_v53  ;;  %v415_v53 = vunpack.c.h.bf16 %v2566_v1  ;;  %v403_v44 = vunpack.c.h.bf16 %v2598_v22 }
  0x4b   :  { %4344 = vst [vmem:[#allocation56_spill] sm:$0xff] %v2867_v27  ;;  %v2891_v27 = vld [vmem:[#allocation2 + $0x410] sm:$0xff]  ;;  %v678_v37 = vunpack.c.l.bf16 %v2897_v50  ;;  %861 = vmatpush.msrb.mxu1 %v618_v3  ;;  %900 = vmatpush.msrb.mxu3 %v303_v20  ;;  %v411_v3 = vunpack.c.h.bf16 %v2575_v7  ;;  %v475_v20 = vunpack.c.h.bf16 %v2577_v8  ;;  %v2944_v7 = vld [vmem:[%s4192_s0 + $0x18] sm:$0xff]  ;;  %v471_v8 = vunpack.c.h.bf16 %v2589_v16 }
  0x4c   :  { %4345 = vst [vmem:[#allocation57_spill] sm:$0xff] %v2873_v58  ;;  %v550_v30 = vunpack.c.l.bf16 %v2891_v27  ;;  %v2907_v58 = vld [vmem:[#allocation2 + $0x600] sm:$0xff]  ;;  %841 = vmatpush.msrb.mxu0 %v554_v61  ;;  %881 = vmatpush.msrb.mxu2 %v682_v14  ;;  %v479_v61 = vunpack.c.h.bf16 %v2568_v2  ;;  %v2931_v1 = vld [vmem:[%s4192_s0 + $0x10] sm:$0xff]  ;;  %v291_v14 = vunpack.c.h.bf16 %v2737_v4  ;;  %v539_v2 = vunpack.c.h.bf16 %v2591_v17 }
  0x4d   :  { %4346 = vst [vmem:[#allocation58_spill] sm:$0xff] %v2877_v33  ;;  %v2901_v33 = vld [vmem:[#allocation2 + $0x400] sm:$0xff]  ;;  %v674_v45 = vunpack.c.l.bf16 %v2907_v58  ;;  %862 = vmatpush.msrb.mxu1 %v614_v31  ;;  %901 = vmatpush.msrb.mxu3 %v299_v40  ;;  %v407_v4 = vunpack.c.h.bf16 %v2585_v13  ;;  %v603_v17 = vunpack.c.h.bf16 %v2761_v60  ;;  %v531_v31 = vunpack.c.h.bf16 %v2614_v32  ;;  %v2961_v22 = vld [vmem:[%s4192_s0 + $0x30] sm:$0xff] }
  0x4e   :  { %4347 = vst [vmem:[#allocation59_spill] sm:$0xff] %v2887_v42  ;;  %v546_v57 = vunpack.c.l.bf16 %v2901_v33  ;;  %v610_v42 = vunpack.c.l.bf16 %v2903_v41  ;;  %842 = vmatpush.msrb.mxu0 %v550_v30  ;;  %882 = vmatpush.msrb.mxu2 %v678_v37  ;;  %v467_v30 = vunpack.c.h.bf16 %v2600_v23  ;;  %v599_v13 = vunpack.c.h.bf16 %v2771_v35 }
  0x4f   :  { %902 = vmatpush.msrb.mxu3 %v295_v48  ;;  %764 = vmatmul.f32.vlgmr.msra.gmra.mxu0 %v2919_v21  ;;  %v399_v16 = vunpack.c.h.bf16 %v2608_v28  ;;  %v527_v60 = vunpack.c.h.bf16 %v2625_v39  ;;  %v595_v23 = vunpack.c.h.bf16 %v2781_v52  ;;  %v395_v32 = vunpack.c.h.bf16 %v2618_v34 }
  0x50   :  { %843 = vmatpush.msrb.mxu0 %v546_v57  ;;  %863 = vmatpush.msrb.mxu1 %v610_v42  ;;  %v535_v42 = vunpack.c.h.bf16 %v2602_v24  ;;  %v463_v24 = vunpack.c.h.bf16 %v2610_v29  ;;  %v459_v28 = vunpack.c.h.bf16 %v2623_v38  ;;  %v2969_v29 = vld [vmem:[%s4192_s0 + $0x20] sm:$0xff]  ;;  %v523_v39 = vunpack.c.h.bf16 %v2637_v47  ;;  %v2981_v47 = vld [vmem:[%s4192_s0 + $0x28] sm:$0xff] }
  0x51   :  { %883 = vmatpush.msrb.mxu2 %v674_v45  ;;  %784 = vmatmul.f32.vlgmr.msra.gmra.mxu1 %v2924_v56  ;;  %v591_v35 = vunpack.c.h.bf16 %v2791_v10  ;;  %v391_v52 = vunpack.c.h.bf16 %v2631_v43  ;;  %v455_v34 = vunpack.c.h.bf16 %v2635_v46  ;;  %v519_v38 = vunpack.c.h.bf16 %v2649_v55 }
  0x52   :  { %804 = vmatmul.f32.vlgmr.msra.gmra.mxu2 %v2931_v1  ;;  %908 = vmatpush.msra.mxu0 %v415_v53  ;;  %v387_v10 = vunpack.c.h.bf16 %v2643_v51  ;;  %v587_v37 = vunpack.c.h.bf16 %v2801_v19  ;;  %v451_v43 = vunpack.c.h.bf16 %v2647_v54  ;;  %v515_v46 = vunpack.c.h.bf16 %v2661_v63  ;;  %v4348_v51 = vld [vmem:[#allocation13_spill] sm:$0xff]  ;;  %v4349_v19 = vld [vmem:[#allocation11_spill] sm:$0xff]  ;;  %v4350_v63 = vld [vmem:[#allocation12_spill] sm:$0xff] }
  0x53   :  { %928 = vmatpush.msra.mxu1 %v479_v61  ;;  %948 = vmatpush.msra.mxu2 %v543_v49  ;;  %v383_v55 = vunpack.c.h.bf16 %v2655_v59  ;;  %v583_v40 = vunpack.c.h.bf16 %v2811_v9  ;;  %v447_v57 = vunpack.c.h.bf16 %v2659_v62  ;;  %v511_v45 = vunpack.c.h.bf16 %v4348_v51  ;;  %v4351_v59 = vld [vmem:[#allocation16_spill] sm:$0xff]  ;;  %v4352_v9 = vld [vmem:[#allocation14_spill] sm:$0xff] }
  0x54   :  { %903 = vmatpush.msrb.mxu3 %v291_v14  ;;  %909 = vmatpush.msra.mxu0 %v411_v3  ;;  %v379_v48 = vunpack.c.h.bf16 %v4349_v19  ;;  %v579_v54 = vunpack.c.h.bf16 %v2821_v36  ;;  %v443_v53 = vunpack.c.h.bf16 %v4350_v63  ;;  %v507_v61 = vunpack.c.h.bf16 %v4351_v59  ;;  %v4353_v3 = vld [vmem:[#allocation15_spill] sm:$0xff]  ;;  %v4355_v36 = vld [vmem:[#allocation17_spill] sm:$0xff]  ;;  %v4368_v51 = vld [vmem:[#allocation30_spill] sm:$0xff] }
  0x55   :  { %824 = vmatmul.f32.vlgmr.msra.gmra.mxu3 %v2944_v7  ;;  %929 = vmatpush.msra.mxu1 %v475_v20  ;;  %v375_v49 = vunpack.c.h.bf16 %v4352_v9  ;;  %v575_v62 = vunpack.c.h.bf16 %v2831_v15  ;;  %v439_v14 = vunpack.c.h.bf16 %v4353_v3  ;;  %v4354_v20 = vld [vmem:[#allocation19_spill] sm:$0xff]  ;;  %v4358_v15 = vld [vmem:[#allocation20_spill] sm:$0xff]  ;;  %v4369_v19 = vld [vmem:[#allocation34_spill] sm:$0xff]  ;;  %v551_v63 = vunpack.c.h.bf16 %v2891_v27 }
  0x56   :  { %949 = vmatpush.msra.mxu2 %v539_v2  ;;  %968 = vmatpush.msra.mxu3 %v607_v11  ;;  %v503_v2 = vunpack.c.h.bf16 %v4354_v20  ;;  %v371_v11 = vunpack.c.h.bf16 %v4355_v36  ;;  %v3028_v9 = vld [vmem:[#allocation2 + $0x1f8] sm:$0xff]  ;;  %v547_v3 = vunpack.c.h.bf16 %v2901_v33 }
  0x57   :  { %910 = vmatpush.msra.mxu0 %v407_v4  ;;  %930 = vmatpush.msra.mxu1 %v471_v8  ;;  %v571_v4 = vunpack.c.h.bf16 %v2841_v26  ;;  %v4356_v8 = vld [vmem:[#allocation18_spill] sm:$0xff]  ;;  %v4361_v26 = vld [vmem:[#allocation23_spill] sm:$0xff]  ;;  %v3033_v20 = vld [vmem:[#allocation2 + $0xd8] sm:$0xff] }
  0x58   :  { %950 = vmatpush.msra.mxu2 %v535_v42  ;;  %969 = vmatpush.msra.mxu3 %v603_v17  ;;  %v435_v42 = vunpack.c.h.bf16 %v4356_v8  ;;  %v4357_v17 = vld [vmem:[#allocation22_spill] sm:$0xff] }
  0x59   :  { %911 = vmatpush.msra.mxu0 %v403_v44  ;;  %931 = vmatpush.msra.mxu1 %v467_v30  ;;  %v499_v44 = vunpack.c.h.bf16 %v4357_v17  ;;  %v367_v30 = vunpack.c.h.bf16 %v4358_v15  ;;  %v3041_v17 = vld [vmem:[#allocation2 + $0xc8] sm:$0xff]  ;;  %v344_v15 = vunpack.c.l.bf16 %v3033_v20 }
  0x5a   :  { %951 = vmatpush.msra.mxu2 %v531_v31  ;;  %970 = vmatpush.msra.mxu3 %v599_v13  ;;  %v567_v31 = vunpack.c.h.bf16 %v2851_v0  ;;  %v4359_v13 = vld [vmem:[#allocation21_spill] sm:$0xff]  ;;  %v4364_v0 = vld [vmem:[#allocation26_spill] sm:$0xff] }
  0x5b   :  { %884 = vmatmul.f32.vlgmr.msrb.gmra.mxu2 %v2961_v22  ;;  %912 = vmatpush.msra.mxu0 %v399_v16  ;;  %v431_v16 = vunpack.c.h.bf16 %v4359_v13 }
  0x5c   :  { %932 = vmatpush.msra.mxu1 %v463_v24  ;;  %952 = vmatpush.msra.mxu2 %v527_v60  ;;  %v4360_v24 = vld [vmem:[#allocation25_spill] sm:$0xff] }
  0x5d   :  { %971 = vmatpush.msra.mxu3 %v595_v23  ;;  %844 = vmatmul.f32.vlgmr.msrb.gmra.mxu0 %v2969_v29  ;;  %v495_v60 = vunpack.c.h.bf16 %v4360_v24  ;;  %v363_v23 = vunpack.c.h.bf16 %v4361_v26  ;;  %v340_v26 = vunpack.c.l.bf16 %v3041_v17 }
  0x5e   :  { %913 = vmatpush.msra.mxu0 %v395_v32  ;;  %933 = vmatpush.msra.mxu1 %v459_v28  ;;  %v563_v32 = vunpack.c.h.bf16 %v2861_v6  ;;  %v4362_v28 = vld [vmem:[#allocation24_spill] sm:$0xff]  ;;  %v4367_v6 = vld [vmem:[#allocation29_spill] sm:$0xff] }
  0x5f   :  { %953 = vmatpush.msra.mxu2 %v523_v39  ;;  %972 = vmatpush.msra.mxu3 %v591_v35  ;;  %v427_v39 = vunpack.c.h.bf16 %v4362_v28  ;;  %v4363_v35 = vld [vmem:[#allocation28_spill] sm:$0xff]  ;;  %v4378_v28 = vld [vmem:[#allocation41_spill] sm:$0xff] }
  0x60   :  { %864 = vmatmul.f32.vlgmr.msrb.gmra.mxu1 %v2981_v47  ;;  %914 = vmatpush.msra.mxu0 %v391_v52  ;;  %v491_v52 = vunpack.c.h.bf16 %v4363_v35  ;;  %v4379_v35 = vld [vmem:[#allocation42_spill] sm:$0xff] }
  0x61   :  { %934 = vmatpush.msra.mxu1 %v455_v34  ;;  %954 = vmatpush.msra.mxu2 %v519_v38  ;;  %v359_v34 = vunpack.c.h.bf16 %v4364_v0  ;;  %v559_v38 = vunpack.c.h.bf16 %v2871_v12  ;;  %v483_v12 = vunpack.c.h.bf16 %v4369_v19  ;;  %v3059_v0 = vld [vmem:[#allocation2 + $0xa8] sm:$0xff] }
  0x62   :  { %973 = vmatpush.msra.mxu3 %v587_v37  ;;  %915 = vmatpush.msra.mxu0 %v387_v10  ;;  %v4365_v10 = vld [vmem:[#allocation27_spill] sm:$0xff] }
  0x63   :  { %935 = vmatpush.msra.mxu1 %v451_v43  ;;  %955 = vmatpush.msra.mxu2 %v515_v46  ;;  %v423_v37 = vunpack.c.h.bf16 %v4365_v10  ;;  %v4366_v43 = vld [vmem:[#allocation31_spill] sm:$0xff] }
  0x64   :  { %974 = vmatpush.msra.mxu3 %v583_v40  ;;  %916 = vmatpush.msra.mxu0 %v383_v55  ;;  %v487_v46 = vunpack.c.h.bf16 %v4366_v43  ;;  %v355_v55 = vunpack.c.h.bf16 %v4367_v6  ;;  %v555_v40 = vunpack.c.h.bf16 %v2881_v18  ;;  %v4380_v10 = vld [vmem:[#allocation43_spill] sm:$0xff]  ;;  %v4381_v43 = vld [vmem:[#allocation44_spill] sm:$0xff]  ;;  %v332_v6 = vunpack.c.l.bf16 %v3059_v0 }
  0x65   :  { %936 = vmatpush.msra.mxu1 %v447_v57  ;;  %956 = vmatpush.msra.mxu2 %v511_v45  ;;  %v3018_v57 = vld [vmem:[#allocation2 + $0xf8] sm:$0xff]  ;;  %v419_v45 = vunpack.c.h.bf16 %v4368_v51 }
  0x66   :  { %975 = vmatpush.msra.mxu3 %v579_v54  ;;  %917 = vmatpush.msra.mxu0 %v379_v48  ;;  %v4370_v48 = vld [vmem:[#allocation32_spill] sm:$0xff]  ;;  %v352_v18 = vunpack.c.l.bf16 %v3018_v57 }
  0x67   :  { %937 = vmatpush.msra.mxu1 %v443_v53  ;;  %957 = vmatpush.msra.mxu2 %v507_v61  ;;  %v671_v54 = vunpack.c.h.bf16 %v4370_v48  ;;  %v4371_v53 = vld [vmem:[#allocation33_spill] sm:$0xff]  ;;  %v3026_v61 = vld [vmem:[#allocation2 + $0xe8] sm:$0xff] }
  0x68   :  { %976 = vmatpush.msra.mxu3 %v575_v62  ;;  %918 = vmatpush.msra.mxu0 %v375_v49  ;;  %v735_v59 = vunpack.c.h.bf16 %v4371_v53  ;;  %v4372_v49 = vld [vmem:[#allocation35_spill] sm:$0xff]  ;;  %v348_v36 = vunpack.c.l.bf16 %v3026_v61 }
  0x69   :  { %938 = vmatpush.msra.mxu1 %v439_v14  ;;  %958 = vmatpush.msra.mxu2 %v503_v2  ;;  %v667_v62 = vunpack.c.h.bf16 %v4372_v49  ;;  %v4373_v14 = vld [vmem:[#allocation36_spill] sm:$0xff]  ;;  %v3035_v2 = vld [vmem:[#allocation2 + $0x1e8] sm:$0xff] }
  0x6a   :  { %977 = vmatpush.msra.mxu3 %v571_v4  ;;  %919 = vmatpush.msra.mxu0 %v371_v11  ;;  %v731_v27 = vunpack.c.h.bf16 %v4373_v14  ;;  %v416_v11 = vunpack.c.l.bf16 %v3028_v9  ;;  %v4374_v4 = vld [vmem:[#allocation37_spill] sm:$0xff]  ;;  %v4385_v49 = vld [vmem:[#allocation48_spill] sm:$0xff] }
  0x6b   :  { %939 = vmatpush.msra.mxu1 %v435_v42  ;;  %959 = vmatpush.msra.mxu2 %v499_v44  ;;  %v663_v8 = vunpack.c.h.bf16 %v4374_v4  ;;  %v4375_v42 = vld [vmem:[#allocation38_spill] sm:$0xff]  ;;  %v3043_v44 = vld [vmem:[#allocation2 + $0x1d8] sm:$0xff] }
  0x6c   :  { %978 = vmatpush.msra.mxu3 %v567_v31  ;;  %920 = vmatpush.msra.mxu0 %v367_v30  ;;  %v727_v33 = vunpack.c.h.bf16 %v4375_v42  ;;  %v412_v30 = vunpack.c.l.bf16 %v3035_v2  ;;  %v4376_v31 = vld [vmem:[#allocation39_spill] sm:$0xff]  ;;  %v4387_v4 = vld [vmem:[#allocation50_spill] sm:$0xff] }
  0x6d   :  { %940 = vmatpush.msra.mxu1 %v431_v16  ;;  %960 = vmatpush.msra.mxu2 %v495_v60  ;;  %v659_v13 = vunpack.c.h.bf16 %v4376_v31  ;;  %v4377_v16 = vld [vmem:[#allocation40_spill] sm:$0xff]  ;;  %v3050_v60 = vld [vmem:[#allocation2 + $0xb8] sm:$0xff]  ;;  %v3094_v42 = vld [vmem:[#allocation2 + $0x68] sm:$0xff] }
  0x6e   :  { %979 = vmatpush.msra.mxu3 %v563_v32  ;;  %921 = vmatpush.msra.mxu0 %v363_v23  ;;  %v723_v24 = vunpack.c.h.bf16 %v4377_v16  ;;  %v408_v23 = vunpack.c.l.bf16 %v3043_v44  ;;  %v3054_v32 = vld [vmem:[#allocation2 + $0x1c8] sm:$0xff] }
  0x6f   :  { %941 = vmatpush.msra.mxu1 %v427_v39  ;;  %961 = vmatpush.msra.mxu2 %v491_v52  ;;  %v655_v39 = vunpack.c.h.bf16 %v4378_v28  ;;  %v719_v52 = vunpack.c.h.bf16 %v4379_v35 }
  0x70   :  { %980 = vmatpush.msra.mxu3 %v559_v38  ;;  %922 = vmatpush.msra.mxu0 %v359_v34  ;;  %v404_v34 = vunpack.c.l.bf16 %v3054_v32  ;;  %v3062_v38 = vld [vmem:[#allocation2 + $0x1b8] sm:$0xff] }
  0x71   :  { %942 = vmatpush.msra.mxu1 %v423_v37  ;;  %962 = vmatpush.msra.mxu2 %v487_v46  ;;  %v651_v37 = vunpack.c.h.bf16 %v4380_v10  ;;  %v715_v46 = vunpack.c.h.bf16 %v4381_v43  ;;  %v400_v51 = vunpack.c.l.bf16 %v3062_v38  ;;  %v3112_v10 = vld [vmem:[#allocation2 + $0x158] sm:$0xff] }
  0x72   :  { %981 = vmatpush.msra.mxu3 %v555_v40  ;;  %923 = vmatpush.msra.mxu0 %v355_v55  ;;  %v3068_v55 = vld [vmem:[#allocation2 + $0x98] sm:$0xff]  ;;  %v3070_v40 = vld [vmem:[#allocation2 + $0x1a8] sm:$0xff] }
  0x73   :  { %943 = vmatpush.msra.mxu1 %v419_v45  ;;  %963 = vmatpush.msra.mxu2 %v483_v12  ;;  %v4382_v45 = vld [vmem:[#allocation45_spill] sm:$0xff]  ;;  %v4383_v12 = vld [vmem:[#allocation46_spill] sm:$0xff]  ;;  %v396_v53 = vunpack.c.l.bf16 %v3070_v40 }
  0x74   :  { %982 = vmatpush.msra.mxu3 %v551_v63  ;;  %988 = vmatpush.msrb.mxu0 %v671_v54  ;;  %v647_v19 = vunpack.c.h.bf16 %v4382_v45  ;;  %v711_v48 = vunpack.c.h.bf16 %v4383_v12  ;;  %v3076_v54 = vld [vmem:[#allocation2 + $0x88] sm:$0xff]  ;;  %v328_v63 = vunpack.c.l.bf16 %v3068_v55 }
  0x75   :  { %1008 = vmatpush.msrb.mxu1 %v735_v59  ;;  %1028 = vmatpush.msrb.mxu2 %v352_v18  ;;  %v4384_v59 = vld [vmem:[#allocation47_spill] sm:$0xff]  ;;  %v324_v14 = vunpack.c.l.bf16 %v3076_v54 }
  0x76   :  { %983 = vmatpush.msra.mxu3 %v547_v3  ;;  %989 = vmatpush.msrb.mxu0 %v667_v62  ;;  %v643_v18 = vunpack.c.h.bf16 %v4384_v59  ;;  %v707_v62 = vunpack.c.h.bf16 %v4385_v49  ;;  %v3085_v3 = vld [vmem:[#allocation2 + $0x78] sm:$0xff]  ;;  %v3120_v12 = vld [vmem:[#allocation2 + $0x148] sm:$0xff] }
  0x77   :  { %904 = vmatmul.f32.vlgmr.msrb.gmra.mxu3 %v2919_v21  ;;  %1009 = vmatpush.msrb.mxu1 %v731_v27  ;;  %v336_v21 = vunpack.c.l.bf16 %v3050_v60 }
  0x78   :  { %1029 = vmatpush.msrb.mxu2 %v348_v36  ;;  %1048 = vmatpush.msrb.mxu3 %v416_v11  ;;  %v4386_v36 = vld [vmem:[#allocation49_spill] sm:$0xff] }
  0x79   :  { %990 = vmatpush.msrb.mxu0 %v663_v8  ;;  %1010 = vmatpush.msrb.mxu1 %v727_v33  ;;  %v639_v11 = vunpack.c.h.bf16 %v4386_v36  ;;  %v703_v8 = vunpack.c.h.bf16 %v4387_v4  ;;  %v3096_v33 = vld [vmem:[#allocation2 + $0x178] sm:$0xff]  ;;  %v372_v36 = vunpack.c.l.bf16 %v3120_v12  ;;  %v4396_v4 = vld [vmem:[#allocation59_spill] sm:$0xff] }
  0x7a   :  { %1030 = vmatpush.msrb.mxu2 %v344_v15  ;;  %1049 = vmatpush.msrb.mxu3 %v412_v30  ;;  %v320_v15 = vunpack.c.l.bf16 %v3085_v3  ;;  %v4388_v30 = vld [vmem:[#allocation51_spill] sm:$0xff]  ;;  %v384_v28 = vunpack.c.l.bf16 %v3096_v33 }
  0x7b   :  { %991 = vmatpush.msrb.mxu0 %v659_v13  ;;  %1011 = vmatpush.msrb.mxu1 %v723_v24  ;;  %v635_v31 = vunpack.c.h.bf16 %v4388_v30  ;;  %v4389_v13 = vld [vmem:[#allocation52_spill] sm:$0xff]  ;;  %v3102_v24 = vld [vmem:[#allocation2 + $0x58] sm:$0xff] }
  0x7c   :  { %1031 = vmatpush.msrb.mxu2 %v340_v26  ;;  %1050 = vmatpush.msrb.mxu3 %v408_v23  ;;  %v699_v16 = vunpack.c.h.bf16 %v4389_v13  ;;  %v3104_v26 = vld [vmem:[#allocation2 + $0x168] sm:$0xff]  ;;  %v316_v23 = vunpack.c.l.bf16 %v3094_v42  ;;  %v615_v13 = vunpack.c.h.bf16 %v2893_v25  ;;  %v675_v25 = vunpack.c.h.bf16 %v2907_v58 }
  0x7d   :  { %964 = vmatmul.f32.vlgmr.msra.gmra.mxu2 %v2944_v7  ;;  %992 = vmatpush.msrb.mxu0 %v655_v39  ;;  %v3078_v7 = vld [vmem:[#allocation2 + $0x198] sm:$0xff]  ;;  %v380_v43 = vunpack.c.l.bf16 %v3104_v26  ;;  %v3163_v58 = vld [vmem:[#allocation2 + $0x3e8] sm:$0xff] }
  0x7e   :  { %1012 = vmatpush.msrb.mxu1 %v719_v52  ;;  %1032 = vmatpush.msrb.mxu2 %v336_v21  ;;  %v392_v27 = vunpack.c.l.bf16 %v3078_v7  ;;  %v4390_v39 = vld [vmem:[#allocation53_spill] sm:$0xff]  ;;  %v4391_v52 = vld [vmem:[#allocation54_spill] sm:$0xff]  ;;  %4403 = vst [vmem:[#allocation19_spill] sm:$0xff] %v3163_v58 }
  0x7f   :  { %1051 = vmatpush.msrb.mxu3 %v404_v34  ;;  %924 = vmatmul.f32.vlgmr.msra.gmra.mxu0 %v2924_v56  ;;  %v3087_v56 = vld [vmem:[#allocation2 + $0x188] sm:$0xff]  ;;  %v631_v35 = vunpack.c.h.bf16 %v4390_v39  ;;  %v695_v21 = vunpack.c.h.bf16 %v4391_v52  ;;  %v611_v52 = vunpack.c.h.bf16 %v2903_v41 }
  0x80   :  { %984 = vmatmul.f32.vlgmr.msra.gmra.mxu3 %v2969_v29  ;;  %993 = vmatpush.msrb.mxu0 %v651_v37  ;;  %v3110_v34 = vld [vmem:[#allocation2 + $0x48] sm:$0xff]  ;;  %v312_v37 = vunpack.c.l.bf16 %v3102_v24 }
  0x81   :  { %1013 = vmatpush.msrb.mxu1 %v715_v46  ;;  %1033 = vmatpush.msrb.mxu2 %v332_v6  ;;  %v4392_v46 = vld [vmem:[#allocation55_spill] sm:$0xff] }
  0x82   :  { %1052 = vmatpush.msrb.mxu3 %v400_v51  ;;  %944 = vmatmul.f32.vlgmr.msra.gmra.mxu1 %v2931_v1  ;;  %v388_v1 = vunpack.c.l.bf16 %v3087_v56  ;;  %v627_v6 = vunpack.c.h.bf16 %v4392_v46  ;;  %v4393_v51 = vld [vmem:[#allocation56_spill] sm:$0xff]  ;;  %v3158_v46 = vld [vmem:[#allocation2 + $0x108] sm:$0xff] }
  0x83   :  { %994 = vmatpush.msrb.mxu0 %v647_v19  ;;  %1014 = vmatpush.msrb.mxu1 %v711_v48  ;;  %v691_v45 = vunpack.c.h.bf16 %v4393_v51  ;;  %v3118_v19 = vld [vmem:[#allocation2 + $0x38] sm:$0xff]  ;;  %v308_v48 = vunpack.c.l.bf16 %v3110_v34  ;;  %4402 = vst [vmem:[#allocation15_spill] sm:$0xff] %v3158_v46 }
  0x84   :  { %1034 = vmatpush.msrb.mxu2 %v328_v63  ;;  %1053 = vmatpush.msrb.mxu3 %v396_v53  ;;  %v376_v63 = vunpack.c.l.bf16 %v3112_v10  ;;  %v4394_v53 = vld [vmem:[#allocation57_spill] sm:$0xff] }
  0x85   :  { %995 = vmatpush.msrb.mxu0 %v643_v18  ;;  %1015 = vmatpush.msrb.mxu1 %v707_v62  ;;  %v623_v59 = vunpack.c.h.bf16 %v4394_v53  ;;  %v4395_v18 = vld [vmem:[#allocation58_spill] sm:$0xff]  ;;  %v3126_v62 = vld [vmem:[#allocation2 + $0x28] sm:$0xff]  ;;  %v356_v53 = vunpack.c.l.bf16 %v3158_v46 }
  0x86   :  { %1035 = vmatpush.msrb.mxu2 %v324_v14  ;;  %1054 = vmatpush.msrb.mxu3 %v392_v27  ;;  %v687_v49 = vunpack.c.h.bf16 %v4395_v18  ;;  %v3128_v14 = vld [vmem:[#allocation2 + $0x138] sm:$0xff]  ;;  %v304_v27 = vunpack.c.l.bf16 %v3118_v19  ;;  %v300_v30 = vunpack.c.l.bf16 %v3126_v62  ;;  %v3278_v46 = vld [vmem:[#allocation2 + $0x568] sm:$0xff] }
  0x87   :  { %996 = vmatpush.msrb.mxu0 %v639_v11  ;;  %1016 = vmatpush.msrb.mxu1 %v703_v8  ;;  %v619_v11 = vunpack.c.h.bf16 %v2883_v5  ;;  %v683_v8 = vunpack.c.h.bf16 %v4396_v4  ;;  %v3142_v5 = vld [vmem:[#allocation2 + $0x8] sm:$0xff]  ;;  %v3174_v18 = vld [vmem:[#allocation2 + $0x3d8] sm:$0xff]  ;;  %4432 = vst [vmem:[#allocation46_spill] sm:$0xff] %v3278_v46 }
  0x88   :  { %1036 = vmatpush.msrb.mxu2 %v320_v15  ;;  %1055 = vmatpush.msrb.mxu3 %v388_v1  ;;  %v3134_v15 = vld [vmem:[#allocation2 + $0x18] sm:$0xff]  ;;  %v3136_v1 = vld [vmem:[#allocation2 + $0x128] sm:$0xff]  ;;  %4398 = vst [vmem:[#allocation11_spill] sm:$0xff] %v3142_v5 }
  0x89   :  { %997 = vmatpush.msrb.mxu0 %v635_v31  ;;  %1017 = vmatpush.msrb.mxu1 %v699_v16  ;;  %4397 = vst [vmem:[#allocation13_spill] sm:$0xff] %v3134_v15  ;;  %v368_v31 = vunpack.c.l.bf16 %v3128_v14  ;;  %v679_v16 = vunpack.c.h.bf16 %v2897_v50  ;;  %v364_v39 = vunpack.c.l.bf16 %v3136_v1  ;;  %v3152_v50 = vld [vmem:[#allocation2 + $0x2f8] sm:$0xff] }
  0x8a   :  { %1037 = vmatpush.msrb.mxu2 %v316_v23  ;;  %1056 = vmatpush.msrb.mxu3 %v384_v28  ;;  %v3144_v23 = vld [vmem:[#allocation2 + $0x118] sm:$0xff]  ;;  %v296_v28 = vunpack.c.l.bf16 %v3134_v15  ;;  %v480_v51 = vunpack.c.l.bf16 %v3152_v50  ;;  %4406 = vst [vmem:[#allocation22_spill] sm:$0xff] %v3174_v18 }
  0x8b   :  { %998 = vmatpush.msrb.mxu0 %v631_v35  ;;  %1018 = vmatpush.msrb.mxu1 %v695_v21  ;;  %4399 = vst [vmem:[#allocation12_spill] sm:$0xff] %v3144_v23  ;;  %v3148_v35 = vld [vmem:[#allocation2 + $0x3f8] sm:$0xff] }
  0x8c   :  { %1038 = vmatpush.msrb.mxu2 %v312_v37  ;;  %1057 = vmatpush.msrb.mxu3 %v380_v43  ;;  %4400 = vst [vmem:[#allocation16_spill] sm:$0xff] %v3148_v35  ;;  %v3154_v21 = vld [vmem:[#allocation2 + $0x4f8] sm:$0xff]  ;;  %v292_v37 = vunpack.c.l.bf16 %v3142_v5  ;;  %v360_v43 = vunpack.c.l.bf16 %v3144_v23  ;;  %v544_v41 = vunpack.c.l.bf16 %v3148_v35  ;;  %v3254_v35 = vld [vmem:[#allocation2 + $0x588] sm:$0xff] }
  0x8d   :  { %999 = vmatpush.msrb.mxu0 %v627_v6  ;;  %1019 = vmatpush.msrb.mxu1 %v691_v45  ;;  %4401 = vst [vmem:[#allocation14_spill] sm:$0xff] %v3154_v21  ;;  %v3161_v6 = vld [vmem:[#allocation2 + $0x2e8] sm:$0xff]  ;;  %v608_v45 = vunpack.c.l.bf16 %v3154_v21  ;;  %v3266_v21 = vld [vmem:[#allocation2 + $0x578] sm:$0xff] }
  0x8e   :  { %1039 = vmatpush.msrb.mxu2 %v308_v48  ;;  %1058 = vmatpush.msrb.mxu3 %v376_v63  ;;  %v3167_v48 = vld [vmem:[#allocation2 + $0x4e8] sm:$0xff]  ;;  %v3169_v63 = vld [vmem:[#allocation2 + $0x5f8] sm:$0xff]  ;;  %4426 = vst [vmem:[#allocation40_spill] sm:$0xff] %v3254_v35 }
  0x8f   :  { %1000 = vmatpush.msrb.mxu0 %v623_v59  ;;  %1020 = vmatpush.msrb.mxu1 %v687_v49  ;;  %4404 = vst [vmem:[#allocation17_spill] sm:$0xff] %v3167_v48  ;;  %v3172_v59 = vld [vmem:[#allocation2 + $0x2d8] sm:$0xff]  ;;  %v476_v49 = vunpack.c.l.bf16 %v3161_v6  ;;  %v604_v4 = vunpack.c.l.bf16 %v3167_v48  ;;  %v3230_v48 = vld [vmem:[#allocation2 + $0x5a8] sm:$0xff] }
  0x90   :  { %1040 = vmatpush.msrb.mxu2 %v304_v27  ;;  %1059 = vmatpush.msrb.mxu3 %v372_v36  ;;  %4405 = vst [vmem:[#allocation18_spill] sm:$0xff] %v3169_v63  ;;  %v540_v27 = vunpack.c.l.bf16 %v3163_v58  ;;  %v3178_v36 = vld [vmem:[#allocation2 + $0x4d8] sm:$0xff]  ;;  %v3302_v23 = vld [vmem:[#allocation2 + $0x548] sm:$0xff] }
  0x91   :  { %1001 = vmatpush.msrb.mxu0 %v619_v11  ;;  %1021 = vmatpush.msrb.mxu1 %v683_v8  ;;  %4407 = vst [vmem:[#allocation20_spill] sm:$0xff] %v3178_v36  ;;  %v3180_v11 = vld [vmem:[#allocation2 + $0x5e8] sm:$0xff]  ;;  %v672_v8 = vunpack.c.l.bf16 %v3169_v63  ;;  %v3218_v58 = vld [vmem:[#allocation2 + $0x5b8] sm:$0xff] }
  0x92   :  { %1041 = vmatpush.msrb.mxu2 %v300_v30  ;;  %1060 = vmatpush.msrb.mxu3 %v368_v31  ;;  %4408 = vst [vmem:[#allocation21_spill] sm:$0xff] %v3180_v11  ;;  %v3185_v30 = vld [vmem:[#allocation2 + $0x2c8] sm:$0xff]  ;;  %v3242_v63 = vld [vmem:[#allocation2 + $0x598] sm:$0xff] }
  0x93   :  { %1002 = vmatpush.msrb.mxu0 %v615_v13  ;;  %1022 = vmatpush.msrb.mxu1 %v679_v16  ;;  %v3187_v31 = vld [vmem:[#allocation2 + $0x3c8] sm:$0xff]  ;;  %v472_v13 = vunpack.c.l.bf16 %v3172_v59  ;;  %v536_v16 = vunpack.c.l.bf16 %v3174_v18  ;;  %4417 = vst [vmem:[#allocation30_spill] sm:$0xff] %v3218_v58  ;;  %v3290_v5 = vld [vmem:[#allocation2 + $0x558] sm:$0xff] }
  0x94   :  { %1042 = vmatpush.msrb.mxu2 %v296_v28  ;;  %1061 = vmatpush.msrb.mxu3 %v364_v39  ;;  %4409 = vst [vmem:[#allocation25_spill] sm:$0xff] %v3187_v31  ;;  %v3191_v28 = vld [vmem:[#allocation2 + $0x4c8] sm:$0xff]  ;;  %v3193_v39 = vld [vmem:[#allocation2 + $0x5d8] sm:$0xff] }
  0x95   :  { %1003 = vmatpush.msrb.mxu0 %v611_v52  ;;  %1023 = vmatpush.msrb.mxu1 %v675_v25  ;;  %4410 = vst [vmem:[#allocation23_spill] sm:$0xff] %v3191_v28  ;;  %v600_v52 = vunpack.c.l.bf16 %v3178_v36  ;;  %v668_v25 = vunpack.c.l.bf16 %v3180_v11  ;;  %v3206_v18 = vld [vmem:[#allocation2 + $0x5c8] sm:$0xff]  ;;  %v3314_v15 = vld [vmem:[#allocation2 + $0x538] sm:$0xff] }
  0x96   :  { %1043 = vmatpush.msrb.mxu2 %v292_v37  ;;  %1062 = vmatpush.msrb.mxu3 %v360_v43  ;;  %4411 = vst [vmem:[#allocation24_spill] sm:$0xff] %v3193_v39  ;;  %v3198_v37 = vld [vmem:[#allocation2 + $0x2b8] sm:$0xff]  ;;  %v3210_v36 = vld [vmem:[#allocation2 + $0x2a8] sm:$0xff] }
  0x97   :  { %1004 = vmatmul.f32.vlgmr.msrb.gmra.mxu0 %v2981_v47  ;;  %1088 = vmatpush.msra.mxu1 %v544_v41  ;;  %v3200_v43 = vld [vmem:[#allocation2 + $0x3b8] sm:$0xff]  ;;  %v468_v41 = vunpack.c.l.bf16 %v3185_v30  ;;  %4414 = vst [vmem:[#allocation27_spill] sm:$0xff] %v3206_v18  ;;  %v3212_v11 = vld [vmem:[#allocation2 + $0x3a8] sm:$0xff] }
  0x98   :  { %1068 = vmatpush.msra.mxu0 %v480_v51  ;;  %1108 = vmatpush.msra.mxu2 %v608_v45  ;;  %4412 = vst [vmem:[#allocation28_spill] sm:$0xff] %v3200_v43  ;;  %v532_v51 = vunpack.c.l.bf16 %v3187_v31  ;;  %v3204_v45 = vld [vmem:[#allocation2 + $0x4b8] sm:$0xff]  ;;  %v3216_v31 = vld [vmem:[#allocation2 + $0x4a8] sm:$0xff] }
  0x99   :  { %1063 = vmatpush.msrb.mxu3 %v356_v53  ;;  %1024 = vmatmul.f32.vlgmr.msrb.gmra.mxu1 %v2961_v22  ;;  %4413 = vst [vmem:[#allocation26_spill] sm:$0xff] %v3204_v45  ;;  %v596_v22 = vunpack.c.l.bf16 %v3191_v28  ;;  %v664_v53 = vunpack.c.l.bf16 %v3193_v39  ;;  %v3222_v28 = vld [vmem:[#allocation2 + $0x298] sm:$0xff] }
  0x9a   :  { %1069 = vmatpush.msra.mxu0 %v476_v49  ;;  %1089 = vmatpush.msra.mxu1 %v540_v27  ;;  %4415 = vst [vmem:[#allocation31_spill] sm:$0xff] %v3212_v11  ;;  %v464_v49 = vunpack.c.l.bf16 %v3198_v37  ;;  %v528_v27 = vunpack.c.l.bf16 %v3200_v43  ;;  %v3224_v39 = vld [vmem:[#allocation2 + $0x398] sm:$0xff] }
  0x9b   :  { %1109 = vmatpush.msra.mxu2 %v604_v4  ;;  %1128 = vmatpush.msra.mxu3 %v672_v8  ;;  %4416 = vst [vmem:[#allocation29_spill] sm:$0xff] %v3216_v31  ;;  %v592_v4 = vunpack.c.l.bf16 %v3204_v45  ;;  %v660_v8 = vunpack.c.l.bf16 %v3206_v18  ;;  %v3228_v43 = vld [vmem:[#allocation2 + $0x498] sm:$0xff]  ;;  %v3234_v45 = vld [vmem:[#allocation2 + $0x288] sm:$0xff] }
  0x9c   :  { %1070 = vmatpush.msra.mxu0 %v472_v13  ;;  %1090 = vmatpush.msra.mxu1 %v536_v16  ;;  %4418 = vst [vmem:[#allocation34_spill] sm:$0xff] %v3224_v39  ;;  %v460_v13 = vunpack.c.l.bf16 %v3210_v36  ;;  %v524_v16 = vunpack.c.l.bf16 %v3212_v11  ;;  %v3236_v18 = vld [vmem:[#allocation2 + $0x388] sm:$0xff] }
  0x9d   :  { %1110 = vmatpush.msra.mxu2 %v600_v52  ;;  %1129 = vmatpush.msra.mxu3 %v668_v25  ;;  %4419 = vst [vmem:[#allocation32_spill] sm:$0xff] %v3228_v43  ;;  %v588_v52 = vunpack.c.l.bf16 %v3216_v31  ;;  %v656_v25 = vunpack.c.l.bf16 %v3218_v58  ;;  %v3240_v11 = vld [vmem:[#allocation2 + $0x488] sm:$0xff]  ;;  %v3246_v31 = vld [vmem:[#allocation2 + $0x278] sm:$0xff] }
  0x9e   :  { %1071 = vmatpush.msra.mxu0 %v468_v41  ;;  %1091 = vmatpush.msra.mxu1 %v532_v51  ;;  %4420 = vst [vmem:[#allocation33_spill] sm:$0xff] %v3230_v48  ;;  %v456_v41 = vunpack.c.l.bf16 %v3222_v28  ;;  %v520_v51 = vunpack.c.l.bf16 %v3224_v39  ;;  %v3248_v58 = vld [vmem:[#allocation2 + $0x378] sm:$0xff] }
  0x9f   :  { %1111 = vmatpush.msra.mxu2 %v596_v22  ;;  %1130 = vmatpush.msra.mxu3 %v664_v53  ;;  %4421 = vst [vmem:[#allocation35_spill] sm:$0xff] %v3236_v18  ;;  %v584_v22 = vunpack.c.l.bf16 %v3228_v43  ;;  %v652_v53 = vunpack.c.l.bf16 %v3230_v48  ;;  %v3252_v39 = vld [vmem:[#allocation2 + $0x478] sm:$0xff]  ;;  %v3258_v43 = vld [vmem:[#allocation2 + $0x268] sm:$0xff] }
  0xa0   :  { %1072 = vmatpush.msra.mxu0 %v464_v49  ;;  %1092 = vmatpush.msra.mxu1 %v528_v27  ;;  %4422 = vst [vmem:[#allocation36_spill] sm:$0xff] %v3240_v11  ;;  %v452_v49 = vunpack.c.l.bf16 %v3234_v45  ;;  %v516_v27 = vunpack.c.l.bf16 %v3236_v18  ;;  %v3260_v48 = vld [vmem:[#allocation2 + $0x368] sm:$0xff] }
  0xa1   :  { %4423 = vst [vmem:[#allocation37_spill] sm:$0xff] %v3242_v63  ;;  %1112 = vmatpush.msra.mxu2 %v592_v4  ;;  %1131 = vmatpush.msra.mxu3 %v660_v8  ;;  %v580_v4 = vunpack.c.l.bf16 %v3240_v11  ;;  %v648_v8 = vunpack.c.l.bf16 %v3242_v63  ;;  %v3264_v18 = vld [vmem:[#allocation2 + $0x468] sm:$0xff]  ;;  %v3270_v11 = vld [vmem:[#allocation2 + $0x258] sm:$0xff] }
  0xa2   :  { %4424 = vst [vmem:[#allocation38_spill] sm:$0xff] %v3248_v58  ;;  %1073 = vmatpush.msra.mxu0 %v460_v13  ;;  %1093 = vmatpush.msra.mxu1 %v524_v16  ;;  %v448_v13 = vunpack.c.l.bf16 %v3246_v31  ;;  %v512_v16 = vunpack.c.l.bf16 %v3248_v58  ;;  %v3272_v63 = vld [vmem:[#allocation2 + $0x358] sm:$0xff] }
  0xa3   :  { %4425 = vst [vmem:[#allocation39_spill] sm:$0xff] %v3252_v39  ;;  %1113 = vmatpush.msra.mxu2 %v588_v52  ;;  %1132 = vmatpush.msra.mxu3 %v656_v25  ;;  %v576_v52 = vunpack.c.l.bf16 %v3252_v39  ;;  %v644_v25 = vunpack.c.l.bf16 %v3254_v35  ;;  %v3276_v58 = vld [vmem:[#allocation2 + $0x458] sm:$0xff]  ;;  %v3282_v39 = vld [vmem:[#allocation2 + $0x248] sm:$0xff] }
  0xa4   :  { %4427 = vst [vmem:[#allocation41_spill] sm:$0xff] %v3260_v48  ;;  %1074 = vmatpush.msra.mxu0 %v456_v41  ;;  %1094 = vmatpush.msra.mxu1 %v520_v51  ;;  %v444_v41 = vunpack.c.l.bf16 %v3258_v43  ;;  %v508_v51 = vunpack.c.l.bf16 %v3260_v48  ;;  %v3284_v35 = vld [vmem:[#allocation2 + $0x348] sm:$0xff] }
  0xa5   :  { %4428 = vst [vmem:[#allocation42_spill] sm:$0xff] %v3264_v18  ;;  %1114 = vmatpush.msra.mxu2 %v584_v22  ;;  %1133 = vmatpush.msra.mxu3 %v652_v53  ;;  %v572_v22 = vunpack.c.l.bf16 %v3264_v18  ;;  %v640_v53 = vunpack.c.l.bf16 %v3266_v21  ;;  %v3288_v48 = vld [vmem:[#allocation2 + $0x448] sm:$0xff]  ;;  %v3294_v18 = vld [vmem:[#allocation2 + $0x238] sm:$0xff] }
  0xa6   :  { %4429 = vst [vmem:[#allocation43_spill] sm:$0xff] %v3266_v21  ;;  %1075 = vmatpush.msra.mxu0 %v452_v49  ;;  %1095 = vmatpush.msra.mxu1 %v516_v27  ;;  %v440_v49 = vunpack.c.l.bf16 %v3270_v11  ;;  %v504_v27 = vunpack.c.l.bf16 %v3272_v63  ;;  %v3296_v21 = vld [vmem:[#allocation2 + $0x338] sm:$0xff] }
  0xa7   :  { %4430 = vst [vmem:[#allocation44_spill] sm:$0xff] %v3272_v63  ;;  %1115 = vmatpush.msra.mxu2 %v580_v4  ;;  %1134 = vmatpush.msra.mxu3 %v648_v8  ;;  %v568_v4 = vunpack.c.l.bf16 %v3276_v58  ;;  %v636_v8 = vunpack.c.l.bf16 %v3278_v46  ;;  %v3300_v63 = vld [vmem:[#allocation2 + $0x438] sm:$0xff]  ;;  %v3308_v46 = vld [vmem:[#allocation2 + $0x328] sm:$0xff] }
  0xa8   :  { %4431 = vst [vmem:[#allocation45_spill] sm:$0xff] %v3276_v58  ;;  %1076 = vmatpush.msra.mxu0 %v448_v13  ;;  %1096 = vmatpush.msra.mxu1 %v512_v16  ;;  %v436_v13 = vunpack.c.l.bf16 %v3282_v39  ;;  %v500_v16 = vunpack.c.l.bf16 %v3284_v35  ;;  %v3306_v58 = vld [vmem:[#allocation2 + $0x228] sm:$0xff] }
  0xa9   :  { %4433 = vst [vmem:[#allocation47_spill] sm:$0xff] %v3284_v35  ;;  %1116 = vmatpush.msra.mxu2 %v576_v52  ;;  %1135 = vmatpush.msra.mxu3 %v644_v25  ;;  %v564_v52 = vunpack.c.l.bf16 %v3288_v48  ;;  %v632_v25 = vunpack.c.l.bf16 %v3290_v5  ;;  %v3312_v35 = vld [vmem:[#allocation2 + $0x428] sm:$0xff] }
  0xaa   :  { %4434 = vst [vmem:[#allocation48_spill] sm:$0xff] %v3288_v48  ;;  %1077 = vmatpush.msra.mxu0 %v444_v41  ;;  %1097 = vmatpush.msra.mxu1 %v508_v51  ;;  %v432_v41 = vunpack.c.l.bf16 %v3294_v18  ;;  %v496_v51 = vunpack.c.l.bf16 %v3296_v21  ;;  %v3318_v48 = vld [vmem:[#allocation2 + $0x218] sm:$0xff] }
  0xab   :  { %4435 = vst [vmem:[#allocation49_spill] sm:$0xff] %v3290_v5  ;;  %1117 = vmatpush.msra.mxu2 %v572_v22  ;;  %1136 = vmatpush.msra.mxu3 %v640_v53  ;;  %v560_v22 = vunpack.c.l.bf16 %v3300_v63  ;;  %v628_v53 = vunpack.c.l.bf16 %v3302_v23  ;;  %v3320_v5 = vld [vmem:[#allocation2 + $0x318] sm:$0xff] }
  0xac   :  { %4436 = vst [vmem:[#allocation50_spill] sm:$0xff] %v3294_v18  ;;  %1078 = vmatpush.msra.mxu0 %v440_v49  ;;  %1098 = vmatpush.msra.mxu1 %v504_v27  ;;  %v428_v49 = vunpack.c.l.bf16 %v3306_v58  ;;  %v492_v27 = vunpack.c.l.bf16 %v3308_v46  ;;  %v3326_v18 = vld [vmem:[#allocation2 + $0x528] sm:$0xff] }
  0xad   :  { %4437 = vst [vmem:[#allocation51_spill] sm:$0xff] %v3296_v21  ;;  %1118 = vmatpush.msra.mxu2 %v568_v4  ;;  %1137 = vmatpush.msra.mxu3 %v636_v8  ;;  %v3324_v21 = vld [vmem:[#allocation2 + $0x418] sm:$0xff]  ;;  %v556_v4 = vunpack.c.l.bf16 %v3312_v35  ;;  %v624_v8 = vunpack.c.l.bf16 %v3314_v15 }
  0xae   :  { %4438 = vst [vmem:[#allocation52_spill] sm:$0xff] %v3300_v63  ;;  %1079 = vmatpush.msra.mxu0 %v436_v13  ;;  %1099 = vmatpush.msra.mxu1 %v500_v16  ;;  %v3330_v63 = vld [vmem:[#allocation2 + $0x208] sm:$0xff]  ;;  %v424_v13 = vunpack.c.l.bf16 %v3318_v48  ;;  %v488_v16 = vunpack.c.l.bf16 %v3320_v5 }
  0xaf   :  { %4439 = vst [vmem:[#allocation53_spill] sm:$0xff] %v3302_v23  ;;  %1119 = vmatpush.msra.mxu2 %v564_v52  ;;  %1138 = vmatpush.msra.mxu3 %v632_v25  ;;  %v3332_v23 = vld [vmem:[#allocation2 + $0x308] sm:$0xff]  ;;  %v552_v52 = vunpack.c.l.bf16 %v3324_v21  ;;  %v620_v25 = vunpack.c.l.bf16 %v3326_v18 }
  0xb0   :  { %4440 = vst [vmem:[#allocation54_spill] sm:$0xff] %v3306_v58  ;;  %1080 = vmatpush.msra.mxu0 %v432_v41  ;;  %1100 = vmatpush.msra.mxu1 %v496_v51  ;;  %v3338_v58 = vld [vmem:[#allocation2 + $0x518] sm:$0xff]  ;;  %v420_v41 = vunpack.c.l.bf16 %v3330_v63  ;;  %v484_v51 = vunpack.c.l.bf16 %v3332_v23 }
  0xb1   :  { %4441 = vst [vmem:[#allocation55_spill] sm:$0xff] %v3308_v46  ;;  %v3336_v46 = vld [vmem:[#allocation2 + $0x408] sm:$0xff]  ;;  %1120 = vmatpush.msra.mxu2 %v560_v22  ;;  %1139 = vmatpush.msra.mxu3 %v628_v53 }
  0xb2   :  { %4442 = vst [vmem:[#allocation56_spill] sm:$0xff] %v3312_v35  ;;  %v3342_v35 = vld [vmem:[#allocation2 + $0x6f8] sm:$0xff]  ;;  %1081 = vmatpush.msra.mxu0 %v428_v49  ;;  %1101 = vmatpush.msra.mxu1 %v492_v27  ;;  %v3348_v22 = vld [vmem:[#allocation2 + $0x508] sm:$0xff]  ;;  %v353_v49 = vunpack.c.h.bf16 %v3018_v57  ;;  %v417_v27 = vunpack.c.h.bf16 %v3028_v9  ;;  %v413_v57 = vunpack.c.h.bf16 %v3035_v2  ;;  %v481_v9 = vunpack.c.h.bf16 %v3152_v50 }
  0xb3   :  { %4443 = vst [vmem:[#allocation57_spill] sm:$0xff] %v3314_v15  ;;  %1121 = vmatpush.msra.mxu2 %v556_v4  ;;  %1140 = vmatpush.msra.mxu3 %v624_v8  ;;  %v616_v15 = vunpack.c.l.bf16 %v3338_v58  ;;  %v3350_v53 = vld [vmem:[#allocation2 + $0x6e8] sm:$0xff]  ;;  %v612_v4 = vunpack.c.l.bf16 %v3348_v22 }
  0xb4   :  { %4444 = vst [vmem:[#allocation58_spill] sm:$0xff] %v3320_v5  ;;  %v548_v5 = vunpack.c.l.bf16 %v3336_v46  ;;  %1082 = vmatpush.msra.mxu0 %v424_v13  ;;  %1102 = vmatpush.msra.mxu1 %v488_v16  ;;  %v732_v8 = vunpack.c.l.bf16 %v3350_v53  ;;  %v349_v13 = vunpack.c.h.bf16 %v3026_v61  ;;  %v3363_v16 = vld [vmem:[%s4192_s0] sm:$0xff]  ;;  %v345_v61 = vunpack.c.h.bf16 %v3033_v20  ;;  %v3379_v2 = vld [vmem:[%s4192_s0 + $0x8] sm:$0xff] }
  0xb5   :  { %4445 = vst [vmem:[#allocation59_spill] sm:$0xff] %v3324_v21  ;;  %v736_v21 = vunpack.c.l.bf16 %v3342_v35  ;;  %1122 = vmatpush.msra.mxu2 %v552_v52  ;;  %1141 = vmatpush.msra.mxu3 %v620_v25  ;;  %v3368_v52 = vld [vmem:[#allocation2 + $0x6c8] sm:$0xff]  ;;  %v477_v25 = vunpack.c.h.bf16 %v3161_v6  ;;  %v341_v20 = vunpack.c.h.bf16 %v3041_v17  ;;  %v469_v17 = vunpack.c.h.bf16 %v3185_v30  ;;  %v3404_v30 = vld [vmem:[%s4192_s0 + $0x10] sm:$0xff] }
  0xb6   :  { %4446 = vst [vmem:[#allocation60_spill] sm:$0xff] %v3336_v46  ;;  %1083 = vmatpush.msra.mxu0 %v420_v41  ;;  %1103 = vmatpush.msra.mxu1 %v484_v51  ;;  %v3357_v46 = vld [vmem:[#allocation2 + $0x6d8] sm:$0xff]  ;;  %v724_v50 = vunpack.c.l.bf16 %v3368_v52  ;;  %v3387_v51 = vld [vmem:[#allocation2 + $0x6a8] sm:$0xff] }
  0xb7   :  { %1123 = vmatpush.msra.mxu2 %v548_v5  ;;  %1142 = vmatpush.msra.mxu3 %v616_v15  ;;  %v728_v15 = vunpack.c.l.bf16 %v3357_v46  ;;  %v409_v5 = vunpack.c.h.bf16 %v3043_v44  ;;  %v3374_v41 = vld [vmem:[#allocation2 + $0x6b8] sm:$0xff]  ;;  %v405_v44 = vunpack.c.h.bf16 %v3054_v32  ;;  %v716_v32 = vunpack.c.l.bf16 %v3387_v51 }
  0xb8   :  { %1044 = vmatmul.f32.vlgmr.msrb.gmra.mxu2 %v3363_v16  ;;  %1148 = vmatpush.msrb.mxu0 %v736_v21  ;;  %v473_v21 = vunpack.c.h.bf16 %v3172_v59  ;;  %v720_v6 = vunpack.c.l.bf16 %v3374_v41  ;;  %v3393_v59 = vld [vmem:[#allocation2 + $0x698] sm:$0xff] }
  0xb9   :  { %1168 = vmatpush.msrb.mxu1 %v353_v49  ;;  %1188 = vmatpush.msrb.mxu2 %v417_v27  ;;  %v337_v49 = vunpack.c.h.bf16 %v3050_v60  ;;  %v401_v27 = vunpack.c.h.bf16 %v3062_v38  ;;  %v465_v60 = vunpack.c.h.bf16 %v3198_v37  ;;  %v3399_v38 = vld [vmem:[#allocation2 + $0x688] sm:$0xff]  ;;  %v461_v37 = vunpack.c.h.bf16 %v3210_v36 }
  0xba   :  { %1143 = vmatpush.msra.mxu3 %v612_v4  ;;  %1149 = vmatpush.msrb.mxu0 %v732_v8  ;;  %v333_v4 = vunpack.c.h.bf16 %v3059_v0  ;;  %v397_v8 = vunpack.c.h.bf16 %v3070_v40  ;;  %v329_v0 = vunpack.c.h.bf16 %v3068_v55  ;;  %v393_v40 = vunpack.c.h.bf16 %v3078_v7  ;;  %v3419_v55 = vld [vmem:[%s4192_s0 + $0x18] sm:$0xff]  ;;  %v3424_v36 = vld [vmem:[#allocation2 + $0x668] sm:$0xff] }
  0xbb   :  { %1064 = vmatmul.f32.vlgmr.msrb.gmra.mxu3 %v3379_v2  ;;  %1169 = vmatpush.msrb.mxu1 %v349_v13  ;;  %v3412_v13 = vld [vmem:[#allocation2 + $0x678] sm:$0xff]  ;;  %v457_v7 = vunpack.c.h.bf16 %v3222_v28  ;;  %v317_v28 = vunpack.c.h.bf16 %v3094_v42  ;;  %v445_v42 = vunpack.c.h.bf16 %v3258_v43  ;;  %v305_v43 = vunpack.c.h.bf16 %v3118_v19 }
  0xbc   :  { %1189 = vmatpush.msrb.mxu2 %v413_v57  ;;  %1208 = vmatpush.msrb.mxu3 %v481_v9  ;;  %v708_v57 = vunpack.c.l.bf16 %v3399_v38  ;;  %v325_v9 = vunpack.c.h.bf16 %v3076_v54  ;;  %v321_v54 = vunpack.c.h.bf16 %v3085_v3  ;;  %v449_v3 = vunpack.c.h.bf16 %v3246_v31 }
  0xbd   :  { %1150 = vmatpush.msrb.mxu0 %v728_v15  ;;  %1170 = vmatpush.msrb.mxu1 %v345_v61  ;;  %v704_v15 = vunpack.c.l.bf16 %v3412_v13  ;;  %v385_v61 = vunpack.c.h.bf16 %v3096_v33  ;;  %v309_v31 = vunpack.c.h.bf16 %v3110_v34  ;;  %v437_v34 = vunpack.c.h.bf16 %v3282_v39  ;;  %v4448_v39 = vld [vmem:[#allocation13_spill] sm:$0xff] }
  0xbe   :  { %1190 = vmatpush.msrb.mxu2 %v409_v5  ;;  %1209 = vmatpush.msrb.mxu3 %v477_v25  ;;  %v453_v5 = vunpack.c.h.bf16 %v3234_v45  ;;  %v3430_v25 = vld [vmem:[#allocation2 + $0x658] sm:$0xff]  ;;  %v313_v45 = vunpack.c.h.bf16 %v3102_v24  ;;  %v441_v24 = vunpack.c.h.bf16 %v3270_v11  ;;  %v301_v11 = vunpack.c.h.bf16 %v3126_v62 }
  0xbf   :  { %1151 = vmatpush.msrb.mxu0 %v724_v50  ;;  %1171 = vmatpush.msrb.mxu1 %v341_v20  ;;  %v381_v50 = vunpack.c.h.bf16 %v3104_v26  ;;  %v3436_v20 = vld [vmem:[#allocation2 + $0x648] sm:$0xff]  ;;  %v696_v33 = vunpack.c.l.bf16 %v3430_v25 }
  0xc0   :  { %1191 = vmatpush.msrb.mxu2 %v405_v44  ;;  %1210 = vmatpush.msrb.mxu3 %v473_v21  ;;  %v377_v44 = vunpack.c.h.bf16 %v3112_v10  ;;  %v3442_v21 = vld [vmem:[#allocation2 + $0x638] sm:$0xff]  ;;  %v692_v26 = vunpack.c.l.bf16 %v3436_v20 }
  0xc1   :  { %1124 = vmatmul.f32.vlgmr.msra.gmra.mxu2 %v2969_v29  ;;  %1152 = vmatpush.msrb.mxu0 %v720_v6  ;;  %v712_v29 = vunpack.c.l.bf16 %v3393_v59  ;;  %v373_v6 = vunpack.c.h.bf16 %v3120_v12  ;;  %v688_v10 = vunpack.c.l.bf16 %v3442_v21 }
  0xc2   :  { %1172 = vmatpush.msrb.mxu1 %v337_v49  ;;  %1192 = vmatpush.msrb.mxu2 %v401_v27  ;;  %v3448_v49 = vld [vmem:[#allocation2 + $0x628] sm:$0xff]  ;;  %v369_v27 = vunpack.c.h.bf16 %v3128_v14 }
  0xc3   :  { %1211 = vmatpush.msrb.mxu3 %v469_v17  ;;  %1084 = vmatmul.f32.vlgmr.msra.gmra.mxu0 %v3404_v30  ;;  %v3454_v17 = vld [vmem:[#allocation2 + $0x618] sm:$0xff]  ;;  %v684_v12 = vunpack.c.l.bf16 %v3448_v49 }
  0xc4   :  { %1144 = vmatmul.f32.vlgmr.msra.gmra.mxu3 %v2981_v47  ;;  %1153 = vmatpush.msrb.mxu0 %v716_v32  ;;  %v389_v47 = vunpack.c.h.bf16 %v3087_v56  ;;  %v700_v56 = vunpack.c.l.bf16 %v3424_v36  ;;  %v365_v32 = vunpack.c.h.bf16 %v3136_v1  ;;  %v680_v14 = vunpack.c.l.bf16 %v3454_v17 }
  0xc5   :  { %1173 = vmatpush.msrb.mxu1 %v333_v4  ;;  %1193 = vmatpush.msrb.mxu2 %v397_v8  ;;  %v4447_v4 = vld [vmem:[#allocation50_spill] sm:$0xff]  ;;  %v3460_v8 = vld [vmem:[#allocation2 + $0x608] sm:$0xff] }
  0xc6   :  { %1212 = vmatpush.msrb.mxu3 %v465_v60  ;;  %1104 = vmatmul.f32.vlgmr.msra.gmra.mxu1 %v3419_v55  ;;  %v433_v19 = vunpack.c.h.bf16 %v4447_v4  ;;  %v297_v60 = vunpack.c.h.bf16 %v4448_v39  ;;  %v676_v1 = vunpack.c.l.bf16 %v3460_v8  ;;  %v4465_v39 = vld [vmem:[#allocation26_spill] sm:$0xff] }
  0xc7   :  { %1154 = vmatpush.msrb.mxu0 %v712_v29  ;;  %1174 = vmatpush.msrb.mxu1 %v329_v0  ;;  %v4449_v29 = vld [vmem:[#allocation12_spill] sm:$0xff] }
  0xc8   :  { %1194 = vmatpush.msrb.mxu2 %v393_v40  ;;  %1213 = vmatpush.msrb.mxu3 %v461_v37  ;;  %v361_v0 = vunpack.c.h.bf16 %v4449_v29  ;;  %v4450_v40 = vld [vmem:[#allocation54_spill] sm:$0xff]  ;;  %v4451_v37 = vld [vmem:[#allocation11_spill] sm:$0xff]  ;;  %v4466_v29 = vld [vmem:[#allocation28_spill] sm:$0xff] }
  0xc9   :  { %1155 = vmatpush.msrb.mxu0 %v708_v57  ;;  %1175 = vmatpush.msrb.mxu1 %v325_v9  ;;  %v429_v62 = vunpack.c.h.bf16 %v4450_v40  ;;  %v293_v57 = vunpack.c.h.bf16 %v4451_v37  ;;  %v4452_v9 = vld [vmem:[#allocation15_spill] sm:$0xff]  ;;  %v4467_v40 = vld [vmem:[#allocation30_spill] sm:$0xff] }
  0xca   :  { %1195 = vmatpush.msrb.mxu2 %v389_v47  ;;  %1214 = vmatpush.msrb.mxu3 %v457_v7  ;;  %v357_v47 = vunpack.c.h.bf16 %v4452_v9  ;;  %v425_v7 = vunpack.c.h.bf16 %v3318_v48 }
  0xcb   :  { %1156 = vmatpush.msrb.mxu0 %v704_v15  ;;  %1176 = vmatpush.msrb.mxu1 %v321_v54  ;;  %v4453_v15 = vld [vmem:[#allocation14_spill] sm:$0xff] }
  0xcc   :  { %1196 = vmatpush.msrb.mxu2 %v385_v61  ;;  %1215 = vmatpush.msrb.mxu3 %v453_v5  ;;  %v609_v54 = vunpack.c.h.bf16 %v4453_v15  ;;  %v4454_v61 = vld [vmem:[#allocation16_spill] sm:$0xff] }
  0xcd   :  { %1157 = vmatpush.msrb.mxu0 %v700_v56  ;;  %1177 = vmatpush.msrb.mxu1 %v317_v28  ;;  %v545_v5 = vunpack.c.h.bf16 %v4454_v61  ;;  %v4455_v56 = vld [vmem:[#allocation18_spill] sm:$0xff]  ;;  %v4471_v15 = vld [vmem:[#allocation32_spill] sm:$0xff] }
  0xce   :  { %1197 = vmatpush.msrb.mxu2 %v381_v50  ;;  %1216 = vmatpush.msrb.mxu3 %v449_v3  ;;  %v673_v28 = vunpack.c.h.bf16 %v4455_v56  ;;  %v421_v50 = vunpack.c.h.bf16 %v3330_v63  ;;  %v4456_v3 = vld [vmem:[#allocation17_spill] sm:$0xff]  ;;  %v4472_v61 = vld [vmem:[#allocation34_spill] sm:$0xff] }
  0xcf   :  { %1158 = vmatpush.msrb.mxu0 %v696_v33  ;;  %1178 = vmatpush.msrb.mxu1 %v313_v45  ;;  %v605_v33 = vunpack.c.h.bf16 %v4456_v3  ;;  %v4457_v45 = vld [vmem:[#allocation19_spill] sm:$0xff]  ;;  %v4473_v56 = vld [vmem:[#allocation37_spill] sm:$0xff] }
  0xd0   :  { %1198 = vmatpush.msrb.mxu2 %v377_v44  ;;  %1217 = vmatpush.msrb.mxu3 %v445_v42  ;;  %v541_v48 = vunpack.c.h.bf16 %v4457_v45  ;;  %v4458_v44 = vld [vmem:[#allocation21_spill] sm:$0xff] }
  0xd1   :  { %1159 = vmatpush.msrb.mxu0 %v692_v26  ;;  %1179 = vmatpush.msrb.mxu1 %v309_v31  ;;  %v669_v42 = vunpack.c.h.bf16 %v4458_v44  ;;  %v3480_v26 = vld [vmem:[%s4192_s0 + $0x30] sm:$0xff]  ;;  %v737_v31 = vunpack.c.h.bf16 %v3342_v35  ;;  %v713_v44 = vunpack.c.h.bf16 %v3393_v59 }
  0xd2   :  { %1199 = vmatpush.msrb.mxu2 %v373_v6  ;;  %1218 = vmatpush.msrb.mxu3 %v441_v24  ;;  %v4459_v6 = vld [vmem:[#allocation20_spill] sm:$0xff]  ;;  %v4460_v24 = vld [vmem:[#allocation22_spill] sm:$0xff] }
  0xd3   :  { %1160 = vmatpush.msrb.mxu0 %v688_v10  ;;  %1180 = vmatpush.msrb.mxu1 %v305_v43  ;;  %v601_v63 = vunpack.c.h.bf16 %v4459_v6  ;;  %v537_v10 = vunpack.c.h.bf16 %v4460_v24  ;;  %v4461_v43 = vld [vmem:[#allocation24_spill] sm:$0xff]  ;;  %v4478_v6 = vld [vmem:[#allocation38_spill] sm:$0xff]  ;;  %v4479_v24 = vld [vmem:[#allocation43_spill] sm:$0xff] }
  0xd4   :  { %1200 = vmatpush.msrb.mxu2 %v369_v27  ;;  %1219 = vmatpush.msrb.mxu3 %v437_v34  ;;  %v665_v27 = vunpack.c.h.bf16 %v4461_v43  ;;  %v733_v34 = vunpack.c.h.bf16 %v3350_v53  ;;  %v657_v53 = vunpack.c.h.bf16 %v4467_v40  ;;  %v4480_v43 = vld [vmem:[#allocation42_spill] sm:$0xff]  ;;  %v4487_v40 = vld [vmem:[#allocation47_spill] sm:$0xff] }
  0xd5   :  { %1161 = vmatpush.msrb.mxu0 %v684_v12  ;;  %1181 = vmatpush.msrb.mxu1 %v301_v11  ;;  %v4462_v12 = vld [vmem:[#allocation23_spill] sm:$0xff] }
  0xd6   :  { %1201 = vmatpush.msrb.mxu2 %v365_v32  ;;  %1220 = vmatpush.msrb.mxu3 %v433_v19  ;;  %v597_v11 = vunpack.c.h.bf16 %v4462_v12  ;;  %v4463_v32 = vld [vmem:[#allocation25_spill] sm:$0xff]  ;;  %v4464_v19 = vld [vmem:[#allocation27_spill] sm:$0xff] }
  0xd7   :  { %1162 = vmatpush.msrb.mxu0 %v680_v14  ;;  %1182 = vmatpush.msrb.mxu1 %v297_v60  ;;  %v533_v4 = vunpack.c.h.bf16 %v4463_v32  ;;  %v661_v35 = vunpack.c.h.bf16 %v4464_v19  ;;  %v729_v14 = vunpack.c.h.bf16 %v3357_v46  ;;  %v593_v60 = vunpack.c.h.bf16 %v4465_v39  ;;  %v4485_v39 = vld [vmem:[#allocation49_spill] sm:$0xff] }
  0xd8   :  { %1202 = vmatpush.msrb.mxu2 %v361_v0  ;;  %1221 = vmatpush.msrb.mxu3 %v429_v62  ;;  %v529_v0 = vunpack.c.h.bf16 %v4466_v29  ;;  %v725_v62 = vunpack.c.h.bf16 %v3368_v52  ;;  %v649_v52 = vunpack.c.h.bf16 %v4473_v56  ;;  %v705_v32 = vunpack.c.h.bf16 %v3412_v13  ;;  %v4486_v29 = vld [vmem:[#allocation48_spill] sm:$0xff] }
  0xd9   :  { %1163 = vmatpush.msrb.mxu0 %v676_v1  ;;  %1183 = vmatpush.msrb.mxu1 %v293_v57  ;;  %v4468_v1 = vld [vmem:[#allocation29_spill] sm:$0xff]  ;;  %v4469_v57 = vld [vmem:[#allocation31_spill] sm:$0xff]  ;;  %v621_v56 = vunpack.c.h.bf16 %v3326_v18  ;;  %v3540_v18 = vld [vmem:[#allocation5 + $0xf0] sm:$0xff] }
  0xda   :  { %1203 = vmatpush.msrb.mxu2 %v357_v47  ;;  %1222 = vmatpush.msrb.mxu3 %v425_v7  ;;  %v589_v37 = vunpack.c.h.bf16 %v4468_v1  ;;  %v525_v9 = vunpack.c.h.bf16 %v4469_v57  ;;  %v4470_v47 = vld [vmem:[#allocation33_spill] sm:$0xff]  ;;  %v721_v7 = vunpack.c.h.bf16 %v3374_v41  ;;  %v697_v1 = vunpack.c.h.bf16 %v3430_v25  ;;  %v4493_v25 = vld [vmem:[#allocation56_spill] sm:$0xff] }
  0xdb   :  { %1164 = vmatmul.f32.vlgmr.msrb.gmra.mxu0 %v3480_v26  ;;  %1248 = vmatpush.msra.mxu1 %v609_v54  ;;  %v653_v46 = vunpack.c.h.bf16 %v4470_v47  ;;  %v585_v54 = vunpack.c.h.bf16 %v4471_v15  ;;  %v765_v15 = vpop.f32.mrf.mxu0 }
  0xdc   :  { %1228 = vmatpush.msra.mxu0 %v545_v5  ;;  %1268 = vmatpush.msra.mxu2 %v673_v28  ;;  %v521_v5 = vunpack.c.h.bf16 %v4472_v61  ;;  %v717_v28 = vunpack.c.h.bf16 %v3387_v51  ;;  %v641_v51 = vunpack.c.h.bf16 %v4479_v24 }
  0xdd   :  { %1223 = vmatpush.msrb.mxu3 %v421_v50  ;;  %1249 = vmatpush.msra.mxu1 %v605_v33  ;;  %v4474_v50 = vld [vmem:[#allocation36_spill] sm:$0xff]  ;;  %v4475_v33 = vld [vmem:[#allocation35_spill] sm:$0xff] }
  0xde   :  { %1229 = vmatpush.msra.mxu0 %v541_v48  ;;  %1269 = vmatpush.msra.mxu2 %v669_v42  ;;  %v581_v3 = vunpack.c.h.bf16 %v4474_v50  ;;  %v517_v45 = vunpack.c.h.bf16 %v4475_v33  ;;  %v4476_v48 = vld [vmem:[#allocation40_spill] sm:$0xff]  ;;  %v4477_v42 = vld [vmem:[#allocation39_spill] sm:$0xff]  ;;  %v3535_v33 = vpop.f32.mrf.mxu1 }
  0xdf   :  { %1288 = vmatpush.msra.mxu3 %v737_v31  ;;  %1250 = vmatpush.msra.mxu1 %v601_v63  ;;  %v645_v41 = vunpack.c.h.bf16 %v4476_v48  ;;  %v577_v31 = vunpack.c.h.bf16 %v4477_v42  ;;  %v513_v63 = vunpack.c.h.bf16 %v4478_v6  ;;  %v4495_v50 = vld [vmem:[#allocation59_spill] sm:$0xff]  ;;  %v4496_v48 = vld [vmem:[#allocation60_spill] sm:$0xff]  ;;  %v3549_v42 = vld [vmem:[%s4194_s2] sm:$0xf] }
  0xe0   :  { %1230 = vmatpush.msra.mxu0 %v537_v10  ;;  %1270 = vmatpush.msra.mxu2 %v665_v27  ;;  %v709_v10 = vunpack.c.h.bf16 %v3399_v38  ;;  %v573_v27 = vunpack.c.h.bf16 %v4480_v43  ;;  %v633_v38 = vunpack.c.h.bf16 %v4485_v39  ;;  %v3559_v6 = vld [vmem:[#allocation5 + $0x1e0] sm:$0xff] }
  0xe1   :  { %1289 = vmatpush.msra.mxu3 %v733_v34  ;;  %1251 = vmatpush.msra.mxu1 %v597_v11  ;;  %v4481_v34 = vld [vmem:[#allocation41_spill] sm:$0xff]  ;;  %v4482_v11 = vld [vmem:[#allocation46_spill] sm:$0xff] }
  0xe2   :  { %1231 = vmatpush.msra.mxu0 %v533_v4  ;;  %1271 = vmatpush.msra.mxu2 %v661_v35  ;;  %v509_v12 = vunpack.c.h.bf16 %v4481_v34  ;;  %v637_v59 = vunpack.c.h.bf16 %v4482_v11  ;;  %v4483_v4 = vld [vmem:[#allocation45_spill] sm:$0xff]  ;;  %v4484_v35 = vld [vmem:[#allocation44_spill] sm:$0xff]  ;;  %v3577_v34 = vld [vmem:[#allocation5 + $0xc0] sm:$0xff] }
  0xe3   :  { %1290 = vmatpush.msra.mxu3 %v729_v14  ;;  %1252 = vmatpush.msra.mxu1 %v593_v60  ;;  %v569_v19 = vunpack.c.h.bf16 %v4483_v4  ;;  %v505_v14 = vunpack.c.h.bf16 %v4484_v35  ;;  %v701_v60 = vunpack.c.h.bf16 %v3424_v36  ;;  %v4491_v36 = vld [vmem:[#allocation57_spill] sm:$0xff]  ;;  %v3585_v4 = vld [vmem:[#allocation5 + $0xb0] sm:$0xff]  ;;  %v741_v35 = vperm.slane %v3549_v42, 1 }
  0xe4   :  { %1232 = vmatpush.msra.mxu0 %v529_v0  ;;  %1272 = vmatpush.msra.mxu2 %v657_v53  ;;  %v565_v0 = vunpack.c.h.bf16 %v4486_v29  ;;  %v501_v53 = vunpack.c.h.bf16 %v4487_v40  ;;  %v1488_v39 = vunpack.c.l.bf16 %v3577_v34  ;;  %v3599_v29 = vld [vmem:[#allocation5 + $0x1a0] sm:$0xff]  ;;  %v1484_v40 = vunpack.c.l.bf16 %v3585_v4 }
  0xe5   :  { %1291 = vmatpush.msra.mxu3 %v725_v62  ;;  %1253 = vmatpush.msra.mxu1 %v589_v37  ;;  %v4488_v62 = vld [vmem:[#allocation53_spill] sm:$0xff]  ;;  %v4489_v37 = vld [vmem:[#allocation51_spill] sm:$0xff] }
  0xe6   :  { %1233 = vmatpush.msra.mxu0 %v525_v9  ;;  %1273 = vmatpush.msra.mxu2 %v653_v46  ;;  %v629_v13 = vunpack.c.h.bf16 %v4488_v62  ;;  %v497_v57 = vunpack.c.h.bf16 %v4489_v37  ;;  %v4490_v9 = vld [vmem:[#allocation52_spill] sm:$0xff]  ;;  %v625_v46 = vunpack.c.h.bf16 %v4491_v36 }
  0xe7   :  { %1292 = vmatpush.msra.mxu3 %v721_v7  ;;  %1254 = vmatpush.msra.mxu1 %v585_v54  ;;  %v561_v47 = vunpack.c.h.bf16 %v4490_v9  ;;  %v693_v7 = vunpack.c.h.bf16 %v3436_v20  ;;  %v4492_v54 = vld [vmem:[#allocation55_spill] sm:$0xff]  ;;  %v3607_v37 = vld [vmem:[#allocation5 + $0x90] sm:$0xff]  ;;  %v3611_v9 = vld [vmem:[#allocation5 + $0x2e0] sm:$0xff] }
  0xe8   :  { %1234 = vmatpush.msra.mxu0 %v521_v5  ;;  %1274 = vmatpush.msra.mxu2 %v649_v52  ;;  %v493_v61 = vunpack.c.h.bf16 %v4492_v54  ;;  %v557_v5 = vunpack.c.h.bf16 %v4493_v25  ;;  %v689_v52 = vunpack.c.h.bf16 %v3442_v21  ;;  %v485_v21 = vunpack.c.h.bf16 %v3332_v23  ;;  %v3618_v54 = vld [vmem:[#allocation5 + $0x80] sm:$0xff]  ;;  %v3622_v25 = vld [vmem:[#allocation5 + $0x2d0] sm:$0xff] }
  0xe9   :  { %1293 = vmatpush.msra.mxu3 %v717_v28  ;;  %1255 = vmatpush.msra.mxu1 %v581_v3  ;;  %v4494_v28 = vld [vmem:[#allocation58_spill] sm:$0xff]  ;;  %v553_v3 = vunpack.c.h.bf16 %v4495_v50  ;;  %v1500_v23 = vunpack.c.l.bf16 %v3540_v18  ;;  %v3628_v50 = vld [vmem:[#allocation5 + $0x70] sm:$0xff] }
  0xea   :  { %1235 = vmatpush.msra.mxu0 %v517_v45  ;;  %1275 = vmatpush.msra.mxu2 %v645_v41  ;;  %v489_v20 = vunpack.c.h.bf16 %v4494_v28  ;;  %v685_v45 = vunpack.c.h.bf16 %v3448_v49  ;;  %v549_v41 = vunpack.c.h.bf16 %v4496_v48  ;;  %v681_v49 = vunpack.c.h.bf16 %v3454_v17  ;;  %v3566_v17 = vld [vmem:[#allocation5 + $0xd0] sm:$0xff] }
  0xeb   :  { %1294 = vmatpush.msra.mxu3 %v713_v44  ;;  %1256 = vmatpush.msra.mxu1 %v577_v31  ;;  %v3544_v44 = vld [vmem:[#allocation5 + $0x1f0] sm:$0xff]  ;;  %v3557_v31 = vld [vmem:[#allocation5 + $0xe0] sm:$0xff]  ;;  %v1492_v11 = vunpack.c.l.bf16 %v3566_v17 }
  0xec   :  { %1236 = vmatpush.msra.mxu0 %v513_v63  ;;  %1276 = vmatpush.msra.mxu2 %v641_v51  ;;  %v3561_v63 = vpop.f32.mrf.mxu2  ;;  %v1564_v24 = vunpack.c.l.bf16 %v3544_v44  ;;  %v3568_v51 = vld [vmem:[#allocation5 + $0x1d0] sm:$0xff]  ;;  %v1496_v43 = vunpack.c.l.bf16 %v3557_v31 }
  0xed   :  { %1295 = vmatpush.msra.mxu3 %v709_v10  ;;  %1257 = vmatpush.msra.mxu1 %v573_v27  ;;  %v3570_v10 = vpop.f32.mrf.mxu0  ;;  %v1560_v27 = vunpack.c.l.bf16 %v3559_v6 }
  0xee   :  { %1237 = vmatpush.msra.mxu0 %v509_v12  ;;  %1277 = vmatpush.msra.mxu2 %v637_v59  ;;  %v3579_v12 = vld [vmem:[#allocation5 + $0x1c0] sm:$0xff]  ;;  %v1556_v59 = vunpack.c.l.bf16 %v3568_v51 }
  0xef   :  { %1296 = vmatpush.msra.mxu3 %v705_v32  ;;  %1258 = vmatpush.msra.mxu1 %v569_v19  ;;  %v3587_v19 = vld [vmem:[#allocation5 + $0x1b0] sm:$0xff] }
  0xf0   :  { %1238 = vmatpush.msra.mxu0 %v505_v14  ;;  %1278 = vmatpush.msra.mxu2 %v633_v38  ;;  %v3590_v14 = vpop.f32.mrf.mxu1  ;;  %v1552_v38 = vunpack.c.l.bf16 %v3579_v12 }
  0xf1   :  { %1297 = vmatpush.msra.mxu3 %v701_v60  ;;  %1259 = vmatpush.msra.mxu1 %v565_v0  ;;  %v3601_v0 = vld [vmem:[#allocation5 + $0x2f0] sm:$0xff] }
  0xf2   :  { %1239 = vmatpush.msra.mxu0 %v501_v53  ;;  %1279 = vmatpush.msra.mxu2 %v629_v13  ;;  %v1548_v53 = vunpack.c.l.bf16 %v3587_v19  ;;  %v1628_v62 = vunpack.c.l.bf16 %v3601_v0 }
  0xf3   :  { %1298 = vmatpush.msra.mxu3 %v697_v1  ;;  %1204 = vmatmul.f32.vlgmr.msrb.gmra.mxu2 %v3379_v2  ;;  %v617_v2 = vunpack.c.h.bf16 %v3338_v58  ;;  %v613_v58 = vunpack.c.h.bf16 %v3348_v22  ;;  %v740_v22 = vperm.slane %v3549_v42, 0 }
  0xf4   :  { %1240 = vmatpush.msra.mxu0 %v497_v57  ;;  %1260 = vmatpush.msra.mxu1 %v561_v47  ;;  %v3609_v57 = vld [vmem:[#allocation5 + $0x190] sm:$0xff]  ;;  %v3613_v47 = vpop.f32.mrf.mxu2 }
  0xf5   :  { %1280 = vmatpush.msra.mxu2 %v625_v46  ;;  %1299 = vmatpush.msra.mxu3 %v693_v7  ;;  %v766_v32 = vadd.f32 %v765_v15, %v740_v22  ;;  %v1544_v46 = vunpack.c.l.bf16 %v3599_v29  ;;  %v1624_v15 = vunpack.c.l.bf16 %v3611_v9 }
  0xf6   :  { %1224 = vmatmul.f32.vlgmr.msrb.gmra.mxu3 %v3404_v30  ;;  %1241 = vmatpush.msra.mxu0 %v493_v61  ;;  %v3551_v30 = vpop.f32.mrf.mxu3  ;;  %v3620_v61 = vld [vmem:[#allocation5 + $0x180] sm:$0xff] }
  0xf7   :  { %1261 = vmatpush.msra.mxu1 %v557_v5  ;;  %1281 = vmatpush.msra.mxu2 %v621_v56  ;;  %v786_v13 = vadd.f32 %v3535_v33, %v766_v32  ;;  %v1476_v5 = vunpack.c.l.bf16 %v3607_v37  ;;  %v1540_v56 = vunpack.c.l.bf16 %v3609_v57  ;;  %v3632_v33 = vld [vmem:[#allocation5 + $0x2c0] sm:$0xff] }
  0xf8   :  { %1300 = vmatpush.msra.mxu3 %v689_v52  ;;  %1184 = vmatmul.f32.vlgmr.msrb.gmra.mxu1 %v3363_v16  ;;  %v677_v16 = vunpack.c.h.bf16 %v3460_v8  ;;  %v2432_v8 = vld [vmem:[%s4192_s0 + $0x28] sm:$0xff]  ;;  %v1620_v52 = vunpack.c.l.bf16 %v3622_v25  ;;  %v1616_v48 = vunpack.c.l.bf16 %v3632_v33 }
  0xf9   :  { %1242 = vmatpush.msra.mxu0 %v489_v20  ;;  %1262 = vmatpush.msra.mxu1 %v553_v3  ;;  %v806_v28 = vadd.f32 %v3561_v63, %v786_v13  ;;  %v3630_v3 = vld [vmem:[#allocation5 + $0x170] sm:$0xff] }
  0xfa   :  { %1282 = vmatpush.msra.mxu2 %v617_v2  ;;  %1301 = vmatpush.msra.mxu3 %v685_v45  ;;  %v1472_v45 = vunpack.c.l.bf16 %v3618_v54  ;;  %v1532_v63 = vunpack.c.l.bf16 %v3630_v3  ;;  %v3666_v13 = vld [vmem:[#allocation5 + $0x30] sm:$0xff] }
  0xfb   :  { %1243 = vmatpush.msra.mxu0 %v485_v21  ;;  %1263 = vmatpush.msra.mxu1 %v549_v41  ;;  %v1536_v21 = vunpack.c.l.bf16 %v3620_v61  ;;  %v3637_v41 = vld [vmem:[#allocation5 + $0x60] sm:$0xff] }
  0xfc   :  { %1283 = vmatpush.msra.mxu2 %v613_v58  ;;  %1302 = vmatpush.msra.mxu3 %v681_v49  ;;  %v925_v7 = vpop.f32.mrf.mxu0  ;;  %v3639_v58 = vld [vmem:[#allocation5 + $0x160] sm:$0xff]  ;;  %v3641_v49 = vld [vmem:[#allocation5 + $0x2b0] sm:$0xff] }
  0xfd   :  { %1284 = vmatmul.f32.vlgmr.msra.gmra.mxu2 %v2432_v8  ;;  %1706 = vmatpush.msrb.mxu0 %v1500_v23  ;;  %v1468_v23 = vunpack.c.l.bf16 %v3628_v50  ;;  %v3651_v8 = vld [vmem:[#allocation5 + $0x2a0] sm:$0xff]  ;;  %v1528_v32 = vunpack.c.l.bf16 %v3639_v58 }
  0xfe   :  { %1726 = vmatpush.msrb.mxu1 %v1564_v24  ;;  %1303 = vmatpush.msra.mxu3 %v677_v16  ;;  %v905_v60 = vpop.f32.mrf.mxu3  ;;  %v1612_v24 = vunpack.c.l.bf16 %v3641_v49  ;;  %v826_v16 = vadd.f32 %v3551_v30, %v806_v28  ;;  %v3658_v30 = vld [vmem:[#allocation5 + $0x140] sm:$0xff]  ;;  %v1452_v28 = vunpack.c.l.bf16 %v3666_v13 }
  0xff   :  { %1244 = vmatmul.f32.vlgmr.msra.gmra.mxu0 %v3419_v55  ;;  %1304 = vmatmul.f32.vlgmr.msra.gmra.mxu3 %v3480_v26  ;;  %v2433_v55 = vld [vmem:[%s4192_s0 + $0x20] sm:$0xff]  ;;  %v906_v1 = vadd.f32 %v905_v60, %v741_v35  ;;  %v945_v2 = vpop.f32.mrf.mxu1  ;;  %v1608_v35 = vunpack.c.l.bf16 %v3651_v8 }
 0x100   :  { %1707 = vmatpush.msrb.mxu0 %v1496_v43  ;;  %1727 = vmatpush.msrb.mxu1 %v1560_v27  ;;  %v3597_v26 = vld [vmem:[#allocation5 + $0xa0] sm:$0xff]  ;;  %v3647_v43 = vld [vmem:[#allocation5 + $0x50] sm:$0xff] }
 0x101   :  { %1264 = vmatmul.f32.vlgmr.msra.gmra.mxu1 %v2433_v55  ;;  %v1480_v36 = vunpack.c.l.bf16 %v3597_v26  ;;  %1746 = vmatpush.msrb.mxu2 %v1628_v62  ;;  %v926_v20 = vadd.f32 %v925_v7, %v906_v1  ;;  %v3649_v27 = vld [vmem:[#allocation5 + $0x150] sm:$0xff]  ;;  %v1460_v60 = vunpack.c.l.bf16 %v3647_v43 }
 0x102   :  { %1708 = vmatpush.msrb.mxu0 %v1492_v11  ;;  %1728 = vmatpush.msrb.mxu1 %v1556_v59  ;;  %v965_v11 = vpop.f32.mrf.mxu2  ;;  %v1464_v59 = vunpack.c.l.bf16 %v3637_v41  ;;  %v1524_v55 = vunpack.c.l.bf16 %v3649_v27  ;;  %v3668_v1 = vld [vmem:[#allocation5 + $0x130] sm:$0xff] }
 0x103   :  { %1747 = vmatpush.msrb.mxu2 %v1624_v15  ;;  %v946_v22 = vadd.f32 %v945_v2, %v926_v20  ;;  %v1520_v15 = vunpack.c.l.bf16 %v3658_v30  ;;  %v1516_v20 = vunpack.c.l.bf16 %v3668_v1 }
 0x104   :  { %1709 = vmatpush.msrb.mxu0 %v1488_v39  ;;  %1729 = vmatpush.msrb.mxu1 %v1552_v38  ;;  %v3656_v39 = vld [vmem:[#allocation5 + $0x40] sm:$0xff]  ;;  %v3660_v38 = vld [vmem:[#allocation5 + $0x290] sm:$0xff] }
 0x105   :  { %1748 = vmatpush.msrb.mxu2 %v1620_v52  ;;  %v966_v62 = vadd.f32 %v965_v11, %v946_v22  ;;  %v1456_v7 = vunpack.c.l.bf16 %v3656_v39  ;;  %v3679_v52 = vld [vmem:[#allocation5 + $0x270] sm:$0xff] }
 0x106   :  { %1710 = vmatpush.msrb.mxu0 %v1484_v40  ;;  %1730 = vmatpush.msrb.mxu1 %v1548_v53  ;;  %v1604_v40 = vunpack.c.l.bf16 %v3660_v38  ;;  %v846_v53 = vadd.f32 %v3570_v10, %v826_v16  ;;  %v3677_v10 = vld [vmem:[#allocation5 + $0x120] sm:$0xff]  ;;  %v1596_v2 = vunpack.c.l.bf16 %v3679_v52 }
 0x107   :  { %1749 = vmatpush.msrb.mxu2 %v1616_v48  ;;  %v3685_v48 = vld [vmem:[#allocation5 + $0x10] sm:$0xff]  ;;  %v1512_v16 = vunpack.c.l.bf16 %v3677_v10 }
 0x108   :  { %1711 = vmatpush.msrb.mxu0 %v1480_v36  ;;  %1731 = vmatpush.msrb.mxu1 %v1544_v46  ;;  %v3670_v36 = vld [vmem:[#allocation5 + $0x280] sm:$0xff]  ;;  %v985_v46 = vpop.f32.mrf.mxu3 }
 0x109   :  { %1750 = vmatpush.msrb.mxu2 %v1612_v24 }
 0x10a   :  { %1712 = vmatpush.msrb.mxu0 %v1476_v5  ;;  %1732 = vmatpush.msrb.mxu1 %v1540_v56  ;;  %v1600_v5 = vunpack.c.l.bf16 %v3670_v36  ;;  %v3675_v56 = vld [vmem:[#allocation5 + $0x20] sm:$0xff] }
 0x10b   :  { %1751 = vmatpush.msrb.mxu2 %v1608_v35  ;;  %v1448_v24 = vunpack.c.l.bf16 %v3675_v56  ;;  %v3698_v35 = vld [vmem:[#allocation5 + $0x250] sm:$0xff] }
 0x10c   :  { %1713 = vmatpush.msrb.mxu0 %v1472_v45  ;;  %1733 = vmatpush.msrb.mxu1 %v1536_v21  ;;  %v866_v45 = vadd.f32 %v3590_v14, %v846_v53  ;;  %v986_v21 = vadd.f32 %v985_v46, %v966_v62  ;;  %v3696_v14 = vld [vmem:[#allocation5 + $0x100] sm:$0xff]  ;;  %v1588_v53 = vunpack.c.l.bf16 %v3698_v35 }
 0x10d   :  { %1752 = vmatpush.msrb.mxu2 %v1604_v40 }
 0x10e   :  { %1714 = vmatpush.msrb.mxu0 %v1468_v23  ;;  %1734 = vmatpush.msrb.mxu1 %v1532_v63  ;;  %v3687_v23 = vld [vmem:[#allocation5 + $0x110] sm:$0xff]  ;;  %v3689_v63 = vld [vmem:[#allocation5 + $0x260] sm:$0xff]  ;;  %v886_v62 = vadd.f32 %v3613_v47, %v866_v45  ;;  %v1501_v47 = vunpack.c.h.bf16 %v3540_v18  ;;  %v1557_v18 = vunpack.c.h.bf16 %v3568_v51  ;;  %v1549_v51 = vunpack.c.h.bf16 %v3587_v19 }
 0x10f   :  { %1753 = vmatpush.msrb.mxu2 %v1600_v5  ;;  %v1592_v11 = vunpack.c.l.bf16 %v3689_v63  ;;  %v1504_v5 = vunpack.c.l.bf16 %v3696_v14  ;;  %v1541_v19 = vunpack.c.h.bf16 %v3609_v57  ;;  %v3748_v57 = vld [vmem:[#allocation5 + $0x3f0] sm:$0xff] }
 0x110   :  { %1715 = vmatpush.msrb.mxu0 %v1464_v59  ;;  %1735 = vmatpush.msrb.mxu1 %v1528_v32  ;;  %v3694_v59 = vld [vmem:[#allocation5] sm:$0xff] }
 0x111   :  { %1754 = vmatpush.msrb.mxu2 %v1596_v2  ;;  %v3710_v2 = vld [vmem:[#allocation5 + $0x230] sm:$0xff] }
 0x112   :  { %1716 = vmatpush.msrb.mxu0 %v1460_v60  ;;  %1736 = vmatpush.msrb.mxu1 %v1524_v55  ;;  %v1444_v60 = vunpack.c.l.bf16 %v3685_v48  ;;  %v1508_v55 = vunpack.c.l.bf16 %v3687_v23 }
 0x113   :  { %1755 = vmatpush.msrb.mxu2 %v1592_v11 }
 0x114   :  { %1717 = vmatpush.msrb.mxu0 %v1456_v7  ;;  %1737 = vmatpush.msrb.mxu1 %v1520_v15  ;;  %v1005_v22 = vpop.f32.mrf.mxu0  ;;  %v3704_v7 = vld [vmem:[#allocation5 + $0x240] sm:$0xff]  ;;  %v1440_v15 = vunpack.c.l.bf16 %v3694_v59 }
 0x115   :  { %v1006_v32 = vadd.f32 %v1005_v22, %v986_v21  ;;  %1756 = vmatpush.msrb.mxu2 %v1588_v53  ;;  %v3715_v21 = vmax.f32 %v886_v62, 0.0  ;;  %v3720_v22 = vld [vmem:[#allocation5 + $0x220] sm:$0xff]  ;;  %v1485_v53 = vunpack.c.h.bf16 %v3585_v4  ;;  %v1629_v62 = vunpack.c.h.bf16 %v3601_v0 }
 0x116   :  { %1718 = vmatpush.msrb.mxu0 %v1452_v28  ;;  %1738 = vmatpush.msrb.mxu1 %v1516_v20  ;;  %v1025_v40 = vpop.f32.mrf.mxu1  ;;  %v1584_v28 = vunpack.c.l.bf16 %v3704_v7  ;;  %v1565_v20 = vunpack.c.h.bf16 %v3544_v44  ;;  %v1497_v44 = vunpack.c.h.bf16 %v3557_v31  ;;  %v1576_v11 = vunpack.c.l.bf16 %v3720_v22 }
 0x117   :  { %v1026_v46 = vadd.f32 %v1025_v40, %v1006_v32  ;;  %v1493_v32 = vunpack.c.h.bf16 %v3566_v17  ;;  %v3732_v40 = vld [vmem:[#allocation5 + $0x200] sm:$0xff]  ;;  %v1621_v4 = vunpack.c.h.bf16 %v3622_v25  ;;  %v1537_v0 = vunpack.c.h.bf16 %v3620_v61 }
 0x118   :  { %1719 = vmatpush.msrb.mxu0 %v1448_v24  ;;  %1739 = vmatpush.msrb.mxu1 %v1512_v16  ;;  %v1561_v24 = vunpack.c.h.bf16 %v3559_v6  ;;  %v1580_v16 = vunpack.c.l.bf16 %v3710_v2  ;;  %v3727_v6 = vld [vmem:[#allocation5 + $0x210] sm:$0xff]  ;;  %v1568_v17 = vunpack.c.l.bf16 %v3732_v40  ;;  %v1692_v25 = vunpack.c.l.bf16 %v3748_v57 }
 0x119   :  { %v3713_v45 = vmax.f32 %v1026_v46, 0.0  ;;  %1757 = vmatpush.msrb.mxu2 %v1584_v28  ;;  %v1572_v31 = vunpack.c.l.bf16 %v3727_v6  ;;  %v1625_v46 = vunpack.c.h.bf16 %v3611_v9  ;;  %v1533_v9 = vunpack.c.h.bf16 %v3630_v3 }
 0x11a   :  { %1720 = vmatpush.msrb.mxu0 %v1444_v60  ;;  %1740 = vmatpush.msrb.mxu1 %v1508_v55  ;;  %v1553_v60 = vunpack.c.h.bf16 %v3579_v12  ;;  %v1489_v55 = vunpack.c.h.bf16 %v3577_v34  ;;  %v1545_v12 = vunpack.c.h.bf16 %v3599_v29  ;;  %v1481_v34 = vunpack.c.h.bf16 %v3597_v26 }
 0x11b   :  { %1758 = vmatpush.msrb.mxu2 %v1580_v16  ;;  %v1473_v29 = vunpack.c.h.bf16 %v3618_v54  ;;  %v1617_v26 = vunpack.c.h.bf16 %v3632_v33  ;;  %v1529_v61 = vunpack.c.h.bf16 %v3639_v58  ;;  %v3754_v54 = vld [vmem:[#allocation5 + $0x3e0] sm:$0xff]  ;;  %v1465_v33 = vunpack.c.h.bf16 %v3637_v41  ;;  %1766 = vmatpush.msrb.mxu3 %v1692_v25  ;;  %v3826_v25 = vld [vmem:[#allocation5 + $0x1b8] sm:$0xff] }
 0x11c   :  { %1721 = vmatpush.msrb.mxu0 %v1440_v15  ;;  %1741 = vmatpush.msrb.mxu1 %v1504_v5  ;;  %v1477_v15 = vunpack.c.h.bf16 %v3607_v37  ;;  %v1469_v37 = vunpack.c.h.bf16 %v3628_v50  ;;  %v1613_v5 = vunpack.c.h.bf16 %v3641_v49  ;;  %v1688_v3 = vunpack.c.l.bf16 %v3754_v54 }
 0x11d   :  { %1722 = vmatmul.f32.vlgmr.msrb.gmra.mxu0 %v3715_v21  ;;  %1742 = vmatmul.f32.vlgmr.msrb.gmra.mxu1 %v3713_v45  ;;  %v1609_v28 = vunpack.c.h.bf16 %v3651_v8  ;;  %v1525_v50 = vunpack.c.h.bf16 %v3649_v27  ;;  %v1461_v49 = vunpack.c.h.bf16 %v3647_v43  ;;  %v1521_v41 = vunpack.c.h.bf16 %v3658_v30 }
 0x11e   :  { %1806 = vmatpush.msra.mxu1 %v1565_v20  ;;  %1786 = vmatpush.msra.mxu0 %v1501_v47  ;;  %v3760_v20 = vld [vmem:[#allocation5 + $0x3d0] sm:$0xff]  ;;  %v1605_v47 = vunpack.c.h.bf16 %v3660_v38  ;;  %v1457_v27 = vunpack.c.h.bf16 %v3656_v39  ;;  %v1601_v16 = vunpack.c.h.bf16 %v3670_v36  ;;  %v1517_v43 = vunpack.c.h.bf16 %v3668_v1 }
 0x11f   :  { %1759 = vmatpush.msrb.mxu2 %v1576_v11  ;;  %v1684_v58 = vunpack.c.l.bf16 %v3760_v20  ;;  %1767 = vmatpush.msrb.mxu3 %v1688_v3  ;;  %v1453_v30 = vunpack.c.h.bf16 %v3666_v13  ;;  %v1513_v39 = vunpack.c.h.bf16 %v3677_v10  ;;  %v3778_v11 = vld [vmem:[#allocation5 + $0x3a0] sm:$0xff]  ;;  %v1449_v1 = vunpack.c.h.bf16 %v3675_v56  ;;  %v3833_v3 = vld [vmem:[#allocation5 + $0xb8] sm:$0xff] }
 0x120   :  { %1807 = vmatpush.msra.mxu1 %v1561_v24  ;;  %1787 = vmatpush.msra.mxu0 %v1497_v44  ;;  %v3766_v24 = vld [vmem:[#allocation5 + $0x3c0] sm:$0xff]  ;;  %v3772_v44 = vld [vmem:[#allocation5 + $0x3b0] sm:$0xff]  ;;  %v1672_v36 = vunpack.c.l.bf16 %v3778_v11  ;;  %v1509_v13 = vunpack.c.h.bf16 %v3687_v23  ;;  %v1445_v10 = vunpack.c.h.bf16 %v3685_v48  ;;  %v1589_v56 = vunpack.c.h.bf16 %v3698_v35  ;;  %v3801_v35 = vld [vmem:[#allocation5 + $0xe8] sm:$0xff] }
 0x121   :  { %1760 = vmatpush.msrb.mxu2 %v1572_v31  ;;  %v1680_v8 = vunpack.c.l.bf16 %v3766_v24  ;;  %1768 = vmatpush.msrb.mxu3 %v1684_v58  ;;  %v1676_v38 = vunpack.c.l.bf16 %v3772_v44  ;;  %v3794_v23 = vld [vmem:[#allocation5 + $0x380] sm:$0xff]  ;;  %v3837_v58 = vld [vmem:[#allocation5 + $0x1a8] sm:$0xff] }
 0x122   :  { %1808 = vmatpush.msra.mxu1 %v1557_v18  ;;  %1788 = vmatpush.msra.mxu0 %v1493_v32  ;;  %v1597_v18 = vunpack.c.h.bf16 %v3679_v52  ;;  %v1593_v32 = vunpack.c.h.bf16 %v3689_v63  ;;  %v3787_v52 = vld [vmem:[#allocation5 + $0x1f8] sm:$0xff]  ;;  %v1664_v48 = vunpack.c.l.bf16 %v3794_v23 }
 0x123   :  { %1761 = vmatpush.msrb.mxu2 %v1568_v17  ;;  %1769 = vmatpush.msrb.mxu3 %v1680_v8  ;;  %v3792_v63 = vld [vmem:[#allocation5 + $0xf8] sm:$0xff]  ;;  %v3797_v17 = vld [vmem:[#allocation5 + $0x1e8] sm:$0xff]  ;;  %v1486_v8 = vunpack.c.l.bf16 %v3833_v3 }
 0x124   :  { %1809 = vmatpush.msra.mxu1 %v1553_v60  ;;  %1789 = vmatpush.msra.mxu0 %v1489_v55  ;;  %v3784_v60 = vld [vmem:[#allocation5 + $0x390] sm:$0xff]  ;;  %v1505_v55 = vunpack.c.h.bf16 %v3696_v14 }
 0x125   :  { %1826 = vmatpush.msra.mxu2 %v1629_v62  ;;  %1770 = vmatpush.msrb.mxu3 %v1676_v38  ;;  %v1668_v31 = vunpack.c.l.bf16 %v3784_v60  ;;  %v3803_v14 = vld [vmem:[#allocation5 + $0x370] sm:$0xff]  ;;  %v1502_v62 = vunpack.c.l.bf16 %v3792_v63  ;;  %v1546_v38 = vunpack.c.l.bf16 %v3837_v58 }
 0x126   :  { %1810 = vmatpush.msra.mxu1 %v1549_v51  ;;  %1790 = vmatpush.msra.mxu0 %v1485_v53  ;;  %v1441_v51 = vunpack.c.h.bf16 %v3694_v59  ;;  %v1566_v53 = vunpack.c.l.bf16 %v3787_v52  ;;  %v1585_v59 = vunpack.c.h.bf16 %v3704_v7 }
 0x127   :  { %1827 = vmatpush.msra.mxu2 %v1625_v46  ;;  %1771 = vmatpush.msrb.mxu3 %v1672_v36  ;;  %v3810_v46 = vld [vmem:[#allocation5 + $0xd8] sm:$0xff] }
 0x128   :  { %1811 = vmatpush.msra.mxu1 %v1545_v12  ;;  %1791 = vmatpush.msra.mxu0 %v1481_v34  ;;  %v3806_v12 = vld [vmem:[#allocation5 + $0x1d8] sm:$0xff]  ;;  %v1562_v34 = vunpack.c.l.bf16 %v3797_v17 }
 0x129   :  { %1828 = vmatpush.msra.mxu2 %v1621_v4  ;;  %1772 = vmatpush.msrb.mxu3 %v1668_v31  ;;  %v3815_v4 = vld [vmem:[#allocation5 + $0x1c8] sm:$0xff]  ;;  %v1558_v7 = vunpack.c.l.bf16 %v3806_v12 }
 0x12a   :  { %1812 = vmatpush.msra.mxu1 %v1541_v19  ;;  %1792 = vmatpush.msra.mxu0 %v1477_v15  ;;  %v1660_v19 = vunpack.c.l.bf16 %v3803_v14  ;;  %v1498_v15 = vunpack.c.l.bf16 %v3801_v35 }
 0x12b   :  { %1829 = vmatpush.msra.mxu2 %v1617_v26  ;;  %1773 = vmatpush.msrb.mxu3 %v1664_v48  ;;  %v3822_v26 = vld [vmem:[#allocation5 + $0xc8] sm:$0xff] }
 0x12c   :  { %1813 = vmatpush.msra.mxu1 %v1537_v0  ;;  %1793 = vmatpush.msra.mxu0 %v1473_v29  ;;  %v1581_v0 = vunpack.c.h.bf16 %v3710_v2  ;;  %v3818_v29 = vld [vmem:[#allocation5 + $0x360] sm:$0xff]  ;;  %v3829_v2 = vld [vmem:[#allocation5 + $0x350] sm:$0xff] }
 0x12d   :  { %1830 = vmatpush.msra.mxu2 %v1613_v5  ;;  %v1577_v5 = vunpack.c.h.bf16 %v3720_v22  ;;  %1774 = vmatpush.msrb.mxu3 %v1660_v19  ;;  %v1573_v22 = vunpack.c.h.bf16 %v3727_v6 }
 0x12e   :  { %1814 = vmatpush.msra.mxu1 %v1533_v9  ;;  %1794 = vmatpush.msra.mxu0 %v1469_v37  ;;  %v1656_v9 = vunpack.c.l.bf16 %v3818_v29  ;;  %v1494_v37 = vunpack.c.l.bf16 %v3810_v46 }
 0x12f   :  { %1831 = vmatpush.msra.mxu2 %v1609_v28  ;;  %v1652_v28 = vunpack.c.l.bf16 %v3829_v2 }
 0x130   :  { %1815 = vmatpush.msra.mxu1 %v1529_v61  ;;  %1795 = vmatpush.msra.mxu0 %v1465_v33  ;;  %v1554_v61 = vunpack.c.l.bf16 %v3815_v4  ;;  %v742_v33 = vperm.slane %v3549_v42, 2  ;;  %v3843_v42 = vld [vmem:[#allocation5 + $0xa8] sm:$0xff] }
 0x131   :  { %1832 = vmatpush.msra.mxu2 %v1605_v47  ;;  %v3840_v47 = vld [vmem:[#allocation5 + $0x340] sm:$0xff]  ;;  %1775 = vmatpush.msrb.mxu3 %v1656_v9  ;;  %v1482_v36 = vunpack.c.l.bf16 %v3843_v42  ;;  %v3880_v9 = vld [vmem:[#allocation5 + $0x68] sm:$0xff] }
 0x132   :  { %1816 = vmatpush.msra.mxu1 %v1525_v50  ;;  %1796 = vmatpush.msra.mxu0 %v1461_v49  ;;  %v1490_v50 = vunpack.c.l.bf16 %v3822_v26 }
 0x133   :  { %1833 = vmatpush.msra.mxu2 %v1601_v16  ;;  %v3847_v16 = vld [vmem:[#allocation5 + $0x198] sm:$0xff]  ;;  %1776 = vmatpush.msrb.mxu3 %v1652_v28 }
 0x134   :  { %1817 = vmatpush.msra.mxu1 %v1521_v41  ;;  %1797 = vmatpush.msra.mxu0 %v1457_v27  ;;  %v1550_v41 = vunpack.c.l.bf16 %v3826_v25  ;;  %v1648_v27 = vunpack.c.l.bf16 %v3840_v47 }
 0x135   :  { %1834 = vmatpush.msra.mxu2 %v1597_v18  ;;  %v3853_v18 = vld [vmem:[#allocation5 + $0x98] sm:$0xff] }
 0x136   :  { %1818 = vmatpush.msra.mxu1 %v1517_v43  ;;  %1798 = vmatpush.msra.mxu0 %v1453_v30  ;;  %v1569_v43 = vunpack.c.h.bf16 %v3732_v40  ;;  %v3850_v30 = vld [vmem:[#allocation5 + $0x330] sm:$0xff]  ;;  %v1542_v40 = vunpack.c.l.bf16 %v3847_v16 }
 0x137   :  { %1835 = vmatpush.msra.mxu2 %v1593_v32  ;;  %v3857_v32 = vld [vmem:[#allocation5 + $0x188] sm:$0xff]  ;;  %1777 = vmatpush.msrb.mxu3 %v1648_v27 }
 0x138   :  { %1819 = vmatpush.msra.mxu1 %v1513_v39  ;;  %1799 = vmatpush.msra.mxu0 %v1449_v1  ;;  %v1644_v39 = vunpack.c.l.bf16 %v3850_v30  ;;  %v3891_v27 = vld [vmem:[#allocation5 + $0x148] sm:$0xff] }
 0x139   :  { %1836 = vmatpush.msra.mxu2 %v1589_v56  ;;  %v1478_v56 = vunpack.c.l.bf16 %v3853_v18 }
 0x13a   :  { %1820 = vmatpush.msra.mxu1 %v1509_v13  ;;  %1800 = vmatpush.msra.mxu0 %v1445_v10  ;;  %v3859_v13 = vld [vmem:[#allocation5 + $0x320] sm:$0xff]  ;;  %v3862_v10 = vld [vmem:[#allocation5 + $0x88] sm:$0xff] }
 0x13b   :  { %1837 = vmatpush.msra.mxu2 %v1585_v59  ;;  %v1045_v49 = vpop.f32.mrf.mxu2  ;;  %v1640_v31 = vunpack.c.l.bf16 %v3859_v13  ;;  %1778 = vmatpush.msrb.mxu3 %v1644_v39  ;;  %v1474_v19 = vunpack.c.l.bf16 %v3862_v10  ;;  %v1685_v39 = vunpack.c.h.bf16 %v3760_v20 }
 0x13c   :  { %1821 = vmatpush.msra.mxu1 %v1505_v55  ;;  %1801 = vmatpush.msra.mxu0 %v1441_v51  ;;  %v1046_v6 = vadd.f32 %v1045_v49, %v742_v33  ;;  %v3866_v55 = vld [vmem:[#allocation5 + $0x178] sm:$0xff]  ;;  %v3868_v51 = vld [vmem:[#allocation5 + $0x310] sm:$0xff]  ;;  %v1693_v33 = vunpack.c.h.bf16 %v3748_v57 }
 0x13d   :  { %1822 = vmatmul.f32.vlgmr.msra.gmra.mxu1 %v3713_v45  ;;  %1802 = vmatmul.f32.vlgmr.msra.gmra.mxu0 %v3715_v21  ;;  %v1636_v59 = vunpack.c.l.bf16 %v3868_v51  ;;  %v3888_v49 = vld [vmem:[#allocation5 + $0x58] sm:$0xff] }
 0x13e   :  { %1886 = vmatpush.msrb.mxu1 %v1566_v53  ;;  %1866 = vmatpush.msrb.mxu0 %v1502_v62  ;;  %v1065_v1 = vpop.f32.mrf.mxu3  ;;  %v1538_v53 = vunpack.c.l.bf16 %v3857_v32  ;;  %v3871_v62 = vld [vmem:[#allocation5 + $0x78] sm:$0xff]  ;;  %v1462_v57 = vunpack.c.l.bf16 %v3888_v49 }
 0x13f   :  { %1838 = vmatpush.msra.mxu2 %v1581_v0  ;;  %v1066_v48 = vadd.f32 %v1065_v1, %v1046_v6  ;;  %v3877_v0 = vld [vmem:[#allocation5 + $0x300] sm:$0xff]  ;;  %1779 = vmatpush.msrb.mxu3 %v1640_v31  ;;  %v3895_v6 = vld [vmem:[#allocation5 + $0x48] sm:$0xff] }
 0x140   :  { %1887 = vmatpush.msrb.mxu1 %v1562_v34  ;;  %1867 = vmatpush.msrb.mxu0 %v1498_v15  ;;  %v1085_v34 = vpop.f32.mrf.mxu0  ;;  %v3875_v15 = vld [vmem:[#allocation5 + $0x168] sm:$0xff]  ;;  %v1458_v31 = vunpack.c.l.bf16 %v3895_v6 }
 0x141   :  { %1839 = vmatpush.msra.mxu2 %v1577_v5  ;;  %v1470_v5 = vunpack.c.l.bf16 %v3871_v62  ;;  %v1086_v28 = vadd.f32 %v1085_v34, %v1066_v48  ;;  %1780 = vmatpush.msrb.mxu3 %v1636_v59  ;;  %v1681_v48 = vunpack.c.h.bf16 %v3766_v24  ;;  %v3909_v59 = vld [vmem:[#allocation5 + $0x28] sm:$0xff]  ;;  %v3912_v34 = vld [vmem:[#allocation5 + $0x118] sm:$0xff] }
 0x142   :  { %1888 = vmatpush.msrb.mxu1 %v1558_v7  ;;  %1868 = vmatpush.msrb.mxu0 %v1494_v37  ;;  %v1534_v7 = vunpack.c.l.bf16 %v3866_v55  ;;  %v1632_v37 = vunpack.c.l.bf16 %v3877_v0 }
 0x143   :  { %1840 = vmatpush.msra.mxu2 %v1573_v22  ;;  %v1105_v22 = vpop.f32.mrf.mxu1 }
 0x144   :  { %1889 = vmatpush.msrb.mxu1 %v1554_v61  ;;  %1869 = vmatpush.msrb.mxu0 %v1490_v50  ;;  %v3884_v61 = vld [vmem:[#allocation5 + $0x158] sm:$0xff]  ;;  %v1530_v50 = vunpack.c.l.bf16 %v3875_v15  ;;  %v1106_v1 = vadd.f32 %v1105_v22, %v1086_v28  ;;  %v3919_v28 = vld [vmem:[#allocation5 + $0x108] sm:$0xff]  ;;  %v1510_v22 = vunpack.c.l.bf16 %v3912_v34 }
 0x145   :  { %1841 = vmatpush.msra.mxu2 %v1569_v43  ;;  %v1526_v43 = vunpack.c.l.bf16 %v3884_v61  ;;  %1781 = vmatpush.msrb.mxu3 %v1632_v37 }
 0x146   :  { %1890 = vmatpush.msrb.mxu1 %v1550_v41  ;;  %1870 = vmatpush.msrb.mxu0 %v1486_v8  ;;  %v1466_v41 = vunpack.c.l.bf16 %v3880_v9  ;;  %v1689_v8 = vunpack.c.h.bf16 %v3754_v54  ;;  %v1125_v54 = vpop.f32.mrf.mxu2 }
 0x147   :  { %1846 = vmatpush.msra.mxu3 %v1693_v33  ;;  %v1145_v24 = vpop.f32.mrf.mxu3  ;;  %v1450_v33 = vunpack.c.l.bf16 %v3909_v59 }
 0x148   :  { %1891 = vmatpush.msrb.mxu1 %v1546_v38  ;;  %1871 = vmatpush.msrb.mxu0 %v1482_v36  ;;  %v3898_v38 = vld [vmem:[#allocation5 + $0x138] sm:$0xff]  ;;  %v1522_v36 = vunpack.c.l.bf16 %v3891_v27 }
 0x149   :  { %1847 = vmatpush.msra.mxu3 %v1689_v8  ;;  %v1669_v8 = vunpack.c.h.bf16 %v3784_v60 }
 0x14a   :  { %1892 = vmatpush.msrb.mxu1 %v1542_v40  ;;  %1872 = vmatpush.msrb.mxu0 %v1478_v56  ;;  %v3902_v40 = vld [vmem:[#allocation5 + $0x38] sm:$0xff]  ;;  %v3905_v56 = vld [vmem:[#allocation5 + $0x128] sm:$0xff] }
 0x14b   :  { %v1454_v20 = vunpack.c.l.bf16 %v3902_v40  ;;  %1848 = vmatpush.msra.mxu3 %v1685_v39  ;;  %v1514_v37 = vunpack.c.l.bf16 %v3905_v56 }
 0x14c   :  { %1893 = vmatpush.msrb.mxu1 %v1538_v53  ;;  %1873 = vmatpush.msrb.mxu0 %v1474_v19  ;;  %v1518_v53 = vunpack.c.l.bf16 %v3898_v38  ;;  %v1677_v19 = vunpack.c.h.bf16 %v3772_v44 }
 0x14d   :  { %1849 = vmatpush.msra.mxu3 %v1681_v48  ;;  %v3933_v48 = vld [vmem:[#allocation5 + $0x2e8] sm:$0xff] }
 0x14e   :  { %1894 = vmatpush.msrb.mxu1 %v1534_v7  ;;  %1874 = vmatpush.msrb.mxu0 %v1470_v5  ;;  %v1126_v7 = vadd.f32 %v1125_v54, %v1106_v1  ;;  %v3916_v5 = vld [vmem:[#allocation5 + $0x18] sm:$0xff] }
 0x14f   :  { %v1446_v44 = vunpack.c.l.bf16 %v3916_v5  ;;  %1850 = vmatpush.msra.mxu3 %v1677_v19  ;;  %v1499_v19 = vunpack.c.h.bf16 %v3801_v35  ;;  %v1661_v35 = vunpack.c.h.bf16 %v3803_v14 }
 0x150   :  { %1895 = vmatpush.msrb.mxu1 %v1530_v50  ;;  %1875 = vmatpush.msrb.mxu0 %v1466_v41  ;;  %v1673_v50 = vunpack.c.h.bf16 %v3778_v11  ;;  %v3923_v41 = vld [vmem:[#allocation5 + $0x8] sm:$0xff]  ;;  %v3929_v11 = vld [vmem:[#allocation5 + $0x2f8] sm:$0xff] }
 0x151   :  { %v1442_v39 = vunpack.c.l.bf16 %v3923_v41 }
 0x152   :  { %1896 = vmatpush.msrb.mxu1 %v1526_v43  ;;  %1876 = vmatpush.msrb.mxu0 %v1462_v57  ;;  %v1146_v43 = vadd.f32 %v1145_v24, %v1126_v7  ;;  %v1506_v57 = vunpack.c.l.bf16 %v3919_v28  ;;  %v1665_v7 = vunpack.c.h.bf16 %v3794_v23  ;;  %v3949_v24 = vld [vmem:[#allocation5 + $0x2c8] sm:$0xff]  ;;  %v1555_v23 = vunpack.c.h.bf16 %v3815_v4 }
 0x153   :  { %1851 = vmatpush.msra.mxu3 %v1673_v50  ;;  %v3955_v50 = vld [vmem:[#allocation5 + $0x2b8] sm:$0xff]  ;;  %v1618_v14 = vunpack.c.l.bf16 %v3949_v24  ;;  %v3961_v4 = vld [vmem:[#allocation5 + $0x2a8] sm:$0xff] }
 0x154   :  { %1897 = vmatpush.msrb.mxu1 %v1522_v36  ;;  %1877 = vmatpush.msrb.mxu0 %v1458_v31  ;;  %v1567_v36 = vunpack.c.h.bf16 %v3787_v52  ;;  %v1503_v31 = vunpack.c.h.bf16 %v3792_v63  ;;  %v3941_v52 = vld [vmem:[#allocation5 + $0x2d8] sm:$0xff]  ;;  %v1559_v63 = vunpack.c.h.bf16 %v3806_v12  ;;  %v1491_v12 = vunpack.c.h.bf16 %v3822_v26 }
 0x155   :  { %1852 = vmatpush.msra.mxu3 %v1669_v8  ;;  %v1547_v26 = vunpack.c.h.bf16 %v3837_v58  ;;  %v1614_v8 = vunpack.c.l.bf16 %v3955_v50  ;;  %v3973_v58 = vld [vmem:[#allocation5 + $0x288] sm:$0xff] }
 0x156   :  { %1898 = vmatpush.msrb.mxu1 %v1518_v53  ;;  %1878 = vmatpush.msrb.mxu0 %v1454_v20  ;;  %v1563_v53 = vunpack.c.h.bf16 %v3797_v17  ;;  %v1630_v20 = vunpack.c.l.bf16 %v3929_v11  ;;  %v1495_v17 = vunpack.c.h.bf16 %v3810_v46  ;;  %v1657_v46 = vunpack.c.h.bf16 %v3818_v29 }
 0x157   :  { %1853 = vmatpush.msra.mxu3 %v1665_v7  ;;  %v1483_v29 = vunpack.c.h.bf16 %v3843_v42  ;;  %v1649_v42 = vunpack.c.h.bf16 %v3840_v47  ;;  %v1602_v47 = vunpack.c.l.bf16 %v3973_v58  ;;  %v1463_v7 = vunpack.c.h.bf16 %v3888_v49 }
 0x158   :  { %1899 = vmatpush.msrb.mxu1 %v1514_v37  ;;  %1879 = vmatpush.msrb.mxu0 %v1450_v33  ;;  %v1165_v1 = vpop.f32.mrf.mxu0  ;;  %v1626_v37 = vunpack.c.l.bf16 %v3933_v48  ;;  %v1622_v33 = vunpack.c.l.bf16 %v3941_v52  ;;  %v1519_v49 = vunpack.c.h.bf16 %v3898_v38  ;;  %v1451_v38 = vunpack.c.h.bf16 %v3909_v59 }
 0x159   :  { %v1166_v54 = vadd.f32 %v1165_v1, %v1146_v43  ;;  %1854 = vmatpush.msra.mxu3 %v1661_v35  ;;  %v3966_v43 = vld [vmem:[#allocation5 + $0x298] sm:$0xff]  ;;  %v1539_v1 = vunpack.c.h.bf16 %v3857_v32  ;;  %v3985_v32 = vld [vmem:[#allocation5 + $0x268] sm:$0xff]  ;;  %v1507_v59 = vunpack.c.h.bf16 %v3919_v28 }
 0x15a   :  { %1900 = vmatpush.msrb.mxu1 %v1510_v22  ;;  %1880 = vmatpush.msrb.mxu0 %v1446_v44  ;;  %v1551_v22 = vunpack.c.h.bf16 %v3826_v25  ;;  %v1487_v44 = vunpack.c.h.bf16 %v3833_v3  ;;  %v1653_v25 = vunpack.c.h.bf16 %v3829_v2  ;;  %v1543_v3 = vunpack.c.h.bf16 %v3847_v16 }
 0x15b   :  { %v3935_v60 = vmax.f32 %v1166_v54, 0.0  ;;  %1855 = vmatpush.msra.mxu3 %v1657_v46  ;;  %v1606_v2 = vunpack.c.l.bf16 %v3966_v43  ;;  %v1475_v16 = vunpack.c.h.bf16 %v3862_v10  ;;  %v1535_v54 = vunpack.c.h.bf16 %v3866_v55  ;;  %v3991_v55 = vld [vmem:[#allocation5 + $0x258] sm:$0xff] }
 0x15c   :  { %1901 = vmatpush.msrb.mxu1 %v1506_v57  ;;  %1881 = vmatpush.msrb.mxu0 %v1442_v39  ;;  %v1610_v57 = vunpack.c.l.bf16 %v3961_v4  ;;  %v1479_v39 = vunpack.c.h.bf16 %v3853_v18  ;;  %v1645_v18 = vunpack.c.h.bf16 %v3850_v30  ;;  %v1531_v10 = vunpack.c.h.bf16 %v3875_v15  ;;  %v3997_v15 = vld [vmem:[#allocation5 + $0x248] sm:$0xff] }
 0x15d   :  { %1902 = vmatmul.f32.vlgmr.msrb.gmra.mxu1 %v3713_v45  ;;  %1882 = vmatmul.f32.vlgmr.msrb.gmra.mxu0 %v3715_v21  ;;  %v1511_v46 = vunpack.c.h.bf16 %v3912_v34 }
 0x15e   :  { %1966 = vmatpush.msra.mxu1 %v1567_v36  ;;  %1946 = vmatpush.msra.mxu0 %v1503_v31  ;;  %v3979_v36 = vld [vmem:[#allocation5 + $0x278] sm:$0xff]  ;;  %v1471_v31 = vunpack.c.h.bf16 %v3871_v62  ;;  %v1527_v62 = vunpack.c.h.bf16 %v3884_v61 }
 0x15f   :  { %1762 = vmatmul.f32.vlgmr.msrb.gmra.mxu2 %v3935_v60  ;;  %1856 = vmatpush.msra.mxu3 %v1653_v25  ;;  %v1598_v30 = vunpack.c.l.bf16 %v3979_v36  ;;  %v4003_v61 = vld [vmem:[#allocation5 + $0x238] sm:$0xff]  ;;  %v1443_v25 = vunpack.c.h.bf16 %v3923_v41  ;;  %v1627_v41 = vunpack.c.h.bf16 %v3933_v48  ;;  %v4037_v48 = vld [vmem:[#allocation5 + $0x3e8] sm:$0xff] }
 0x160   :  { %1967 = vmatpush.msra.mxu1 %v1563_v53  ;;  %1906 = vmatpush.msrb.mxu2 %v1630_v20  ;;  %v1641_v53 = vunpack.c.h.bf16 %v3859_v13  ;;  %v1467_v20 = vunpack.c.h.bf16 %v3880_v9  ;;  %v1594_v13 = vunpack.c.l.bf16 %v3985_v32  ;;  %v1523_v9 = vunpack.c.h.bf16 %v3891_v27  ;;  %v2434_v27 = vld [vmem:[%s4194_s2] sm:$0xf] }
 0x161   :  { %1947 = vmatpush.msra.mxu0 %v1499_v19  ;;  %1857 = vmatpush.msra.mxu3 %v1649_v42  ;;  %v1637_v19 = vunpack.c.h.bf16 %v3868_v51  ;;  %v1590_v51 = vunpack.c.l.bf16 %v3991_v55  ;;  %v743_v35 = vperm.slane %v2434_v27, 3  ;;  %v1421_v27 = vld [vmem:[#allocation5 + $0x368] sm:$0xff] }
 0x162   :  { %1968 = vmatpush.msra.mxu1 %v1559_v63  ;;  %1907 = vmatpush.msrb.mxu2 %v1626_v37  ;;  %v1633_v63 = vunpack.c.h.bf16 %v3877_v0  ;;  %v1459_v37 = vunpack.c.h.bf16 %v3895_v6  ;;  %v1455_v0 = vunpack.c.h.bf16 %v3902_v40  ;;  %v1515_v6 = vunpack.c.h.bf16 %v3905_v56  ;;  %v4021_v56 = vld [vmem:[#allocation5 + $0x208] sm:$0xff] }
 0x163   :  { %1948 = vmatpush.msra.mxu0 %v1495_v17  ;;  %1858 = vmatpush.msra.mxu3 %v1645_v18  ;;  %v1586_v17 = vunpack.c.l.bf16 %v3997_v15 }
 0x164   :  { %1969 = vmatpush.msra.mxu1 %v1555_v23  ;;  %1908 = vmatpush.msrb.mxu2 %v1622_v33  ;;  %v4011_v23 = vld [vmem:[#allocation5 + $0x228] sm:$0xff]  ;;  %v1582_v33 = vunpack.c.l.bf16 %v4003_v61 }
 0x165   :  { %1949 = vmatpush.msra.mxu0 %v1491_v12  ;;  %1859 = vmatpush.msra.mxu3 %v1641_v53  ;;  %v4016_v12 = vld [vmem:[#allocation5 + $0x218] sm:$0xff] }
 0x166   :  { %1970 = vmatpush.msra.mxu1 %v1551_v22  ;;  %1909 = vmatpush.msrb.mxu2 %v1618_v14  ;;  %v1578_v22 = vunpack.c.l.bf16 %v4011_v23 }
 0x167   :  { %1950 = vmatpush.msra.mxu0 %v1487_v44  ;;  %1842 = vmatmul.f32.vlgmr.msra.gmra.mxu2 %v3935_v60  ;;  %v1447_v44 = vunpack.c.h.bf16 %v3916_v5 }
 0x168   :  { %1971 = vmatpush.msra.mxu1 %v1547_v26  ;;  %1910 = vmatpush.msrb.mxu2 %v1614_v8  ;;  %v1574_v8 = vunpack.c.l.bf16 %v4016_v12 }
 0x169   :  { %1951 = vmatpush.msra.mxu0 %v1483_v29  ;;  %1860 = vmatpush.msra.mxu3 %v1637_v19  ;;  %v1603_v19 = vunpack.c.h.bf16 %v3973_v58 }
 0x16a   :  { %1972 = vmatpush.msra.mxu1 %v1543_v3  ;;  %1911 = vmatpush.msrb.mxu2 %v1610_v57  ;;  %v1570_v3 = vunpack.c.l.bf16 %v4021_v56  ;;  %v1631_v57 = vunpack.c.h.bf16 %v3929_v11  ;;  %v1619_v11 = vunpack.c.h.bf16 %v3949_v24  ;;  %v1690_v24 = vunpack.c.l.bf16 %v4037_v48 }
 0x16b   :  { %1952 = vmatpush.msra.mxu0 %v1479_v39  ;;  %1861 = vmatpush.msra.mxu3 %v1633_v63  ;;  %v1595_v63 = vunpack.c.h.bf16 %v3985_v32 }
 0x16c   :  { %1973 = vmatpush.msra.mxu1 %v1539_v1  ;;  %1912 = vmatpush.msrb.mxu2 %v1606_v2  ;;  %v1623_v2 = vunpack.c.h.bf16 %v3941_v52  ;;  %v1611_v52 = vunpack.c.h.bf16 %v3961_v4 }
 0x16d   :  { %1953 = vmatpush.msra.mxu0 %v1475_v16 }
 0x16e   :  { %1974 = vmatpush.msra.mxu1 %v1535_v54  ;;  %1913 = vmatpush.msrb.mxu2 %v1602_v47  ;;  %v1615_v47 = vunpack.c.h.bf16 %v3955_v50 }
 0x16f   :  { %1954 = vmatpush.msra.mxu0 %v1471_v31 }
 0x170   :  { %1975 = vmatpush.msra.mxu1 %v1531_v10  ;;  %1914 = vmatpush.msrb.mxu2 %v1598_v30  ;;  %v4043_v10 = vld [vmem:[#allocation5 + $0x3d8] sm:$0xff]  ;;  %v1607_v30 = vunpack.c.h.bf16 %v3966_v43 }
 0x171   :  { %1955 = vmatpush.msra.mxu0 %v1467_v20  ;;  %v4048_v20 = vld [vmem:[#allocation5 + $0x3c8] sm:$0xff]  ;;  %v1686_v50 = vunpack.c.l.bf16 %v4043_v10 }
 0x172   :  { %1976 = vmatpush.msra.mxu1 %v1527_v62  ;;  %1915 = vmatpush.msrb.mxu2 %v1594_v13  ;;  %v4052_v62 = vld [vmem:[#allocation5 + $0x3b8] sm:$0xff]  ;;  %v1682_v4 = vunpack.c.l.bf16 %v4048_v20  ;;  %v1599_v13 = vunpack.c.h.bf16 %v3979_v36 }
 0x173   :  { %1956 = vmatpush.msra.mxu0 %v1463_v7  ;;  %v4056_v7 = vld [vmem:[#allocation5 + $0x3a8] sm:$0xff]  ;;  %v1678_v43 = vunpack.c.l.bf16 %v4052_v62 }
 0x174   :  { %1977 = vmatpush.msra.mxu1 %v1523_v9  ;;  %1916 = vmatpush.msrb.mxu2 %v1590_v51  ;;  %v4060_v9 = vld [vmem:[#allocation5 + $0x398] sm:$0xff]  ;;  %v1674_v58 = vunpack.c.l.bf16 %v4056_v7  ;;  %v1591_v51 = vunpack.c.h.bf16 %v3991_v55 }
 0x175   :  { %1957 = vmatpush.msra.mxu0 %v1459_v37  ;;  %v1185_v40 = vpop.f32.mrf.mxu1  ;;  %v1425_v37 = vld [vmem:[#allocation5 + $0x388] sm:$0xff]  ;;  %v1670_v36 = vunpack.c.l.bf16 %v4060_v9  ;;  %v1419_v55 = vld [vmem:[#allocation5 + $0x358] sm:$0xff] }
 0x176   :  { %1978 = vmatpush.msra.mxu1 %v1519_v49  ;;  %1917 = vmatpush.msrb.mxu2 %v1586_v17  ;;  %v1186_v14 = vadd.f32 %v1185_v40, %v743_v35  ;;  %v1205_v26 = vpop.f32.mrf.mxu2  ;;  %v1587_v49 = vunpack.c.h.bf16 %v3997_v15  ;;  %v1423_v17 = vld [vmem:[#allocation5 + $0x378] sm:$0xff]  ;;  %v1666_v32 = vunpack.c.l.bf16 %v1425_v37  ;;  %v1417_v40 = vld [vmem:[#allocation5 + $0x348] sm:$0xff]  ;;  %v1654_v15 = vunpack.c.l.bf16 %v1419_v55 }
 0x177   :  { %1958 = vmatpush.msra.mxu0 %v1455_v0  ;;  %v1583_v0 = vunpack.c.h.bf16 %v4003_v61  ;;  %v1662_v35 = vunpack.c.l.bf16 %v1423_v17  ;;  %v1650_v61 = vunpack.c.l.bf16 %v1417_v40 }
 0x178   :  { %1979 = vmatpush.msra.mxu1 %v1515_v6  ;;  %1918 = vmatpush.msrb.mxu2 %v1582_v33  ;;  %v1206_v29 = vadd.f32 %v1205_v26, %v1186_v14  ;;  %v1579_v6 = vunpack.c.h.bf16 %v4011_v23  ;;  %v1658_v33 = vunpack.c.l.bf16 %v1421_v27  ;;  %v1413_v14 = vld [vmem:[#allocation5 + $0x328] sm:$0xff]  ;;  %v1411_v23 = vld [vmem:[#allocation5 + $0x318] sm:$0xff] }
 0x179   :  { %1959 = vmatpush.msra.mxu0 %v1451_v38  ;;  %v1225_v34 = vpop.f32.mrf.mxu3  ;;  %v1575_v38 = vunpack.c.h.bf16 %v4016_v12  ;;  %v1642_v26 = vunpack.c.l.bf16 %v1413_v14  ;;  %v1409_v12 = vld [vmem:[#allocation5 + $0x308] sm:$0xff] }
 0x17a   :  { %1980 = vmatpush.msra.mxu1 %v1511_v46  ;;  %1919 = vmatpush.msrb.mxu2 %v1578_v22  ;;  %v1226_v5 = vadd.f32 %v1225_v34, %v1206_v29  ;;  %v1571_v46 = vunpack.c.h.bf16 %v4021_v56  ;;  %v1415_v22 = vld [vmem:[#allocation5 + $0x338] sm:$0xff]  ;;  %v1691_v29 = vunpack.c.h.bf16 %v4037_v48  ;;  %v1679_v34 = vunpack.c.h.bf16 %v4052_v62 }
 0x17b   :  { %1960 = vmatpush.msra.mxu0 %v1447_v44  ;;  %v1646_v44 = vunpack.c.l.bf16 %v1415_v22 }
 0x17c   :  { %1981 = vmatpush.msra.mxu1 %v1507_v59  ;;  %1920 = vmatpush.msrb.mxu2 %v1574_v8  ;;  %v1245_v28 = vpop.f32.mrf.mxu0  ;;  %v1638_v59 = vunpack.c.l.bf16 %v1411_v23  ;;  %v1634_v8 = vunpack.c.l.bf16 %v1409_v12 }
 0x17d   :  { %1961 = vmatpush.msra.mxu0 %v1443_v25  ;;  %1982 = vmatmul.f32.vlgmr.msra.gmra.mxu1 %v3713_v45  ;;  %v1246_v39 = vadd.f32 %v1245_v28, %v1226_v5  ;;  %v4034_v45 = vld [vmem:[#allocation5 + $0x3f8] sm:$0xff]  ;;  %v1687_v25 = vunpack.c.h.bf16 %v4043_v10  ;;  %v1671_v5 = vunpack.c.h.bf16 %v4060_v9  ;;  %v1663_v28 = vunpack.c.h.bf16 %v1423_v17 }
 0x17e   :  { %1962 = vmatmul.f32.vlgmr.msra.gmra.mxu0 %v3715_v21  ;;  %1921 = vmatpush.msrb.mxu2 %v1570_v3  ;;  %v1265_v42 = vpop.f32.mrf.mxu1  ;;  %v1694_v31 = vunpack.c.l.bf16 %v4034_v45  ;;  %v1695_v56 = vunpack.c.h.bf16 %v4034_v45  ;;  %v1675_v3 = vunpack.c.h.bf16 %v4056_v7  ;;  %v2395_v45 = vld [vmem:[%s4197_s5 + $0x30] sm:$0xff]  }
 0x17f   :  { %1922 = vmatmul.f32.vlgmr.msrb.gmra.mxu2 %v3935_v60  ;;  %v1266_v1 = vadd.f32 %v1265_v42, %v1246_v39  ;;  %v1659_v39 = vunpack.c.h.bf16 %v1421_v27  ;;  %v1651_v42 = vunpack.c.h.bf16 %v1417_v40  ;;  %v2288_v48 = vunpack.c.l.bf16 %v2395_v45  ;;  %v2263_v40 = vld [vmem:[%s4197_s5] sm:$0xff]  }
 0x180   :  { %1986 = vmatpush.msra.mxu2 %v1631_v57  ;;  %v1285_v16 = vpop.f32.mrf.mxu2  ;;  %v1667_v57 = vunpack.c.h.bf16 %v1425_v37  ;;  %v2391_v37 = vld [vmem:[%s4197_s5 + $0x10] sm:$0xff]  }
 0x181   :  { %v1286_v18 = vadd.f32 %v1285_v16, %v1266_v1  ;;  %v1647_v1 = vunpack.c.h.bf16 %v1415_v22  ;;  %v1639_v16 = vunpack.c.h.bf16 %v1411_v23  ;;  %v2272_v27 = vunpack.c.l.bf16 %v2391_v37  ;;  %v2398_v23 = vld [vmem:[%s4197_s5 + $0x48] sm:$0xff]  }
 0x182   :  { %1987 = vmatpush.msra.mxu2 %v1627_v41  ;;  %v1305_v54 = vpop.f32.mrf.mxu3  ;;  %v1655_v41 = vunpack.c.h.bf16 %v1419_v55 }
 0x183   :  { %v1306_v21 = vadd.f32 %v1305_v54, %v1286_v18  ;;  %v1635_v18 = vunpack.c.h.bf16 %v1409_v12  ;;  %v2301_v12 = vunpack.c.h.bf16 %v2398_v23 }
 0x184   :  { %1988 = vmatpush.msra.mxu2 %v1623_v2  ;;  %v1643_v2 = vunpack.c.h.bf16 %v1413_v14 }
 0x185   :  { %v4040_v53 = vmax.f32 %v1306_v21, 0.0 }
 0x186   :  { %1989 = vmatpush.msra.mxu2 %v1619_v11  ;;  %v2396_v11 = vld [vmem:[%s4197_s5 + $0x38] sm:$0xff]  }
 0x187   :  { %1782 = vmatmul.f32.vlgmr.msrb.gmra.mxu3 %v4040_v53  ;;  %v2293_v54 = vunpack.c.h.bf16 %v2396_v11  ;;  %v2292_v21 = vunpack.c.l.bf16 %v2396_v11 }
 0x188   :  { %1990 = vmatpush.msra.mxu2 %v1615_v47  ;;  %1926 = vmatpush.msrb.mxu3 %v1694_v31  ;;  %v2289_v47 = vunpack.c.h.bf16 %v2395_v45  ;;  %v2394_v31 = vld [vmem:[%s4197_s5 + $0x28] sm:$0xff]  }
 0x189   :  { %2162 = vmatpush.msrb.mxu0 %v2293_v54  ;;  %v2407_v54 = vld [vmem:[%s4197_s5 + $0x90] sm:$0xff]  }
 0x18a   :  { %1991 = vmatpush.msra.mxu2 %v1611_v52  ;;  %1927 = vmatpush.msrb.mxu3 %v1690_v24  ;;  %v2285_v52 = vunpack.c.h.bf16 %v2394_v31  ;;  %v2284_v24 = vunpack.c.l.bf16 %v2394_v31  ;;  %v2406_v31 = vld [vmem:[%s4197_s5 + $0x88] sm:$0xff]  }
 0x18b   :  { %2163 = vmatpush.msrb.mxu0 %v2292_v21  ;;  %v2337_v21 = vunpack.c.h.bf16 %v2407_v54 }
 0x18c   :  { %1992 = vmatpush.msra.mxu2 %v1607_v30  ;;  %1928 = vmatpush.msrb.mxu3 %v1686_v50  ;;  %v2403_v50 = vld [vmem:[%s4197_s5 + $0x70] sm:$0xff]  }
 0x18d   :  { %2164 = vmatpush.msrb.mxu0 %v2289_v47  ;;  %v2320_v7 = vunpack.c.l.bf16 %v2403_v50 }
 0x18e   :  { %1993 = vmatpush.msra.mxu2 %v1603_v19  ;;  %1929 = vmatpush.msrb.mxu3 %v1682_v4  ;;  %v2392_v19 = vld [vmem:[%s4197_s5 + $0x18] sm:$0xff]   ;;  %v2321_v4 = vunpack.c.h.bf16 %v2403_v50 }
 0x18f   :  { %1862 = vmatmul.f32.vlgmr.msra.gmra.mxu3 %v4040_v53  ;;  %2165 = vmatpush.msrb.mxu0 %v2288_v48 }
 0x190   :  { %1994 = vmatpush.msra.mxu2 %v1599_v13  ;;  %1930 = vmatpush.msrb.mxu3 %v1678_v43  ;;  %v2402_v43 = vld [vmem:[%s4197_s5 + $0x68] sm:$0xff]  }
 0x191   :  { %2166 = vmatpush.msrb.mxu0 %v2285_v52  ;;  %v2317_v9 = vunpack.c.h.bf16 %v2402_v43  ;;  %v2336_v52 = vunpack.c.l.bf16 %v2407_v54 }
 0x192   :  { %1995 = vmatpush.msra.mxu2 %v1595_v63  ;;  %1931 = vmatpush.msrb.mxu3 %v1674_v58  ;;  %v2277_v63 = vunpack.c.h.bf16 %v2392_v19  ;;  %v2276_v58 = vunpack.c.l.bf16 %v2392_v19 }
 0x193   :  { %2167 = vmatpush.msrb.mxu0 %v2284_v24 }
 0x194   :  { %1996 = vmatpush.msra.mxu2 %v1591_v51  ;;  %1932 = vmatpush.msrb.mxu3 %v1670_v36  ;;  %v2316_v51 = vunpack.c.l.bf16 %v2402_v43  ;;  %v2401_v36 = vld [vmem:[%s4197_s5 + $0x60] sm:$0xff]  }
 0x195   :  { %v2313_v17 = vunpack.c.h.bf16 %v2401_v36 }
 0x196   :  { %1997 = vmatpush.msra.mxu2 %v1587_v49  ;;  %1933 = vmatpush.msrb.mxu3 %v1666_v32  ;;  %v2273_v49 = vunpack.c.h.bf16 %v2391_v37  ;;  %v2390_v32 = vld [vmem:[%s4197_s5 + $0x8] sm:$0xff]  }
 0x198   :  { %1998 = vmatpush.msra.mxu2 %v1583_v0  ;;  %1934 = vmatpush.msrb.mxu3 %v1662_v35  ;;  %v2400_v0 = vld [vmem:[%s4197_s5 + $0x58] sm:$0xff]   ;;  %v2312_v35 = vunpack.c.l.bf16 %v2401_v36 }
 0x199   :  { %v2309_v55 = vunpack.c.h.bf16 %v2400_v0  ;;  %v2420_v36 = vld [vmem:[%s4197_s5 + $0xf8] sm:$0xff]  }
 0x19a   :  { %1999 = vmatpush.msra.mxu2 %v1579_v6  ;;  %1935 = vmatpush.msrb.mxu3 %v1658_v33  ;;  %v2269_v6 = vunpack.c.h.bf16 %v2390_v32  ;;  %v2268_v33 = vunpack.c.l.bf16 %v2390_v32  ;;  %v1743_v47 = vpop.f32.mrf.mxu1  ;;  %v2388_v32 = vunpack.c.l.bf16 %v2420_v36 }
 0x19c   :  { %2000 = vmatpush.msra.mxu2 %v1575_v38  ;;  %1936 = vmatpush.msrb.mxu3 %v1654_v15  ;;  %v2308_v38 = vunpack.c.l.bf16 %v2400_v0  ;;  %v2399_v15 = vld [vmem:[%s4197_s5 + $0x50] sm:$0xff]  }
 0x19d   :  { %v2305_v22 = vunpack.c.h.bf16 %v2399_v15  ;;  %v2304_v14 = vunpack.c.l.bf16 %v2399_v15  ;;  %v2417_v15 = vld [vmem:[%s4197_s5 + $0xe0] sm:$0xff]  }
 0x19e   :  { %2001 = vmatpush.msra.mxu2 %v1571_v46  ;;  %1937 = vmatpush.msrb.mxu3 %v1650_v61  ;;  %v2265_v46 = vunpack.c.h.bf16 %v2263_v40  ;;  %v2264_v61 = vunpack.c.l.bf16 %v2263_v40 }
 0x19f   :  { %2002 = vmatmul.f32.vlgmr.msra.gmra.mxu2 %v3935_v60  ;;  %v1683_v60 = vunpack.c.h.bf16 %v4048_v20  ;;  %v2393_v20 = vld [vmem:[%s4197_s5 + $0x20] sm:$0xff]  }
 0x1a0   :  { %1938 = vmatpush.msrb.mxu3 %v1646_v44  ;;  %v2281_v62 = vunpack.c.h.bf16 %v2393_v20  ;;  %v2280_v13 = vunpack.c.l.bf16 %v2393_v20  ;;  %v2412_v44 = vld [vmem:[%s4197_s5 + $0xb8] sm:$0xff]  }
 0x1a2   :  { %1939 = vmatpush.msrb.mxu3 %v1642_v26  ;;  %2168 = vmatpush.msrb.mxu0 %v2281_v62  ;;  %v2357_v26 = vunpack.c.h.bf16 %v2412_v44 }
 0x1a4   :  { %1940 = vmatpush.msrb.mxu3 %v1638_v59  ;;  %2169 = vmatpush.msrb.mxu0 %v2280_v13  ;;  %v2356_v59 = vunpack.c.l.bf16 %v2412_v44  ;;  %v2332_v13 = vunpack.c.l.bf16 %v2406_v31 }
 0x1a5   :  { %2202 = vmatpush.msrb.mxu2 %v2357_v26  ;;  %v2415_v26 = vld [vmem:[%s4197_s5 + $0xd0] sm:$0xff]  }
 0x1a6   :  { %1941 = vmatpush.msrb.mxu3 %v1634_v8  ;;  %2170 = vmatpush.msrb.mxu0 %v2277_v63  ;;  %v2300_v8 = vunpack.c.l.bf16 %v2398_v23 }
 0x1a7   :  { %1942 = vmatmul.f32.vlgmr.msrb.gmra.mxu3 %v4040_v53  ;;  %2203 = vmatpush.msrb.mxu2 %v2356_v59 }
 0x1a8   :  { %2006 = vmatpush.msra.mxu3 %v1695_v56  ;;  %2171 = vmatpush.msrb.mxu0 %v2276_v58  ;;  %v2411_v56 = vld [vmem:[%s4197_s5 + $0xb0] sm:$0xff]  }
 0x1aa   :  { %2007 = vmatpush.msra.mxu3 %v1691_v29  ;;  %2172 = vmatpush.msrb.mxu0 %v2273_v49  ;;  %v2353_v29 = vunpack.c.h.bf16 %v2411_v56  ;;  %v2419_v49 = vld [vmem:[%s4197_s5 + $0xf0] sm:$0xff]  }
 0x1ac   :  { %2008 = vmatpush.msra.mxu3 %v1687_v25  ;;  %2173 = vmatpush.msrb.mxu0 %v2272_v27  ;;  %v2397_v25 = vld [vmem:[%s4197_s5 + $0x40] sm:$0xff]  }
 0x1ad   :  { %2204 = vmatpush.msrb.mxu2 %v2353_v29  ;;  %v2414_v29 = vld [vmem:[%s4197_s5 + $0xc8] sm:$0xff]  }
 0x1ae   :  { %2009 = vmatpush.msra.mxu3 %v1683_v60  ;;  %2174 = vmatpush.msrb.mxu0 %v2269_v6  ;;  %v2352_v60 = vunpack.c.l.bf16 %v2411_v56 }
 0x1b0   :  { %2010 = vmatpush.msra.mxu3 %v1679_v34  ;;  %2175 = vmatpush.msrb.mxu0 %v2268_v33  ;;  %v2297_v34 = vunpack.c.h.bf16 %v2397_v25  ;;  %v2384_v33 = vunpack.c.l.bf16 %v2419_v49 }
 0x1b1   :  { %2205 = vmatpush.msrb.mxu2 %v2352_v60 }
 0x1b2   :  { %2011 = vmatpush.msra.mxu3 %v1675_v3  ;;  %2176 = vmatpush.msrb.mxu0 %v2265_v46  ;;  %v2296_v3 = vunpack.c.l.bf16 %v2397_v25  ;;  %v2368_v25 = vunpack.c.l.bf16 %v2415_v26 }
 0x1b4   :  { %2012 = vmatpush.msra.mxu3 %v1671_v5  ;;  %2177 = vmatpush.msrb.mxu0 %v2264_v61  ;;  %v2410_v5 = vld [vmem:[%s4197_s5 + $0xa8] sm:$0xff]   ;;  %v2416_v61 = vld [vmem:[%s4197_s5 + $0xd8] sm:$0xff]  }
 0x1b5   :  { %v2373_v44 = vunpack.c.h.bf16 %v2416_v61  ;;  %v2372_v59 = vunpack.c.l.bf16 %v2416_v61 }
 0x1b6   :  { %2013 = vmatpush.msra.mxu3 %v1667_v57  ;;  %v2349_v57 = vunpack.c.h.bf16 %v2410_v5 }
 0x1b8   :  { %2014 = vmatpush.msra.mxu3 %v1663_v28  ;;  %v2409_v28 = vld [vmem:[%s4197_s5 + $0xa0] sm:$0xff]   ;;  %2206 = vmatpush.msrb.mxu2 %v2349_v57 }
 0x1ba   :  { %2015 = vmatpush.msra.mxu3 %v1659_v39  ;;  %v2348_v39 = vunpack.c.l.bf16 %v2410_v5  ;;  %v1823_v58 = vpop.f32.mrf.mxu1 }
 0x1bc   :  { %2016 = vmatpush.msra.mxu3 %v1655_v41  ;;  %v2345_v41 = vunpack.c.h.bf16 %v2409_v28  ;;  %2207 = vmatpush.msrb.mxu2 %v2348_v39  ;;  %v2364_v39 = vunpack.c.l.bf16 %v2414_v29 }
 0x1be   :  { %2017 = vmatpush.msra.mxu3 %v1651_v42  ;;  %v2408_v42 = vld [vmem:[%s4197_s5 + $0x98] sm:$0xff]   ;;  %2208 = vmatpush.msrb.mxu2 %v2345_v41 }
 0x1bf   :  { %v2340_v45 = vunpack.c.l.bf16 %v2408_v42 }
 0x1c0   :  { %2018 = vmatpush.msra.mxu3 %v1647_v1  ;;  %v2344_v1 = vunpack.c.l.bf16 %v2409_v28 }
 0x1c2   :  { %2019 = vmatpush.msra.mxu3 %v1643_v2  ;;  %v4147_v2 = vld [vmem:[%s4196_s4] sm:$0xf]  ;;  %2209 = vmatpush.msrb.mxu2 %v2344_v1 }
 0x1c3   :  { %v1698_v11 = vperm.slane %v4147_v2, 0  ;;  %v1699_v24 = vperm.slane %v4147_v2, 1  ;;  %v1700_v23 = vperm.slane %v4147_v2, 2 }
 0x1c4   :  { %2020 = vmatpush.msra.mxu3 %v1639_v16  ;;  %v2341_v16 = vunpack.c.h.bf16 %v2408_v42  ;;  %v2413_v42 = vld [vmem:[%s4197_s5 + $0xc0] sm:$0xff]  }
 0x1c5   :  { %v2361_v1 = vunpack.c.h.bf16 %v2413_v42 }
 0x1c6   :  { %2021 = vmatpush.msra.mxu3 %v1635_v18  ;;  %v1723_v18 = vpop.f32.mrf.mxu0  ;;  %2210 = vmatpush.msrb.mxu2 %v2341_v16 }
 0x1c7   :  { %2022 = vmatmul.f32.vlgmr.msra.gmra.mxu3 %v4040_v53  ;;  %v2404_v53 = vld [vmem:[%s4197_s5 + $0x78] sm:$0xff]  }
 0x1c8   :  { %v2325_v10 = vunpack.c.h.bf16 %v2404_v53  ;;  %v2324_v30 = vunpack.c.l.bf16 %v2404_v53  ;;  %v1724_v53 = vadd.f32 %v1723_v18, %v1698_v11  ;;  %2211 = vmatpush.msrb.mxu2 %v2340_v45  ;;  %v2360_v18 = vunpack.c.l.bf16 %v2413_v42 }
 0x1c9   :  { %v1701_v11 = vperm.slane %v4147_v2, 3 }
 0x1ca   :  { %2182 = vmatpush.msrb.mxu1 %v2325_v10  ;;  %v1744_v10 = vadd.f32 %v1743_v47, %v1724_v53  ;;  %2212 = vmatpush.msrb.mxu2 %v2337_v21 }
 0x1cc   :  { %2183 = vmatpush.msrb.mxu1 %v2324_v30  ;;  %v2333_v30 = vunpack.c.h.bf16 %v2406_v31  ;;  %2213 = vmatpush.msrb.mxu2 %v2336_v52 }
 0x1ce   :  { %2184 = vmatpush.msrb.mxu1 %v2321_v4  ;;  %v1803_v20 = vpop.f32.mrf.mxu0  ;;  %2214 = vmatpush.msrb.mxu2 %v2333_v30 }
 0x1cf   :  { %v1804_v62 = vadd.f32 %v1803_v20, %v1699_v24  ;;  %v2426_v24 = vld [vmem:[%s4198_s6] ss:$0 sm:$0xff] }
 0x1d0   :  { %2185 = vmatpush.msrb.mxu1 %v2320_v7  ;;  %v2405_v7 = vld [vmem:[%s4197_s5 + $0x80] sm:$0xff]   ;;  %2215 = vmatpush.msrb.mxu2 %v2332_v13 }
 0x1d1   :  { %v2329_v63 = vunpack.c.h.bf16 %v2405_v7  ;;  %v1824_v37 = vadd.f32 %v1823_v58, %v1804_v62 }
 0x1d2   :  { %2186 = vmatpush.msrb.mxu1 %v2317_v9  ;;  %v2328_v9 = vunpack.c.l.bf16 %v2405_v7 }
 0x1d3   :  { %2216 = vmatpush.msrb.mxu2 %v2329_v63 }
 0x1d4   :  { %2187 = vmatpush.msrb.mxu1 %v2316_v51 }
 0x1d5   :  { %2217 = vmatpush.msrb.mxu2 %v2328_v9 }
 0x1d6   :  { %2188 = vmatpush.msrb.mxu1 %v2313_v17  ;;  %v2389_v17 = vunpack.c.h.bf16 %v2420_v36 }
 0x1d8   :  { %2189 = vmatpush.msrb.mxu1 %v2312_v35  ;;  %2222 = vmatpush.msrb.mxu3 %v2389_v17  ;;  %v2385_v35 = vunpack.c.h.bf16 %v2419_v49 }
 0x1da   :  { %2190 = vmatpush.msrb.mxu1 %v2309_v55  ;;  %v2418_v55 = vld [vmem:[%s4197_s5 + $0xe8] sm:$0xff]   ;;  %2223 = vmatpush.msrb.mxu3 %v2388_v32  ;;  %v1903_v60 = vpop.f32.mrf.mxu1 }
 0x1db   :  { %v2381_v40 = vunpack.c.h.bf16 %v2418_v55  ;;  %v2380_v46 = vunpack.c.l.bf16 %v2418_v55 }
 0x1dc   :  { %2191 = vmatpush.msrb.mxu1 %v2308_v38  ;;  %2224 = vmatpush.msrb.mxu3 %v2385_v35 }
 0x1de   :  { %2192 = vmatpush.msrb.mxu1 %v2305_v22  ;;  %2225 = vmatpush.msrb.mxu3 %v2384_v33  ;;  %v2377_v22 = vunpack.c.h.bf16 %v2417_v15 }
 0x1e0   :  { %2193 = vmatpush.msrb.mxu1 %v2304_v14  ;;  %2226 = vmatpush.msrb.mxu3 %v2381_v40  ;;  %v2376_v14 = vunpack.c.l.bf16 %v2417_v15 }
 0x1e2   :  { %2194 = vmatpush.msrb.mxu1 %v2301_v12  ;;  %v1763_v48 = vpop.f32.mrf.mxu2  ;;  %2227 = vmatpush.msrb.mxu3 %v2380_v46  ;;  %v1883_v12 = vpop.f32.mrf.mxu0 }
 0x1e3   :  { %v1764_v50 = vadd.f32 %v1763_v48, %v1744_v10  ;;  %v1884_v56 = vadd.f32 %v1883_v12, %v1700_v23 }
 0x1e4   :  { %2195 = vmatpush.msrb.mxu1 %v2300_v8  ;;  %2228 = vmatpush.msrb.mxu3 %v2377_v22  ;;  %v2369_v8 = vunpack.c.h.bf16 %v2415_v26 }
 0x1e5   :  { %v1904_v5 = vadd.f32 %v1903_v60, %v1884_v56 }
 0x1e6   :  { %2196 = vmatpush.msrb.mxu1 %v2297_v34  ;;  %2229 = vmatpush.msrb.mxu3 %v2376_v14 }
 0x1e8   :  { %2197 = vmatpush.msrb.mxu1 %v2296_v3  ;;  %2230 = vmatpush.msrb.mxu3 %v2373_v44  ;;  %v2365_v3 = vunpack.c.h.bf16 %v2414_v29 }
 0x1ea   :  { %v1843_v51 = vpop.f32.mrf.mxu2  ;;  %2231 = vmatpush.msrb.mxu3 %v2372_v59 }
 0x1eb   :  { %v1844_v0 = vadd.f32 %v1843_v51, %v1824_v37 }
 0x1ec   :  { %2232 = vmatpush.msrb.mxu3 %v2369_v8 }
 0x1ee   :  { %2233 = vmatpush.msrb.mxu3 %v2368_v25 }
 0x1f0   :  { %2234 = vmatpush.msrb.mxu3 %v2365_v3 }
 0x1f2   :  { %2235 = vmatpush.msrb.mxu3 %v2364_v39 }
 0x1f4   :  { %2236 = vmatpush.msrb.mxu3 %v2361_v1 }
 0x1f6   :  { %2237 = vmatpush.msrb.mxu3 %v2360_v18 }
 0x1fa   :  { %v1983_v21 = vpop.f32.mrf.mxu1 }
 0x1fb   :  { %v1963_v45 = vpop.f32.mrf.mxu0 }
 0x1fc   :  { %v1964_v54 = vadd.f32 %v1963_v45, %v1701_v11 }
 0x1fe   :  { %v1984_v48 = vadd.f32 %v1983_v21, %v1964_v54 }
 0x202   :  { %v1923_v34 = vpop.f32.mrf.mxu2 }
 0x203   :  { %v1924_v57 = vadd.f32 %v1923_v34, %v1904_v5 }
 0x20a   :  { %v1783_v19 = vpop.f32.mrf.mxu3 }
 0x20b   :  { %v1784_v4 = vadd.f32 %v1783_v19, %v1764_v50 }
 0x20d   :  { %v2026_v43 = vmax.f32 %v1784_v4, 0.0 }
 0x20f   :  { %2178 = vmatmul.f32.vlgmr.msrb.gmra.mxu0 %v2026_v43 }
 0x212   :  { %v1863_v27 = vpop.f32.mrf.mxu3 }
 0x213   :  { %v1864_v6 = vadd.f32 %v1863_v27, %v1844_v0 }
 0x215   :  { %v2027_v38 = vmax.f32 %v1864_v6, 0.0 }
 0x217   :  { %2198 = vmatmul.f32.vlgmr.msrb.gmra.mxu1 %v2027_v38 }
 0x222   :  { %v2003_v47 = vpop.f32.mrf.mxu2 }
 0x223   :  { %v2004_v31 = vadd.f32 %v2003_v47, %v1984_v48 }
 0x22a   :  { %v1943_v28 = vpop.f32.mrf.mxu3 }
 0x22b   :  { %v1944_v41 = vadd.f32 %v1943_v28, %v1924_v57 }
 0x22d   :  { %v2028_v16 = vmax.f32 %v1944_v41, 0.0 }
 0x22f   :  { %2218 = vmatmul.f32.vlgmr.msrb.gmra.mxu2 %v2028_v16 }
 0x24a   :  { %v2023_v53 = vpop.f32.mrf.mxu3 }
 0x24b   :  { %v2024_v52 = vadd.f32 %v2023_v53, %v2004_v31 }
 0x24d   :  { %v2029_v10 = vmax.f32 %v2024_v52, 0.0 }
 0x24f   :  { %2238 = vmatmul.f32.vlgmr.msrb.gmra.mxu3 %v2029_v10 }
 0x28c   :  { %v2179_v30 = vpop.f32.mrf.mxu0 }
 0x28d   :  { %v2180_v50 = vadd.f32 %v2426_v24, %v2179_v30 }
 0x294   :  { %v2199_v20 = vpop.f32.mrf.mxu1 }
 0x295   :  { %v2200_v62 = vadd.f32 %v2199_v20, %v2180_v50 }
 0x2b2   :  { %v2219_v19 = vpop.f32.mrf.mxu2 }
 0x2b3   :  { %v2220_v2 = vadd.f32 %v2219_v19, %v2200_v62 }
 0x2d2   :  { %v2239_v4 = vpop.f32.mrf.mxu3 }
 0x2d3   :  { %v2240_v13 = vadd.f32 %v2239_v4, %v2220_v2 }
 0x2d5   :  { %v2242_v7 = vmax.f32 %v2240_v13, 0.0 }
 0x2d7   :  { %2243 = vst [vmem:[#allocation7] sm:$0xff] %v2242_v7 }
 0x2d8   :  { %2254 = dma.vmem_to_hbm [thread:$0]  %s2250_s29, 128, %s2252_s9, [#allocation4]  }
 0x2d9   :  { %2511 = dma.done.wait [#allocation4], 128  }
 0x2da   :  { %2512 = vsyncadd [#allocation4], 4294967168 }
 0x2db   :  { %2259 = vsyncpa [#allocation3], 1 }
 0x2dc   :  { %2260 = vsyncpa [#allocation6], 1 }
 0x2dd   :  { %2261 = vsyncpa [#allocation4], 1 }

</bundles_post_ra>
